<compile_context>
chip_gen: v7x
topology: tpu7x:2x2x1
jax: 0.10.0
libtpu: 0.0.40
codegen_flags: <defaults>
</compile_context>

<pallas_src>
import functools

import jax
import jax.numpy as jnp
from jax.experimental import pallas as pl
from jax.experimental.pallas import tpu as pltpu

_MIB = 1024 * 1024


def _vmem_capacity_bytes():
    """Per-core VMEM capacity; conservative (v7x-sized) fallback if query fails."""
    try:
        return int(pltpu.get_tpu_info().vmem_capacity_bytes)
    except Exception:
        return 64 * _MIB


def _fold_weights(w_hwio):
    """Fold a 3x3 conv (applied after nearest x2) into per-phase 2x2 convs.

    Returns (2, 2, 2, 2, Cin, Cout) f32 indexed [pi, pj, dh, dw]: the padded
    ORIGINAL-resolution row/col feeding output pixel (2*oi+pi, 2*oj+pj) via
    tap (dh, dw) is (oi + pi + dh, oj + pj + dw).
    """
    # m[p, d, k] = 1 iff original 3-tap k folds onto 2-tap d for phase p.
    m = jnp.array([[[1.0, 0.0, 0.0], [0.0, 1.0, 1.0]],
                   [[1.0, 1.0, 0.0], [0.0, 0.0, 1.0]]], dtype=jnp.float32)
    return jnp.einsum('phr,qws,rsio->pqhwio', m, m, w_hwio.astype(jnp.float32))


def _pick_tile_h(h, w, cin, cout, cb, ob, budget):
    """Largest TH whose (generously modelled) per-step VMEM footprint fits."""
    best = 1
    for th in range(1, h + 1):
        est = (2 * th * (w + 2) * cin * cb          # double-buffered main strip
               + 4 * (w + 2) * cin * cb             # double-buffered halo rows
               + (th + 2) * (w + 2) * cin * cb      # assembled padded strip
               + 2 * th * w * 4 * cin * cb          # K-fused patch concat temps
               + 4 * th * w * cout * 4              # per-phase f32 matmul results
               + th * w * 4 * cout * (4 + ob)       # packed result + output cast
               + 2 * th * w * 4 * cout * ob         # double-buffered output block
               + 2 * 16 * cin * cout * cb)          # folded weights
        if est <= budget:
            best = th
        else:
            break
    return best


def _upsample_conv_kernel(x_ref, h0_ref, h1_ref, wf_ref, b4_ref, o_ref, *,
                          k_fused):
    """Fused nearest-x2 + 3x3 conv over one H-strip of one image (NHWC).

    x_ref : (1, TH, W+2, Cin)     zero-padded rows [j*TH, j*TH+TH)
    h0_ref: (1, 1,  W+2, Cin)     halo row j*TH+TH
    h1_ref: (1, 1,  W+2, Cin)     halo row j*TH+TH+1
    wf_ref: (4, 4*Cin, Cout)      K-fused per-phase weights   (k_fused=True)
            (4, 4, Cin, Cout)     per-(phase, tap) weights    (k_fused=False)
    b4_ref: (1, 4*Cout)           bias tiled per phase (f32)
    o_ref : (1, TH, W, 4*Cout)    phase-packed output, p = pi*2 + pj
    """
    th = x_ref.shape[1]
    cin = x_ref.shape[3]
    w = o_ref.shape[2]
    cout = o_ref.shape[3] // 4

    # Assemble the (TH+2, W+2, Cin) padded strip.  Inputs are already in the
    # compute dtype (cast fused with pad/transpose in the wrapper): one copy.
    xs = jnp.concatenate([x_ref[0], h0_ref[0], h1_ref[0]], axis=0)
    bias4 = b4_ref[...]                                   # (1, 4*Cout) f32

    def patch(pi, dh, pj, dw):
        rows = xs[pi + dh: pi + dh + th]                  # leading-dim slice
        return rows[:, pj + dw: pj + dw + w, :].reshape(th * w, cin)

    if k_fused:
        # One MXU matmul per output phase: the 2x2 folded taps live on the
        # contraction dim -> (TH*W, 4*Cin) @ (4*Cin, Cout), no accumulators.
        outs = []
        for pi in range(2):
            for pj in range(2):
                p = pi * 2 + pj
                patch_cat = jnp.concatenate(
                    [patch(pi, dh, pj, dw) for dh in range(2) for dw in range(2)],
                    axis=-1)                              # (TH*W, 4*Cin)
                outs.append(jnp.dot(patch_cat, wf_ref[p],
                                    preferred_element_type=jnp.float32))
        packed = jnp.concatenate(outs, axis=-1) + bias4   # (TH*W, 4*Cout)
    else:
        # Large-Cin fallback: per-phase accumulators initialised with the bias
        # (no separate bias add), matmuls grouped per accumulator (MRB-friendly
        # on v7x; avoids interleaving 4 hot accumulators).
        outs = []
        for pi in range(2):
            for pj in range(2):
                p = pi * 2 + pj
                acc = jnp.broadcast_to(bias4[:, p * cout:(p + 1) * cout],
                                       (th * w, cout))
                for dh in range(2):
                    for dw in range(2):
                        acc = acc + jnp.dot(patch(pi, dh, pj, dw),
                                            wf_ref[p, dh * 2 + dw],
                                            preferred_element_type=jnp.float32)
                outs.append(acc)
        packed = jnp.concatenate(outs, axis=-1)           # (TH*W, 4*Cout)

    # Single lane-dense store (width 4*Cout) instead of 4 masked Cout-wide ones.
    o_ref[0] = packed.reshape(th, w, 4 * cout).astype(o_ref.dtype)


def upsample_forward(x_nchw, weight_oihw=None, bias=None, *, use_conv=True,
                     dims=2, compute_dtype=None, k_fuse=None, tile_h=None):
    """Equivalent of Upsample.forward (nearest x2 [+ 3x3 conv, padding=1])."""
    if dims == 3:
        # Nearest x2 on the inner two dims only; the module's Conv2d-on-5D has
        # no defined semantics, so only the no-conv path is supported here.
        # TODO(synk): fused conv path for dims == 3.
        assert not use_conv
        return jnp.repeat(jnp.repeat(x_nchw, 2, axis=3), 2, axis=4)
    assert dims == 2
    n, c, h, w = x_nchw.shape

    if not use_conv:
        # Pure nearest x2 is data movement only; leave it to XLA.
        return jnp.repeat(jnp.repeat(x_nchw, 2, axis=2), 2, axis=3)

    out_dtype = x_nchw.dtype
    cdt = jnp.dtype(out_dtype if compute_dtype is None else compute_dtype)
    cout = weight_oihw.shape[0]
    if k_fuse is None:
        k_fuse = (4 * c) <= 256        # K-fuse while 4*Cin fits the MXU K nicely

    # Generation-aware VMEM sizing (128 MiB on v5e/v6e, 64 MiB per TC on v7x).
    vmem_cap = _vmem_capacity_bytes()
    vmem_limit = max(32 * _MIB, min((vmem_cap * 3) // 4, 96 * _MIB))
    budget = vmem_limit // 3

    cb = cdt.itemsize
    ob = jnp.dtype(out_dtype).itemsize
    th = tile_h if tile_h is not None else _pick_tile_h(h, w, c, cout, cb, ob,
                                                        budget)
    th = max(1, min(int(th), h))
    if th < h and th >= 8:
        th = (th // 8) * 8             # sublane-friendly strip height
    nh = int(pl.cdiv(h, th))
    h_pad = nh * th                    # pad awkward H instead of TH=1 collapse

    # NCHW -> NHWC (C on lanes), cast to compute dtype, and zero-pad the
    # ORIGINAL-resolution image (conv halo + H padding) in one fused XLA pass.
    # The 4x upsampled tensor is never materialized in HBM.
    xp = jnp.pad(jnp.transpose(x_nchw, (0, 2, 3, 1)).astype(cdt),
                 ((0, 0), (1, 1 + h_pad - h), (1, 1), (0, 0)))

    w_hwio = jnp.transpose(weight_oihw, (2, 3, 1, 0))       # OIHW -> HWIO
    wf = _fold_weights(w_hwio)                               # (2,2,2,2,Cin,Cout)
    if k_fuse:
        wf_arr = wf.reshape(4, 4 * c, cout).astype(cdt)
        wf_spec = pl.BlockSpec((4, 4 * c, cout), lambda i, j: (0, 0, 0))
    else:
        wf_arr = wf.reshape(4, 4, c, cout).astype(cdt)
        wf_spec = pl.BlockSpec((4, 4, c, cout), lambda i, j: (0, 0, 0, 0))
    b4 = jnp.tile(bias.astype(jnp.float32), 4).reshape(1, 4 * cout)

    kernel = functools.partial(_upsample_conv_kernel, k_fused=k_fuse)

    out = pl.pallas_call(
        kernel,
        out_shape=jax.ShapeDtypeStruct((n, h_pad, w, 4 * cout), out_dtype),
        grid_spec=pltpu.PrefetchScalarGridSpec(
            num_scalar_prefetch=0,
            grid=(n, nh),
            in_specs=[
                # main strip: padded rows [j*th, j*th + th)
                pl.BlockSpec((1, th, w + 2, c), lambda i, j: (i, j, 0, 0)),
                # 2-row halo as two 1-row blocks (block size 1 => block idx == row)
                pl.BlockSpec((1, 1, w + 2, c), lambda i, j: (i, (j + 1) * th, 0, 0)),
                pl.BlockSpec((1, 1, w + 2, c), lambda i, j: (i, (j + 1) * th + 1, 0, 0)),
                wf_spec,
                pl.BlockSpec((1, 4 * cout), lambda i, j: (0, 0)),
            ],
            out_specs=pl.BlockSpec((1, th, w, 4 * cout), lambda i, j: (i, j, 0, 0)),
        ),
        compiler_params=pltpu.CompilerParams(
            dimension_semantics=("parallel", "parallel"),
            vmem_limit_bytes=int(vmem_limit)),
    )(xp, xp, xp, wf_arr, b4)

    # Phase-packed NHWC -> NCHW: the one wrapper pass still needed to return
    # NCHW (drop it entirely if the consumer accepts NHWC / phase-packed).
    out = out[:, :h].reshape(n, h, w, 2, 2, cout)
    return jnp.transpose(out, (0, 5, 1, 3, 2, 4)).reshape(n, cout, 2 * h, 2 * w)


if __name__ == "__main__":
    N, C, H, W = 2, 4, 16, 16
    COUT = 4  # out_channels defaults to channels

    key = jax.random.PRNGKey(0)
    k1, k2, k3 = jax.random.split(key, 3)
    x = jax.random.normal(k1, (N, C, H, W), jnp.float32)
    # Deterministic Conv2d-style init (uniform in +-1/sqrt(fan_in)).
    fan_in = C * 3 * 3
    bound = 1.0 / (fan_in ** 0.5)
    weight = jax.random.uniform(k2, (COUT, C, 3, 3), jnp.float32, -bound, bound)
    bias = jax.random.uniform(k3, (COUT,), jnp.float32, -bound, bound)

    def reference(xi):
        x_up = jnp.repeat(jnp.repeat(xi, 2, axis=2), 2, axis=3)
        return jax.lax.conv_general_dilated(
            x_up, weight, window_strides=(1, 1), padding=((1, 1), (1, 1)),
            dimension_numbers=("NCHW", "OIHW", "NCHW"),
        ) + bias[None, :, None, None]

    ref = reference(x)

    # 1) Default: f32 compute, K-fused matmuls, lane-dense phase-packed output.
    out = jax.block_until_ready(jax.jit(upsample_forward)(x, weight, bias))
    assert out.shape == (N, COUT, 2 * H, 2 * W), out.shape
    assert jnp.allclose(out, ref, atol=1e-4, rtol=1e-4), \
        float(jnp.max(jnp.abs(out - ref)))

    # 2) Large-Cin fallback path (per-phase tap accumulation), same numerics.
    out_b = jax.block_until_ready(
        jax.jit(functools.partial(upsample_forward, k_fuse=False))(x, weight, bias))
    assert jnp.allclose(out_b, ref, atol=1e-4, rtol=1e-4), \
        float(jnp.max(jnp.abs(out_b - ref)))

    # 3) Awkward H: multi-strip grid + padded H + halo-row indexing.
    H2 = 10
    x2 = jax.random.normal(k1, (N, C, H2, W), jnp.float32)
    ref2 = reference(x2)
    out2 = jax.block_until_ready(
        jax.jit(functools.partial(upsample_forward, tile_h=8))(x2, weight, bias))
    assert out2.shape == (N, COUT, 2 * H2, 2 * W), out2.shape
    assert jnp.allclose(out2, ref2, atol=1e-4, rtol=1e-4), \
        float(jnp.max(jnp.abs(out2 - ref2)))

    # 4) bf16 MXU path (f32 accumulation); bf16 cast of activations + folded
    #    weights gives ~1e-2 level error vs the f32 PyTorch module.
    out_bf16 = jax.block_until_ready(
        jax.jit(functools.partial(upsample_forward, compute_dtype=jnp.bfloat16))(
            x, weight, bias))
    assert jnp.allclose(out_bf16, ref, atol=5e-2, rtol=5e-2), \
        float(jnp.max(jnp.abs(out_bf16 - ref)))

    # 5) use_conv=False path (pure nearest upsample, plain JAX glue).
    up_only = jax.block_until_ready(
        jax.jit(functools.partial(upsample_forward, use_conv=False))(
            x, weight, bias))
    assert jnp.allclose(up_only, jnp.repeat(jnp.repeat(x, 2, axis=2), 2, axis=3))

    print("KERNEL_OK")
</pallas_src>

<mosaic_0001>
module attributes {stable_mosaic.version = 11 : i64} {
  func.func @_upsample_conv_kernel(%arg0: i32, %arg1: i32, %arg2: memref<1x16x18x4xf32, #tpu.memory_space<vmem>>, %arg3: memref<1x1x18x4xf32, #tpu.memory_space<vmem>>, %arg4: memref<1x1x18x4xf32, #tpu.memory_space<vmem>>, %arg5: memref<4x16x4xf32, #tpu.memory_space<vmem>>, %arg6: memref<1x16xf32, #tpu.memory_space<vmem>>, %arg7: memref<1x16x16x16xf32, #tpu.memory_space<vmem>>) attributes {dimension_semantics = [#tpu.dimension_semantics<parallel>, #tpu.dimension_semantics<parallel>], iteration_bounds = array<i64: 2, 1>, scalar_prefetch = 0 : i64, scratch_operands = 0 : i64, tpu.core_type = #tpu.core_type<tc>, window_params = [{transform_indices = @transform_0, window_bounds = array<i64: 1, 16, 18, 4>}, {transform_indices = @transform_1, window_bounds = array<i64: 1, 1, 18, 4>}, {transform_indices = @transform_2, window_bounds = array<i64: 1, 1, 18, 4>}, {pipeline_mode = #tpu.pipeline_mode<synchronous>, transform_indices = @transform_3, window_bounds = array<i64: 4, 16, 4>}, {pipeline_mode = #tpu.pipeline_mode<synchronous>, transform_indices = @transform_4, window_bounds = array<i64: 1, 16>}, {transform_indices = @transform_5, window_bounds = array<i64: 1, 16, 16, 16>}]} {
    %c0 = arith.constant 0 : index
    %c0_0 = arith.constant 0 : index
    %c0_1 = arith.constant 0 : index
    %c0_2 = arith.constant 0 : index
    %0 = vector.load %arg2[%c0, %c0_0, %c0_1, %c0_2] : memref<1x16x18x4xf32, #tpu.memory_space<vmem>>, vector<1x16x18x4xf32>
    %1 = vector.shape_cast %0 : vector<1x16x18x4xf32> to vector<16x18x4xf32>
    %c0_3 = arith.constant 0 : index
    %c0_4 = arith.constant 0 : index
    %c0_5 = arith.constant 0 : index
    %c0_6 = arith.constant 0 : index
    %2 = vector.load %arg3[%c0_3, %c0_4, %c0_5, %c0_6] : memref<1x1x18x4xf32, #tpu.memory_space<vmem>>, vector<1x1x18x4xf32>
    %3 = vector.shape_cast %2 : vector<1x1x18x4xf32> to vector<1x18x4xf32>
    %c0_7 = arith.constant 0 : index
    %c0_8 = arith.constant 0 : index
    %c0_9 = arith.constant 0 : index
    %c0_10 = arith.constant 0 : index
    %4 = vector.load %arg4[%c0_7, %c0_8, %c0_9, %c0_10] : memref<1x1x18x4xf32, #tpu.memory_space<vmem>>, vector<1x1x18x4xf32>
    %5 = vector.shape_cast %4 : vector<1x1x18x4xf32> to vector<1x18x4xf32>
    %6 = tpu.concatenate %1, %3, %5 in 0 : vector<16x18x4xf32>, vector<1x18x4xf32>, vector<1x18x4xf32> -> vector<18x18x4xf32>
    %c0_11 = arith.constant 0 : index
    %c0_12 = arith.constant 0 : index
    %7 = vector.load %arg6[%c0_11, %c0_12] : memref<1x16xf32, #tpu.memory_space<vmem>>, vector<1x16xf32>
    %8 = vector.extract_strided_slice %6 {offsets = [0, 0, 0], sizes = [16, 18, 4], strides = [1, 1, 1]} : vector<18x18x4xf32> to vector<16x18x4xf32>
    %9 = vector.extract_strided_slice %8 {offsets = [0, 0, 0], sizes = [16, 16, 4], strides = [1, 1, 1]} : vector<16x18x4xf32> to vector<16x16x4xf32>
    %10 = vector.shape_cast %9 : vector<16x16x4xf32> to vector<256x4xf32>
    %11 = vector.extract_strided_slice %6 {offsets = [0, 0, 0], sizes = [16, 18, 4], strides = [1, 1, 1]} : vector<18x18x4xf32> to vector<16x18x4xf32>
    %12 = vector.extract_strided_slice %11 {offsets = [0, 1, 0], sizes = [16, 16, 4], strides = [1, 1, 1]} : vector<16x18x4xf32> to vector<16x16x4xf32>
    %13 = vector.shape_cast %12 : vector<16x16x4xf32> to vector<256x4xf32>
    %14 = vector.extract_strided_slice %6 {offsets = [1, 0, 0], sizes = [16, 18, 4], strides = [1, 1, 1]} : vector<18x18x4xf32> to vector<16x18x4xf32>
    %15 = vector.extract_strided_slice %14 {offsets = [0, 0, 0], sizes = [16, 16, 4], strides = [1, 1, 1]} : vector<16x18x4xf32> to vector<16x16x4xf32>
    %16 = vector.shape_cast %15 : vector<16x16x4xf32> to vector<256x4xf32>
    %17 = vector.extract_strided_slice %6 {offsets = [1, 0, 0], sizes = [16, 18, 4], strides = [1, 1, 1]} : vector<18x18x4xf32> to vector<16x18x4xf32>
    %18 = vector.extract_strided_slice %17 {offsets = [0, 1, 0], sizes = [16, 16, 4], strides = [1, 1, 1]} : vector<16x18x4xf32> to vector<16x16x4xf32>
    %19 = vector.shape_cast %18 : vector<16x16x4xf32> to vector<256x4xf32>
    %20 = tpu.concatenate %10, %13, %16, %19 in 1 : vector<256x4xf32>, vector<256x4xf32>, vector<256x4xf32>, vector<256x4xf32> -> vector<256x16xf32>
    %c0_13 = arith.constant 0 : index
    %c0_14 = arith.constant 0 : index
    %c0_15 = arith.constant 0 : index
    %21 = vector.load %arg5[%c0_13, %c0_14, %c0_15] : memref<4x16x4xf32, #tpu.memory_space<vmem>>, vector<1x16x4xf32>
    %22 = vector.shape_cast %21 : vector<1x16x4xf32> to vector<16x4xf32>
    %cst = arith.constant dense<0.000000e+00> : vector<256x4xf32>
    %23 = tpu.matmul %20, %22, %cst {dimension_numbers = #tpu.dot_dimension_numbers<[1], [0], [0], [1], [0, 0, 1, 1], [], []>} : vector<256x16xf32>, vector<16x4xf32>, vector<256x4xf32> -> vector<256x4xf32>
    %24 = vector.extract_strided_slice %6 {offsets = [0, 0, 0], sizes = [16, 18, 4], strides = [1, 1, 1]} : vector<18x18x4xf32> to vector<16x18x4xf32>
    %25 = vector.extract_strided_slice %24 {offsets = [0, 1, 0], sizes = [16, 16, 4], strides = [1, 1, 1]} : vector<16x18x4xf32> to vector<16x16x4xf32>
    %26 = vector.shape_cast %25 : vector<16x16x4xf32> to vector<256x4xf32>
    %27 = vector.extract_strided_slice %6 {offsets = [0, 0, 0], sizes = [16, 18, 4], strides = [1, 1, 1]} : vector<18x18x4xf32> to vector<16x18x4xf32>
    %28 = vector.extract_strided_slice %27 {offsets = [0, 2, 0], sizes = [16, 16, 4], strides = [1, 1, 1]} : vector<16x18x4xf32> to vector<16x16x4xf32>
    %29 = vector.shape_cast %28 : vector<16x16x4xf32> to vector<256x4xf32>
    %30 = vector.extract_strided_slice %6 {offsets = [1, 0, 0], sizes = [16, 18, 4], strides = [1, 1, 1]} : vector<18x18x4xf32> to vector<16x18x4xf32>
    %31 = vector.extract_strided_slice %30 {offsets = [0, 1, 0], sizes = [16, 16, 4], strides = [1, 1, 1]} : vector<16x18x4xf32> to vector<16x16x4xf32>
    %32 = vector.shape_cast %31 : vector<16x16x4xf32> to vector<256x4xf32>
    %33 = vector.extract_strided_slice %6 {offsets = [1, 0, 0], sizes = [16, 18, 4], strides = [1, 1, 1]} : vector<18x18x4xf32> to vector<16x18x4xf32>
    %34 = vector.extract_strided_slice %33 {offsets = [0, 2, 0], sizes = [16, 16, 4], strides = [1, 1, 1]} : vector<16x18x4xf32> to vector<16x16x4xf32>
    %35 = vector.shape_cast %34 : vector<16x16x4xf32> to vector<256x4xf32>
    %36 = tpu.concatenate %26, %29, %32, %35 in 1 : vector<256x4xf32>, vector<256x4xf32>, vector<256x4xf32>, vector<256x4xf32> -> vector<256x16xf32>
    %c1 = arith.constant 1 : index
    %c0_16 = arith.constant 0 : index
    %c0_17 = arith.constant 0 : index
    %37 = vector.load %arg5[%c1, %c0_16, %c0_17] : memref<4x16x4xf32, #tpu.memory_space<vmem>>, vector<1x16x4xf32>
    %38 = vector.shape_cast %37 : vector<1x16x4xf32> to vector<16x4xf32>
    %cst_18 = arith.constant dense<0.000000e+00> : vector<256x4xf32>
    %39 = tpu.matmul %36, %38, %cst_18 {dimension_numbers = #tpu.dot_dimension_numbers<[1], [0], [0], [1], [0, 0, 1, 1], [], []>} : vector<256x16xf32>, vector<16x4xf32>, vector<256x4xf32> -> vector<256x4xf32>
    %40 = vector.extract_strided_slice %6 {offsets = [1, 0, 0], sizes = [16, 18, 4], strides = [1, 1, 1]} : vector<18x18x4xf32> to vector<16x18x4xf32>
    %41 = vector.extract_strided_slice %40 {offsets = [0, 0, 0], sizes = [16, 16, 4], strides = [1, 1, 1]} : vector<16x18x4xf32> to vector<16x16x4xf32>
    %42 = vector.shape_cast %41 : vector<16x16x4xf32> to vector<256x4xf32>
    %43 = vector.extract_strided_slice %6 {offsets = [1, 0, 0], sizes = [16, 18, 4], strides = [1, 1, 1]} : vector<18x18x4xf32> to vector<16x18x4xf32>
    %44 = vector.extract_strided_slice %43 {offsets = [0, 1, 0], sizes = [16, 16, 4], strides = [1, 1, 1]} : vector<16x18x4xf32> to vector<16x16x4xf32>
    %45 = vector.shape_cast %44 : vector<16x16x4xf32> to vector<256x4xf32>
    %46 = vector.extract_strided_slice %6 {offsets = [2, 0, 0], sizes = [16, 18, 4], strides = [1, 1, 1]} : vector<18x18x4xf32> to vector<16x18x4xf32>
    %47 = vector.extract_strided_slice %46 {offsets = [0, 0, 0], sizes = [16, 16, 4], strides = [1, 1, 1]} : vector<16x18x4xf32> to vector<16x16x4xf32>
    %48 = vector.shape_cast %47 : vector<16x16x4xf32> to vector<256x4xf32>
    %49 = vector.extract_strided_slice %6 {offsets = [2, 0, 0], sizes = [16, 18, 4], strides = [1, 1, 1]} : vector<18x18x4xf32> to vector<16x18x4xf32>
    %50 = vector.extract_strided_slice %49 {offsets = [0, 1, 0], sizes = [16, 16, 4], strides = [1, 1, 1]} : vector<16x18x4xf32> to vector<16x16x4xf32>
    %51 = vector.shape_cast %50 : vector<16x16x4xf32> to vector<256x4xf32>
    %52 = tpu.concatenate %42, %45, %48, %51 in 1 : vector<256x4xf32>, vector<256x4xf32>, vector<256x4xf32>, vector<256x4xf32> -> vector<256x16xf32>
    %c2 = arith.constant 2 : index
    %c0_19 = arith.constant 0 : index
    %c0_20 = arith.constant 0 : index
    %53 = vector.load %arg5[%c2, %c0_19, %c0_20] : memref<4x16x4xf32, #tpu.memory_space<vmem>>, vector<1x16x4xf32>
    %54 = vector.shape_cast %53 : vector<1x16x4xf32> to vector<16x4xf32>
    %cst_21 = arith.constant dense<0.000000e+00> : vector<256x4xf32>
    %55 = tpu.matmul %52, %54, %cst_21 {dimension_numbers = #tpu.dot_dimension_numbers<[1], [0], [0], [1], [0, 0, 1, 1], [], []>} : vector<256x16xf32>, vector<16x4xf32>, vector<256x4xf32> -> vector<256x4xf32>
    %56 = vector.extract_strided_slice %6 {offsets = [1, 0, 0], sizes = [16, 18, 4], strides = [1, 1, 1]} : vector<18x18x4xf32> to vector<16x18x4xf32>
    %57 = vector.extract_strided_slice %56 {offsets = [0, 1, 0], sizes = [16, 16, 4], strides = [1, 1, 1]} : vector<16x18x4xf32> to vector<16x16x4xf32>
    %58 = vector.shape_cast %57 : vector<16x16x4xf32> to vector<256x4xf32>
    %59 = vector.extract_strided_slice %6 {offsets = [1, 0, 0], sizes = [16, 18, 4], strides = [1, 1, 1]} : vector<18x18x4xf32> to vector<16x18x4xf32>
    %60 = vector.extract_strided_slice %59 {offsets = [0, 2, 0], sizes = [16, 16, 4], strides = [1, 1, 1]} : vector<16x18x4xf32> to vector<16x16x4xf32>
    %61 = vector.shape_cast %60 : vector<16x16x4xf32> to vector<256x4xf32>
    %62 = vector.extract_strided_slice %6 {offsets = [2, 0, 0], sizes = [16, 18, 4], strides = [1, 1, 1]} : vector<18x18x4xf32> to vector<16x18x4xf32>
    %63 = vector.extract_strided_slice %62 {offsets = [0, 1, 0], sizes = [16, 16, 4], strides = [1, 1, 1]} : vector<16x18x4xf32> to vector<16x16x4xf32>
    %64 = vector.shape_cast %63 : vector<16x16x4xf32> to vector<256x4xf32>
    %65 = vector.extract_strided_slice %6 {offsets = [2, 0, 0], sizes = [16, 18, 4], strides = [1, 1, 1]} : vector<18x18x4xf32> to vector<16x18x4xf32>
    %66 = vector.extract_strided_slice %65 {offsets = [0, 2, 0], sizes = [16, 16, 4], strides = [1, 1, 1]} : vector<16x18x4xf32> to vector<16x16x4xf32>
    %67 = vector.shape_cast %66 : vector<16x16x4xf32> to vector<256x4xf32>
    %68 = tpu.concatenate %58, %61, %64, %67 in 1 : vector<256x4xf32>, vector<256x4xf32>, vector<256x4xf32>, vector<256x4xf32> -> vector<256x16xf32>
    %c3 = arith.constant 3 : index
    %c0_22 = arith.constant 0 : index
    %c0_23 = arith.constant 0 : index
    %69 = vector.load %arg5[%c3, %c0_22, %c0_23] : memref<4x16x4xf32, #tpu.memory_space<vmem>>, vector<1x16x4xf32>
    %70 = vector.shape_cast %69 : vector<1x16x4xf32> to vector<16x4xf32>
    %cst_24 = arith.constant dense<0.000000e+00> : vector<256x4xf32>
    %71 = tpu.matmul %68, %70, %cst_24 {dimension_numbers = #tpu.dot_dimension_numbers<[1], [0], [0], [1], [0, 0, 1, 1], [], []>} : vector<256x16xf32>, vector<16x4xf32>, vector<256x4xf32> -> vector<256x4xf32>
    %72 = tpu.concatenate %23, %39, %55, %71 in 1 : vector<256x4xf32>, vector<256x4xf32>, vector<256x4xf32>, vector<256x4xf32> -> vector<256x16xf32>
    %73 = vector.broadcast %7 : vector<1x16xf32> to vector<256x16xf32>
    %74 = arith.addf %72, %73 : vector<256x16xf32>
    %75 = vector.shape_cast %74 : vector<256x16xf32> to vector<16x16x16xf32>
    %c0_25 = arith.constant 0 : index
    %c0_26 = arith.constant 0 : index
    %c0_27 = arith.constant 0 : index
    %c0_28 = arith.constant 0 : index
    %76 = vector.load %arg7[%c0_25, %c0_26, %c0_27, %c0_28] : memref<1x16x16x16xf32, #tpu.memory_space<vmem>>, vector<1x16x16x16xf32>
    %77 = vector.shape_cast %76 : vector<1x16x16x16xf32> to vector<16x16x16xf32>
    %78 = vector.shape_cast %75 : vector<16x16x16xf32> to vector<1x16x16x16xf32>
    tpu.vector_store %arg7[%c0_25, %c0_26, %c0_27, %c0_28], %78 {strides = array<i32>} : memref<1x16x16x16xf32, #tpu.memory_space<vmem>>, vector<1x16x16x16xf32>,
    return
  }
  func.func @transform_0(%arg0: i32, %arg1: i32) -> (i32, i32, i32, i32) {
    %c0_i32 = arith.constant 0 : i32
    %c0_i32_0 = arith.constant 0 : i32
    %c0_i32_1 = arith.constant 0 : i32
    return %arg0, %arg1, %c0_i32, %c0_i32_0 : i32, i32, i32, i32
  }
  func.func @transform_1(%arg0: i32, %arg1: i32) -> (i32, i32, i32, i32) {
    %c1_i32 = arith.constant 1 : i32
    %0 = arith.addi %arg1, %c1_i32 : i32
    %c16_i32 = arith.constant 16 : i32
    %1 = arith.muli %0, %c16_i32 : i32
    %c0_i32 = arith.constant 0 : i32
    %c0_i32_0 = arith.constant 0 : i32
    %c0_i32_1 = arith.constant 0 : i32
    return %arg0, %1, %c0_i32, %c0_i32_0 : i32, i32, i32, i32
  }
  func.func @transform_2(%arg0: i32, %arg1: i32) -> (i32, i32, i32, i32) {
    %c1_i32 = arith.constant 1 : i32
    %0 = arith.addi %arg1, %c1_i32 : i32
    %c16_i32 = arith.constant 16 : i32
    %1 = arith.muli %0, %c16_i32 : i32
    %c1_i32_0 = arith.constant 1 : i32
    %2 = arith.addi %1, %c1_i32_0 : i32
    %c0_i32 = arith.constant 0 : i32
    %c0_i32_1 = arith.constant 0 : i32
    %c0_i32_2 = arith.constant 0 : i32
    return %arg0, %2, %c0_i32, %c0_i32_1 : i32, i32, i32, i32
  }
  func.func @transform_3(%arg0: i32, %arg1: i32) -> (i32, i32, i32) {
    %c0_i32 = arith.constant 0 : i32
    %c0_i32_0 = arith.constant 0 : i32
    %c0_i32_1 = arith.constant 0 : i32
    %c0_i32_2 = arith.constant 0 : i32
    return %c0_i32, %c0_i32_0, %c0_i32_1 : i32, i32, i32
  }
  func.func @transform_4(%arg0: i32, %arg1: i32) -> (i32, i32) {
    %c0_i32 = arith.constant 0 : i32
    %c0_i32_0 = arith.constant 0 : i32
    %c0_i32_1 = arith.constant 0 : i32
    return %c0_i32, %c0_i32_0 : i32, i32
  }
  func.func @transform_5(%arg0: i32, %arg1: i32) -> (i32, i32, i32, i32) {
    %c0_i32 = arith.constant 0 : i32
    %c0_i32_0 = arith.constant 0 : i32
    %c0_i32_1 = arith.constant 0 : i32
    return %arg0, %arg1, %c0_i32, %c0_i32_0 : i32, i32, i32, i32
  }
}

</mosaic_0001>

<bundles_post_ra>
// kernel: tile.9
= control target key start
LH: loop header
LB: loop body
LE: loop exit
PB: predicated region body
PF: predicated region fallthrough
CT: control target
= control target key end

     0   :  { %vm7_vm0 = vcmask 31744   ;;  %s37_s8 = smov 4   ;;  %s38_s9 = smov 8   ;;  %vm13_vm1 = vcmask 130144   ;;  %vm19_vm2 = vcmask 97344   ;;  %vm25_vm3 = vcmask 64544   ;;  %s55_s0 = inlined_call_operand.vmem [shape: f32[4,4], index: 0, kind: input, shape index: {}]   ;;  %s56_s1 = inlined_call_operand.vmem [shape: f32[1,16], index: 1, kind: output, shape index: {}]  }
   0x1   :  { %v4_v0 = vld [vmem:[%s55_s0] sm:$0xf]  ;;  %s36_s0 = smov 12  }
   0x2   :  { %5 = vst [vmem:[#allocation1] sm:$0xf] %v4_v0 }
   0x9   :  { %v10_v1 = vld [vmem:[#allocation1 + $0x3] sm:$0x1]   ;;  %v22_v2 = vld [vmem:[#allocation1 + $0x1] sm:$0x1]   ;;  %v6_v3 = vld [vmem:[#allocation1] sm:$0x1]  }
   0xa   :  { %11 = vrot.lane.b32.xlu0 %v10_v1, %s36_s0  ;;  %23 = vrot.lane.b32.xlu1 %v22_v2, %s37_s8  ;;  %v16_v4 = vld [vmem:[#allocation1 + $0x2] sm:$0x1]   ;;  %8 = vst.msk [vmem:[#allocation0] sm:$0x1] %vm7_vm0, %v6_v3  }
   0xe   :  { %17 = vrot.lane.b32.xlu0 %v16_v4, %s38_s9 }
  0x7c   :  { %v12_v5 = vpop.permute.xlu0 %11   ;;  %v24_v6 = vpop.permute.xlu1 %23  }
  0x7d   :  { %14 = vst.msk [vmem:[#allocation0] sm:$0x1] %vm13_vm1, %v12_v5  }
  0x80   :  { %v18_v7 = vpop.permute.xlu0 %17  }
  0x81   :  { %20 = vst.msk [vmem:[#allocation0] sm:$0x1] %vm19_vm2, %v18_v7  }
  0x82   :  { %26 = vst.msk [vmem:[#allocation0] sm:$0x1] %vm25_vm3, %v24_v6  }
  0x89   :  { %v30_v8 = vld [vmem:[#allocation0] sm:$0x1] }
  0x8a   :  { %32 = vst [vmem:[%s56_s1] sm:$0x1] %v30_v8 }

// kernel: tile.8
= control target key start
LH: loop header
LB: loop body
LE: loop exit
PB: predicated region body
PF: predicated region fallthrough
CT: control target
= control target key end

     0   :  { %s22_s0 = inlined_call_operand.vmem [shape: f32[4], index: 0, kind: input, shape index: {}]   ;;  %s23_s1 = inlined_call_operand.vmem [shape: f32[4,4], index: 1, kind: output, shape index: {}]  }
   0x1   :  { %v4_v0 = vld [vmem:[%s22_s0] ss:$0 sm:$0xff] }
   0x2   :  { %5 = vst [vmem:[%s23_s1] sm:$0xf] %v4_v0 }

// kernel: upsample_forward.1
= control target key start
LH: loop header
LB: loop body
LE: loop exit
PB: predicated region body
PF: predicated region fallthrough
CT: control target
= control target key end

     0   :  { %s3968_s18 = smov 0   ;;  %s3970_s19 = smov 0   ;;  %s6229_s0 = inlined_call_operand.vmem [shape: f32[2,18,18,4], index: 0, kind: input, shape index: {}, may-alias: {0,1,2}]   ;;  %s6230_s1 = inlined_call_operand.vmem [shape: f32[2,18,18,4], index: 1, kind: input, shape index: {}, may-alias: {0,1,2}]   ;;  %s6231_s2 = inlined_call_operand.vmem [shape: f32[2,18,18,4], index: 2, kind: input, shape index: {}, may-alias: {0,1,2}]   ;;  %s6232_s3 = inlined_call_operand.vmem [shape: f32[4,16,4], index: 3, kind: input, shape index: {}]   ;;  %s6233_s4 = inlined_call_operand.vmem [shape: f32[1,16], index: 4, kind: input, shape index: {}]   ;;  %s6234_s5 = inlined_call_operand.vmem [shape: f32[2,16,16,16], index: 5, kind: output, shape index: {}]  }
   0x1   :  { %s3972_s20 = smov 0  }
   0x2 LB: > { %s27_s21 = sadd.s32 1, %s3929_s19  ;;  %p3349_p0 = scmp.ge.s32.totalorder %s3933_s20, 1  ;;  %s3933_s20 = sphi %s3972_s20, %s15_s20   ;;  %s3929_s19 = sphi %s3970_s19, %s6513_s19   ;;  %s3925_s18 = sphi %s3968_s18, %s6512_s18  }
   0x3   : > { %p29_p1 = scmp.ge.s32.totalorder %s27_s21, 2  ;;  %p271_p2 = scmp.lt.s32.totalorder %s3933_s20, 3 }
   0x5   : > { %s6515_s21 = smov (%p29_p1, %s27_s21), 0  ;;  %p272_p3 = pnand %p3349_p0, %p271_p2 }
   0x7   : > { %275 = sbr.rel (%p272_p3) target bundleno = 982 (0x3d6), region = 40 }
   0xe   : > { %p343_p4 = scmp.lt.s32.totalorder %s3925_s18, 1  ;;  %vm500_vm0 = vcmask 1046528   ;;  %s3935_s26 = smov 4   ;;  %vm1334_vm1 = vcmask 1045504   ;;  %vm911_vm2 = vcmask 31744   ;;  %vm944_vm3 = vcmask 64512  }
   0xf   : > { %s3936_s27 = smov 8   ;;  %s3937_s11 = smov 12   ;;  %vm977_vm4 = vcmask 97280   ;;  %vm1012_vm5 = vcmask 130048  }
  0x10   : > { %s6517_s18 = smov (!%p343_p4, %s3925_s18), 1 }
  0x11   : > { %s3989_s22 = smul.u32 432, %s6517_s18 }
  0x13   : > { %s3995_s25 = scalar_lea.vmem %s6229_s0, %s3989_s22  ;;  %s3493_s7 = sadd.s32 384, %s3989_s22 }
  0x14   : > { %v3998_v0 = vld [vmem:[%s3995_s25 + $0x18] sm:$0xff]  ;;  %v4001_v1 = vld [vmem:[%s3995_s25 + $0x20] sm:$0xff]  ;;  %v4009_v5 = vld [vmem:[%s3995_s25 + $0x8] sm:$0xff]  ;;  %s4421_s10 = scalar_lea.vmem %s6230_s1, %s3493_s7  ;;  %s3495_s7 = sadd.s32 408, %s3989_s22 }
  0x15   : > { %v4004_v2 = vld [vmem:[%s3995_s25] sm:$0xff]  ;;  %v506_v3 = vrot.slane %v3998_v0, 1  ;;  %v507_v4 = vrot.slane %v4001_v1, 1  ;;  %v4013_v7 = vld [vmem:[%s3995_s25 + $0x28] sm:$0x3]  ;;  %v502_v8 = vrot.slane %v4009_v5, 1  ;;  %s382_s9 = scalar_lea.vmem %s6231_s2, %s3495_s7 }
  0x16   : > { %v501_v6 = vrot.slane %v4004_v2, 1  ;;  %v509_v9 = vrot.slane %v4013_v7, 1  ;;  %v4018_v10 = vld [vmem:[%s3995_s25 + $0x10] sm:$0x3]  ;;  %v4021_v11 = vld [vmem:[%s3995_s25 + $0x38] sm:$0xff]  ;;  %v4056_v24 = vld [vmem:[%s3995_s25 + $0x48] sm:$0xff] }
  0x17   : > { %v4024_v12 = vsel %vm500_vm0, %v506_v3, %v507_v4  ;;  %v504_v13 = vrot.slane %v4018_v10, 1  ;;  %v4028_v14 = vld [vmem:[%s3995_s25 + $0x40] sm:$0x3]  ;;  %v4031_v15 = vld [vmem:[%s3995_s25 + $0x30] sm:$0xff]  ;;  %v512_v18 = vrot.slane %v4021_v11, 1  ;;  %v516_v29 = vrot.slane %v4056_v24, 1 }
  0x18   : > { %627 = vrot.lane.b32.xlu1 %v4024_v12, %s3935_s26  ;;  %v4036_v16 = vsel %vm500_vm0, %v501_v6, %v502_v8  ;;  %v4041_v17 = vsel %vm500_vm0, %v507_v4, %v509_v9  ;;  %v514_v19 = vrot.slane %v4028_v14, 1  ;;  %v511_v21 = vrot.slane %v4031_v15, 1  ;;  %v4050_v22 = vld [vmem:[%s3995_s25 + $0x50] sm:$0xff]  ;;  %v4053_v23 = vld [vmem:[%s3995_s25 + $0x58] sm:$0x3]  ;;  %v4072_v30 = vld [vmem:[%s3995_s25 + $0x68] sm:$0xff] }
  0x19   : > { %6304 = vst [vmem:[#allocation2_spill] sm:$0xff] %v4036_v16  ;;  %623 = vrot.lane.b32.xlu0 %v4036_v16, %s3935_s26  ;;  %v4046_v20 = vsel %vm500_vm0, %v502_v8, %v504_v13  ;;  %v517_v26 = vrot.slane %v4050_v22, 1  ;;  %v519_v27 = vrot.slane %v4053_v23, 1  ;;  %v4075_v31 = vld [vmem:[%s3995_s25 + $0x70] sm:$0x3]  ;;  %v4078_v32 = vld [vmem:[%s3995_s25 + $0x60] sm:$0xff] }
  0x1a   : > { %6305 = vst [vmem:[#allocation3_spill] sm:$0xff] %v4046_v20  ;;  %v4063_v25 = vsel %vm500_vm0, %v512_v18, %v514_v19  ;;  %v4068_v28 = vsel %vm500_vm0, %v511_v21, %v512_v18  ;;  %v522_v34 = vrot.slane %v4072_v30, 1  ;;  %v524_v35 = vrot.slane %v4075_v31, 1  ;;  %v4094_v38 = vld [vmem:[%s3995_s25 + $0x80] sm:$0xff]  ;;  %v4097_v39 = vld [vmem:[%s3995_s25 + $0x88] sm:$0x3] }
  0x1b   : > { %v4085_v33 = vsel %vm500_vm0, %v517_v26, %v519_v27  ;;  %v4090_v36 = vsel %vm500_vm0, %v516_v29, %v517_v26  ;;  %v521_v37 = vrot.slane %v4078_v32, 1  ;;  %v4100_v40 = vld [vmem:[%s3995_s25 + $0x78] sm:$0xff]  ;;  %v527_v42 = vrot.slane %v4094_v38, 1  ;;  %v4119_v47 = vld [vmem:[%s3995_s25 + $0xa0] sm:$0x3]  ;;  %v4122_v48 = vld [vmem:[%s3995_s25 + $0x90] sm:$0xff] }
  0x1c   : > { %629 = vrot.lane.b32.xlu1 %v4041_v17, %s3935_s26  ;;  %v4107_v41 = vsel %vm500_vm0, %v522_v34, %v524_v35  ;;  %v529_v43 = vrot.slane %v4097_v39, 1  ;;  %v526_v45 = vrot.slane %v4100_v40, 1  ;;  %v4116_v46 = vld [vmem:[%s3995_s25 + $0x98] sm:$0xff]  ;;  %v534_v51 = vrot.slane %v4119_v47, 1  ;;  %v4138_v54 = vld [vmem:[%s3995_s25 + $0xb0] sm:$0xff]  ;;  %v4144_v56 = vld [vmem:[%s3995_s25 + $0xa8] sm:$0xff] }
  0x1d   : > { %625 = vrot.lane.b32.xlu0 %v4046_v20, %s3935_s26  ;;  %v4112_v44 = vsel %vm500_vm0, %v521_v37, %v522_v34  ;;  %v532_v50 = vrot.slane %v4116_v46, 1  ;;  %v531_v53 = vrot.slane %v4122_v48, 1  ;;  %v4141_v55 = vld [vmem:[%s3995_s25 + $0xb8] sm:$0x3]  ;;  %v537_v58 = vrot.slane %v4138_v54, 1  ;;  %v4160_v62 = vld [vmem:[%s3995_s25 + $0xc8] sm:$0xff] }
  0x1e   : > { %6306 = vst [vmem:[#allocation4_spill] sm:$0xff] %v4112_v44  ;;  %v4129_v49 = vsel %vm500_vm0, %v527_v42, %v529_v43  ;;  %v4134_v52 = vsel %vm500_vm0, %v526_v45, %v527_v42  ;;  %v539_v59 = vrot.slane %v4141_v55, 1  ;;  %v536_v61 = vrot.slane %v4144_v56, 1  ;;  %v4163_v63 = vld [vmem:[%s3995_s25 + $0xd0] sm:$0x3]  ;;  %v4166_v3 = vld [vmem:[%s3995_s25 + $0xc0] sm:$0xff] }
  0x1f   : > { %6307 = vst [vmem:[#allocation5_spill] sm:$0xff] %v4134_v52  ;;  %v4151_v57 = vsel %vm500_vm0, %v532_v50, %v534_v51  ;;  %v4156_v60 = vsel %vm500_vm0, %v531_v53, %v532_v50  ;;  %6308 = vst [vmem:[#allocation6_spill] sm:$0xff] %v4163_v63  ;;  %v542_v6 = vrot.slane %v4160_v62, 1  ;;  %v544_v8 = vrot.slane %v4163_v63, 1  ;;  %v4182_v18 = vld [vmem:[%s3995_s25 + $0xe0] sm:$0xff]  ;;  %v4188_v21 = vld [vmem:[%s3995_s25 + $0xd8] sm:$0xff] }
  0x20   : > { %633 = vrot.lane.b32.xlu1 %v4063_v25, %s3935_s26  ;;  %v4173_v4 = vsel %vm500_vm0, %v537_v58, %v539_v59  ;;  %v4178_v9 = vsel %vm500_vm0, %v536_v61, %v537_v58  ;;  %v541_v13 = vrot.slane %v4166_v3, 1  ;;  %v4185_v19 = vld [vmem:[%s3995_s25 + $0xe8] sm:$0x3]  ;;  %v547_v27 = vrot.slane %v4182_v18, 1  ;;  %v4204_v37 = vld [vmem:[%s3995_s25 + $0xf8] sm:$0xff]  ;;  %v4210_v43 = vld [vmem:[%s3995_s25 + $0xf0] sm:$0xff] }
  0x21   : > { %631 = vrot.lane.b32.xlu0 %v4068_v28, %s3935_s26  ;;  %6309 = vst [vmem:[#allocation7_spill] sm:$0xff] %v4173_v4  ;;  %6310 = vst [vmem:[#allocation8_spill] sm:$0xff] %v4185_v19  ;;  %v4195_v26 = vsel %vm500_vm0, %v542_v6, %v544_v8  ;;  %v549_v29 = vrot.slane %v4185_v19, 1  ;;  %v546_v35 = vrot.slane %v4188_v21, 1  ;;  %v4207_v42 = vld [vmem:[%s3995_s25 + $0x100] sm:$0x3] }
  0x22   : > { %6311 = vst [vmem:[#allocation9_spill] sm:$0xff] %v4195_v26  ;;  %v4200_v34 = vsel %vm500_vm0, %v541_v13, %v542_v6  ;;  %6313 = vst [vmem:[#allocation11_spill] sm:$0xff] %v4207_v42  ;;  %v552_v50 = vrot.slane %v4204_v37, 1  ;;  %v554_v51 = vrot.slane %v4207_v42, 1  ;;  %v551_v58 = vrot.slane %v4210_v43, 1  ;;  %v4226_v59 = vld [vmem:[%s3995_s25 + $0x110] sm:$0xff] }
  0x23   : > { %6312 = vst [vmem:[#allocation10_spill] sm:$0xff] %v4200_v34  ;;  %v4217_v45 = vsel %vm500_vm0, %v547_v27, %v549_v29  ;;  %v4222_v53 = vsel %vm500_vm0, %v546_v35, %v547_v27  ;;  %v4229_v61 = vld [vmem:[%s3995_s25 + $0x118] sm:$0x3]  ;;  %v4232_v6 = vld [vmem:[%s3995_s25 + $0x108] sm:$0xff]  ;;  %v557_v13 = vrot.slane %v4226_v59, 1  ;;  %v4254_v16 = vld [vmem:[%s3995_s25 + $0x120] sm:$0xff] }
  0x24   : > { %637 = vrot.lane.b32.xlu1 %v4085_v33, %s3935_s26  ;;  %6314 = vst [vmem:[#allocation12_spill] sm:$0xff] %v4217_v45  ;;  %6315 = vst [vmem:[#allocation13_spill] sm:$0xff] %v4222_v53  ;;  %v4239_v8 = vsel %vm500_vm0, %v552_v50, %v554_v51  ;;  %v559_v27 = vrot.slane %v4229_v61, 1  ;;  %v4244_v29 = vsel %vm500_vm0, %v551_v58, %v552_v50  ;;  %v556_v35 = vrot.slane %v4232_v6, 1  ;;  %v4248_v42 = vld [vmem:[%s3995_s25 + $0x128] sm:$0xff]  ;;  %v4270_v20 = vld [vmem:[%s3995_s25 + $0x140] sm:$0xff] }
  0x25   : > { %635 = vrot.lane.b32.xlu0 %v4090_v36, %s3935_s26  ;;  %6316 = vst [vmem:[#allocation14_spill] sm:$0xff] %v4229_v61  ;;  %6317 = vst [vmem:[#allocation15_spill] sm:$0xff] %v4239_v8  ;;  %v562_v50 = vrot.slane %v4248_v42, 1  ;;  %v561_v19 = vrot.slane %v4254_v16, 1 }
  0x26   : > { %6318 = vst [vmem:[#allocation16_spill] sm:$0xff] %v4244_v29  ;;  %6319 = vst [vmem:[#allocation17_spill] sm:$0xff] %v4248_v42  ;;  %v4261_v51 = vsel %vm500_vm0, %v557_v13, %v559_v27  ;;  %v4266_v61 = vsel %vm500_vm0, %v556_v35, %v557_v13  ;;  %v567_v13 = vrot.slane %v4270_v20, 1 }
  0x27   : > { %6321 = vst [vmem:[#allocation19_spill] sm:$0xff] %v4254_v16  ;;  %6322 = vst [vmem:[#allocation20_spill] sm:$0xff] %v4261_v51 }
  0x28   : > { %641 = vrot.lane.b32.xlu1 %v4107_v41, %s3935_s26  ;;  %6323 = vst [vmem:[#allocation21_spill] sm:$0xff] %v4266_v61  ;;  %6324 = vst [vmem:[#allocation22_spill] sm:$0xff] %v4270_v20 }
  0x29   : > { %639 = vrot.lane.b32.xlu0 %v4112_v44, %s3935_s26 }
  0x2c   : > { %645 = vrot.lane.b32.xlu1 %v4129_v49, %s3935_s26 }
  0x2d   : > { %643 = vrot.lane.b32.xlu0 %v4134_v52, %s3935_s26 }
  0x30   : > { %649 = vrot.lane.b32.xlu1 %v4151_v57, %s3935_s26 }
  0x31   : > { %647 = vrot.lane.b32.xlu0 %v4156_v60, %s3935_s26 }
  0x34   : > { %653 = vrot.lane.b32.xlu1 %v4173_v4, %s3935_s26  ;;  %v4317_v4 = vld [vmem:[%s3995_s25 + $0x178] sm:$0x3] }
  0x35   : > { %651 = vrot.lane.b32.xlu0 %v4178_v9, %s3935_s26  ;;  %6335 = vst [vmem:[#allocation33_spill] sm:$0xff] %v4317_v4 }
  0x38   : > { %657 = vrot.lane.b32.xlu1 %v4195_v26, %s3935_s26  ;;  %v4292_v26 = vld [vmem:[%s3995_s25 + $0x158] sm:$0xff] }
  0x39   : > { %655 = vrot.lane.b32.xlu0 %v4200_v34, %s3935_s26  ;;  %6329 = vst [vmem:[#allocation27_spill] sm:$0xff] %v4292_v26  ;;  %v4314_v34 = vld [vmem:[%s3995_s25 + $0x170] sm:$0xff] }
  0x3a   : > { %6334 = vst [vmem:[#allocation32_spill] sm:$0xff] %v4314_v34 }
  0x3c   : > { %661 = vrot.lane.b32.xlu1 %v4217_v45, %s3935_s26  ;;  %v4251_v45 = vld [vmem:[%s3995_s25 + $0x130] sm:$0x3] }
  0x3d   : > { %659 = vrot.lane.b32.xlu0 %v4222_v53, %s3935_s26  ;;  %6320 = vst [vmem:[#allocation18_spill] sm:$0xff] %v4251_v45  ;;  %v564_v58 = vrot.slane %v4251_v45, 1  ;;  %v4288_v45 = vsel %vm500_vm0, %v561_v19, %v562_v50  ;;  %v572_v19 = vrot.slane %v4292_v26, 1 }
  0x3e   : > { %6328 = vst [vmem:[#allocation26_spill] sm:$0xff] %v4288_v45 }
  0x3f   : > { %v4283_v27 = vsel %vm500_vm0, %v562_v50, %v564_v58 }
  0x40   : > { %665 = vrot.lane.b32.xlu1 %v4239_v8, %s3935_s26  ;;  %v4273_v8 = vld [vmem:[%s3995_s25 + $0x148] sm:$0x3]  ;;  %6327 = vst [vmem:[#allocation25_spill] sm:$0xff] %v4283_v27 }
  0x41   : > { %663 = vrot.lane.b32.xlu0 %v4244_v29, %s3935_s26  ;;  %6325 = vst [vmem:[#allocation23_spill] sm:$0xff] %v4273_v8  ;;  %v4276_v29 = vld [vmem:[%s3995_s25 + $0x138] sm:$0xff]  ;;  %v569_v35 = vrot.slane %v4273_v8, 1 }
  0x42   : > { %6326 = vst [vmem:[#allocation24_spill] sm:$0xff] %v4276_v29  ;;  %v566_v53 = vrot.slane %v4276_v29, 1 }
  0x43   : > { %v4305_v58 = vsel %vm500_vm0, %v567_v13, %v569_v35 }
  0x44   : > { %669 = vrot.lane.b32.xlu1 %v4261_v51, %s3935_s26  ;;  %v4295_v51 = vld [vmem:[%s3995_s25 + $0x160] sm:$0x3]  ;;  %6332 = vst [vmem:[#allocation30_spill] sm:$0xff] %v4305_v58  ;;  %v4310_v8 = vsel %vm500_vm0, %v566_v53, %v567_v13  ;;  %v577_v53 = vrot.slane %v4314_v34, 1  ;;  %v579_v13 = vrot.slane %v4317_v4, 1 }
  0x45   : > { %667 = vrot.lane.b32.xlu0 %v4266_v61, %s3935_s26  ;;  %6330 = vst [vmem:[#allocation28_spill] sm:$0xff] %v4295_v51  ;;  %v4298_v61 = vld [vmem:[%s3995_s25 + $0x150] sm:$0xff]  ;;  %v574_v50 = vrot.slane %v4295_v51, 1  ;;  %6333 = vst [vmem:[#allocation31_spill] sm:$0xff] %v4310_v8  ;;  %v4435_v4 = vld [vmem:[%s4421_s10] sm:$0xff] }
  0x46   : > { %6331 = vst [vmem:[#allocation29_spill] sm:$0xff] %v4298_v61  ;;  %v571_v63 = vrot.slane %v4298_v61, 1  ;;  %6342 = vst [vmem:[#allocation40_spill] sm:$0xff] %v4435_v4 }
  0x47   : > { %v4327_v35 = vsel %vm500_vm0, %v572_v19, %v574_v50 }
  0x48   : > { %673 = vrot.lane.b32.xlu1 %v4283_v27, %s3935_s26  ;;  %v4320_v27 = vld [vmem:[%s3995_s25 + $0x168] sm:$0xff]  ;;  %6337 = vst [vmem:[#allocation35_spill] sm:$0xff] %v4327_v35  ;;  %v4332_v51 = vsel %vm500_vm0, %v571_v63, %v572_v19  ;;  %v1010_v63 = vld [vmem:[%s6232_s3] sm:$0xff] }
  0x49   : > { %671 = vrot.lane.b32.xlu0 %v4288_v45, %s3935_s26  ;;  %6336 = vst [vmem:[#allocation34_spill] sm:$0xff] %v4320_v27  ;;  %6338 = vst [vmem:[#allocation36_spill] sm:$0xff] %v4332_v51  ;;  %v576_v45 = vrot.slane %v4320_v27, 1 }
  0x4b   : > { %v4343_v50 = vsel %vm500_vm0, %v576_v45, %v577_v53  ;;  %v1011_v45 = vld [vmem:[%s6232_s3 + $0x8] sm:$0xff] }
  0x4c   : > { %677 = vrot.lane.b32.xlu1 %v4305_v58, %s3935_s26  ;;  %v4340_v58 = vsel %vm500_vm0, %v577_v53, %v579_v13  ;;  %6340 = vst [vmem:[#allocation38_spill] sm:$0xff] %v4343_v50  ;;  %v3841_v19 = vpack.c.bf16 %v1011_v45, %v1010_v63  ;;  %v4430_v45 = vld [vmem:[%s4421_s10 + $0x8] sm:$0xff] }
  0x4d   : > { %675 = vrot.lane.b32.xlu0 %v4310_v8, %s3935_s26  ;;  %6339 = vst [vmem:[#allocation37_spill] sm:$0xff] %v4340_v58  ;;  %6341 = vst [vmem:[#allocation39_spill] sm:$0xff] %v4430_v45  ;;  %v1335_v8 = vrot.slane %v4004_v2, 2 }
  0x4e   : > { %3842 = vmatprep.subr.bf16.mxu0 %v3841_v19 }
  0x4f   : > { %3844 = vmatpush3.bf16.msra.mxu0 %v3841_v19 }
  0x50   : > { %681 = vrot.lane.b32.xlu1 %v4327_v35, %s3935_s26 }
  0x51   : > { %679 = vrot.lane.b32.xlu0 %v4332_v51, %s3935_s26  ;;  %v1336_v51 = vrot.slane %v4009_v5, 2 }
  0x54   : > { %685 = vrot.lane.b32.xlu1 %v4340_v58, %s3935_s26 }
  0x55   : > { %683 = vrot.lane.b32.xlu0 %v4343_v50, %s3935_s26 }
  0x58   : > { %721 = vrot.lane.b32.xlu1 %v4001_v1, %s3936_s27 }
  0x59   : > { %719 = vrot.lane.b32.xlu0 %v3998_v0, %s3936_s27 }
  0x5c   : > { %725 = vrot.lane.b32.xlu1 %v4021_v11, %s3936_s27 }
  0x5d   : > { %723 = vrot.lane.b32.xlu0 %v4031_v15, %s3936_s27 }
  0x60   : > { %729 = vrot.lane.b32.xlu1 %v4050_v22, %s3936_s27 }
  0x61   : > { %727 = vrot.lane.b32.xlu0 %v4056_v24, %s3936_s27 }
  0x64   : > { %733 = vrot.lane.b32.xlu1 %v4072_v30, %s3936_s27 }
  0x65   : > { %731 = vrot.lane.b32.xlu0 %v4078_v32, %s3936_s27 }
  0x68   : > { %737 = vrot.lane.b32.xlu1 %v4094_v38, %s3936_s27 }
  0x69   : > { %735 = vrot.lane.b32.xlu0 %v4100_v40, %s3936_s27 }
  0x6c   : > { %741 = vrot.lane.b32.xlu1 %v4116_v46, %s3936_s27 }
  0x6d   : > { %739 = vrot.lane.b32.xlu0 %v4122_v48, %s3936_s27 }
  0x70   : > { %745 = vrot.lane.b32.xlu1 %v4138_v54, %s3936_s27 }
  0x71   : > { %743 = vrot.lane.b32.xlu0 %v4144_v56, %s3936_s27 }
  0x74   : > { %749 = vrot.lane.b32.xlu1 %v4160_v62, %s3936_s27 }
  0x75   : > { %747 = vrot.lane.b32.xlu0 %v4166_v3, %s3936_s27 }
  0x78   : > { %753 = vrot.lane.b32.xlu1 %v4182_v18, %s3936_s27 }
  0x79   : > { %751 = vrot.lane.b32.xlu0 %v4188_v21, %s3936_s27 }
  0x7c   : > { %757 = vrot.lane.b32.xlu1 %v4204_v37, %s3936_s27 }
  0x7d   : > { %755 = vrot.lane.b32.xlu0 %v4210_v43, %s3936_s27 }
  0x80   : > { %761 = vrot.lane.b32.xlu1 %v4226_v59, %s3936_s27 }
  0x81   : > { %759 = vrot.lane.b32.xlu0 %v4232_v6, %s3936_s27 }
  0x84   : > { %765 = vrot.lane.b32.xlu1 %v4248_v42, %s3936_s27  ;;  %v1340_v42 = vrot.slane %v3998_v0, 2 }
  0x85   : > { %763 = vrot.lane.b32.xlu0 %v4254_v16, %s3936_s27 }
  0x88   : > { %769 = vrot.lane.b32.xlu1 %v4270_v20, %s3936_s27 }
  0x89   : > { %767 = vrot.lane.b32.xlu0 %v4276_v29, %s3936_s27  ;;  %v1338_v29 = vrot.slane %v4018_v10, 2  ;;  %v1337_v10 = vsel %vm1334_vm1, %v1335_v8, %v1336_v51 }
  0x8a   : > { %v4407_v53 = vpop.permute.xlu1 %627 }
  0x8b   : > { %v4409_v13 = vpop.permute.xlu0 %623 }
  0x8c   : > { %773 = vrot.lane.b32.xlu1 %v4292_v26, %s3936_s27 }
  0x8d   : > { %771 = vrot.lane.b32.xlu0 %v4298_v61, %s3936_s27 }
  0x8e   : > { %v4416_v58 = vpop.permute.xlu1 %629 }
  0x8f   : > { %v4423_v63 = vpop.permute.xlu0 %625 }
  0x90   : > { %777 = vrot.lane.b32.xlu1 %v4314_v34, %s3936_s27 }
  0x91   : > { %775 = vrot.lane.b32.xlu0 %v4320_v27, %s3936_s27 }
  0x92   : > { %v4432_v19 = vpop.permute.xlu1 %633 }
  0x93   : > { %v4437_v50 = vpop.permute.xlu0 %631 }
  0x94   : > { %781 = vrot.lane.b32.xlu1 %v4430_v45, %s3936_s27  ;;  %v3387_v45 = vld [vmem:[%s6232_s3 + $0x10] sm:$0xff] }
  0x95   : > { %779 = vrot.lane.b32.xlu0 %v4435_v4, %s3936_s27  ;;  %v3388_v4 = vld [vmem:[%s6232_s3 + $0x18] sm:$0xff] }
  0x96   : > { %v4443_v35 = vpop.permute.xlu1 %637  ;;  %v3845_v26 = vpack.c.bf16 %v3388_v4, %v3387_v45  ;;  %v1339_v4 = vsel %vm1334_vm1, %v1336_v51, %v1338_v29 }
  0x97   : > { %v4445_v34 = vpop.permute.xlu0 %635 }
  0x98   : > { %817 = vrot.lane.b32.xlu1 %v4041_v17, %s3937_s11  ;;  %3846 = vmatprep.subr.bf16.mxu1 %v3845_v26 }
  0x99   : > { %815 = vrot.lane.b32.xlu0 %v4024_v12, %s3937_s11  ;;  %3848 = vmatpush3.bf16.msra.mxu1 %v3845_v26  ;;  %v1341_v26 = vrot.slane %v4001_v1, 2 }
  0x9a   : > { %v4451_v27 = vpop.permute.xlu1 %641 }
  0x9b   : > { %6343 = vst [vmem:[#allocation41_spill] sm:$0xff] %v4451_v27  ;;  %v4453_v61 = vpop.permute.xlu0 %639  ;;  %v1342_v51 = vsel %vm1334_vm1, %v1340_v42, %v1341_v26  ;;  %v1345_v42 = vrot.slane %v4031_v15, 2 }
  0x9c   : > { %6344 = vst [vmem:[#allocation42_spill] sm:$0xff] %v4453_v61  ;;  %821 = vrot.lane.b32.xlu1 %v4063_v25, %s3937_s11 }
  0x9d   : > { %819 = vrot.lane.b32.xlu0 %v4068_v28, %s3937_s11 }
  0x9e   : > { %v4467_v20 = vpop.permute.xlu1 %645 }
  0x9f   : > { %6345 = vst [vmem:[#allocation43_spill] sm:$0xff] %v4467_v20  ;;  %v4470_v27 = vpop.permute.xlu0 %643 }
  0xa0   : > { %6346 = vst [vmem:[#allocation44_spill] sm:$0xff] %v4470_v27  ;;  %825 = vrot.lane.b32.xlu1 %v4085_v33, %s3937_s11  ;;  %v1343_v27 = vrot.slane %v4013_v7, 2 }
  0xa1   : > { %823 = vrot.lane.b32.xlu0 %v4090_v36, %s3937_s11 }
  0xa2   : > { %v4477_v45 = vpop.permute.xlu1 %649  ;;  %v1344_v8 = vsel %vm1334_vm1, %v1341_v26, %v1343_v27  ;;  %v1346_v27 = vrot.slane %v4021_v11, 2 }
  0xa3   : > { %6347 = vst [vmem:[#allocation45_spill] sm:$0xff] %v4477_v45  ;;  %v4480_v20 = vpop.permute.xlu0 %647 }
  0xa4   : > { %6348 = vst [vmem:[#allocation46_spill] sm:$0xff] %v4480_v20  ;;  %1422 = vrot.lane.b32.xlu1 %v1339_v4, %s3935_s26  ;;  %v1360_v20 = vrot.slane %v4100_v40, 2 }
  0xa5   : > { %1420 = vrot.lane.b32.xlu0 %v1337_v10, %s3935_s26 }
  0xa6   : > { %v4486_v16 = vpop.permute.xlu1 %653 }
  0xa7   : > { %6349 = vst [vmem:[#allocation47_spill] sm:$0xff] %v4486_v16  ;;  %v4489_v61 = vpop.permute.xlu0 %651 }
  0xa8   : > { %6350 = vst [vmem:[#allocation48_spill] sm:$0xff] %v4489_v61  ;;  %1518 = vrot.lane.b32.xlu1 %v4041_v17, %s3936_s27 }
  0xa9   : > { %1516 = vrot.lane.b32.xlu0 %v4024_v12, %s3936_s27 }
  0xaa   : > { %v4496_v29 = vpop.permute.xlu1 %657 }
  0xab   : > { %6351 = vst [vmem:[#allocation49_spill] sm:$0xff] %v4496_v29  ;;  %v4499_v4 = vpop.permute.xlu0 %655  ;;  %v1348_v29 = vrot.slane %v4028_v14, 2 }
  0xac   : > { %6352 = vst [vmem:[#allocation50_spill] sm:$0xff] %v4499_v4  ;;  %1614 = vrot.lane.b32.xlu1 %v1344_v8, %s3937_s11 }
  0xad   : > { %1612 = vrot.lane.b32.xlu0 %v1342_v51, %s3937_s11 }
  0xae   : > { %v4503_v7 = vpop.permute.xlu1 %661 }
  0xaf   : > { %6353 = vst [vmem:[#allocation51_spill] sm:$0xff] %v4503_v7  ;;  %v4505_v10 = vpop.permute.xlu0 %659 }
  0xb0   : > { %6354 = vst [vmem:[#allocation52_spill] sm:$0xff] %v4505_v10  ;;  %1426 = vrot.lane.b32.xlu1 %v1344_v8, %s3935_s26  ;;  %v1349_v8 = vsel %vm1334_vm1, %v1346_v27, %v1348_v29  ;;  %v1351_v29 = vrot.slane %v4050_v22, 2 }
  0xb1   : > { %1424 = vrot.lane.b32.xlu0 %v1342_v51, %s3935_s26  ;;  %v1347_v51 = vsel %vm1334_vm1, %v1345_v42, %v1346_v27  ;;  %v1350_v27 = vrot.slane %v4056_v24, 2 }
  0xb2   : > { %v4511_v16 = vpop.permute.xlu1 %665 }
  0xb3   : > { %6355 = vst [vmem:[#allocation53_spill] sm:$0xff] %v4511_v16  ;;  %v4514_v26 = vpop.permute.xlu0 %663 }
  0xb4   : > { %6356 = vst [vmem:[#allocation54_spill] sm:$0xff] %v4514_v26  ;;  %1522 = vrot.lane.b32.xlu1 %v4063_v25, %s3936_s27 }
  0xb5   : > { %1520 = vrot.lane.b32.xlu0 %v4068_v28, %s3936_s27 }
  0xb6   : > { %v4521_v7 = vpop.permute.xlu1 %669 }
  0xb7   : > { %6357 = vst [vmem:[#allocation55_spill] sm:$0xff] %v4521_v7  ;;  %v4524_v10 = vpop.permute.xlu0 %667  ;;  %v1353_v7 = vrot.slane %v4053_v23, 2 }
  0xb8   : > { %6358 = vst [vmem:[#allocation56_spill] sm:$0xff] %v4524_v10  ;;  %1618 = vrot.lane.b32.xlu1 %v1349_v8, %s3937_s11 }
  0xb9   : > { %1616 = vrot.lane.b32.xlu0 %v1347_v51, %s3937_s11 }
  0xba   : > { %v4528_v14 = vpop.permute.xlu1 %673 }
  0xbb   : > { %6359 = vst [vmem:[#allocation57_spill] sm:$0xff] %v4528_v14  ;;  %v4530_v16 = vpop.permute.xlu0 %671 }
  0xbc   : > { %6360 = vst [vmem:[#allocation58_spill] sm:$0xff] %v4530_v16  ;;  %1430 = vrot.lane.b32.xlu1 %v1349_v8, %s3935_s26  ;;  %v1354_v8 = vsel %vm1334_vm1, %v1351_v29, %v1353_v7 }
  0xbd   : > { %1428 = vrot.lane.b32.xlu0 %v1347_v51, %s3935_s26  ;;  %v1352_v51 = vsel %vm1334_vm1, %v1350_v27, %v1351_v29  ;;  %v1356_v29 = vrot.slane %v4072_v30, 2  ;;  %v1358_v27 = vrot.slane %v4075_v31, 2 }
  0xbe   : > { %v4536_v26 = vpop.permute.xlu1 %677 }
  0xbf   : > { %6361 = vst [vmem:[#allocation59_spill] sm:$0xff] %v4536_v26  ;;  %v4539_v42 = vpop.permute.xlu0 %675 }
  0xc0   : > { %6362 = vst [vmem:[#allocation60_spill] sm:$0xff] %v4539_v42  ;;  %1526 = vrot.lane.b32.xlu1 %v4085_v33, %s3936_s27 }
  0xc1   : > { %1524 = vrot.lane.b32.xlu0 %v4090_v36, %s3936_s27 }
  0xc2   : > { %v4546_v14 = vpop.permute.xlu1 %681 }
  0xc3   : > { %6363 = vst [vmem:[#allocation61_spill] sm:$0xff] %v4546_v14  ;;  %v4549_v16 = vpop.permute.xlu0 %679 }
  0xc4   : > { %6364 = vst [vmem:[#allocation62_spill] sm:$0xff] %v4549_v16  ;;  %1622 = vrot.lane.b32.xlu1 %v1354_v8, %s3937_s11 }
  0xc5   : > { %1620 = vrot.lane.b32.xlu0 %v1352_v51, %s3937_s11 }
  0xc6   : > { %v4553_v23 = vpop.permute.xlu1 %685 }
  0xc7   : > { %6365 = vst [vmem:[#allocation63_spill] sm:$0xff] %v4553_v23  ;;  %v4555_v26 = vpop.permute.xlu0 %683 }
  0xc8   : > { %6366 = vst [vmem:[#allocation64_spill] sm:$0xff] %v4555_v26  ;;  %827 = vrot.lane.b32.xlu1 %v4112_v44, %s3937_s11  ;;  %v1355_v26 = vrot.slane %v4078_v32, 2 }
  0xc9   : > { %1432 = vrot.lane.b32.xlu0 %v1352_v51, %s3935_s26  ;;  %v1359_v51 = vsel %vm1334_vm1, %v1356_v29, %v1358_v27 }
  0xca   : > { %v4560_v7 = vpop.permute.xlu1 %721 }
  0xcb   : > { %v4562_v14 = vpop.permute.xlu0 %719 }
  0xcc   : > { %1528 = vrot.lane.b32.xlu1 %v4112_v44, %s3936_s27 }
  0xcd   : > { %1434 = vrot.lane.b32.xlu0 %v1354_v8, %s3935_s26  ;;  %v1357_v8 = vsel %vm1334_vm1, %v1355_v26, %v1356_v29  ;;  %v1361_v26 = vrot.slane %v4094_v38, 2  ;;  %v1363_v29 = vrot.slane %v4097_v39, 2 }
  0xce   : > { %v4569_v23 = vpop.permute.xlu1 %725 }
  0xcf   : > { %v4572_v16 = vpop.permute.xlu0 %723  ;;  %v1362_v38 = vsel %vm1334_vm1, %v1360_v20, %v1361_v26  ;;  %v1366_v20 = vrot.slane %v4116_v46, 2 }
  0xd0   : > { %1530 = vrot.lane.b32.xlu1 %v4107_v41, %s3936_s27 }
  0xd1   : > { %829 = vrot.lane.b32.xlu0 %v4107_v41, %s3937_s11 }
  0xd2   : > { %v4579_v42 = vpop.permute.xlu1 %729 }
  0xd3   : > { %v4582_v10 = vpop.permute.xlu0 %727 }
  0xd4   : > { %1626 = vrot.lane.b32.xlu1 %v1359_v51, %s3937_s11 }
  0xd5   : > { %1624 = vrot.lane.b32.xlu0 %v1357_v8, %s3937_s11 }
  0xd6   : > { %v4586_v31 = vpop.permute.xlu1 %733 }
  0xd7   : > { %v4588_v4 = vpop.permute.xlu0 %731 }
  0xd8   : > { %831 = vrot.lane.b32.xlu1 %v4134_v52, %s3937_s11 }
  0xd9   : > { %1436 = vrot.lane.b32.xlu0 %v1357_v8, %s3935_s26  ;;  %v1364_v8 = vsel %vm1334_vm1, %v1361_v26, %v1363_v29  ;;  %v1368_v26 = vrot.slane %v4119_v47, 2 }
  0xda   : > { %v4593_v27 = vpop.permute.xlu1 %737 }
  0xdb   : > { %v4595_v61 = vpop.permute.xlu0 %735 }
  0xdc   : > { %1532 = vrot.lane.b32.xlu1 %v4134_v52, %s3936_s27 }
  0xdd   : > { %1438 = vrot.lane.b32.xlu0 %v1359_v51, %s3935_s26 }
  0xde   : > { %v4602_v45 = vpop.permute.xlu1 %741 }
  0xdf   : > { %v4605_v44 = vpop.permute.xlu0 %739 }
  0xe0   : > { %1534 = vrot.lane.b32.xlu1 %v4129_v49, %s3936_s27 }
  0xe1   : > { %833 = vrot.lane.b32.xlu0 %v4129_v49, %s3937_s11 }
  0xe2   : > { %v4612_v52 = vpop.permute.xlu1 %745 }
  0xe3   : > { %6367 = vst [vmem:[#allocation65_spill] sm:$0xff] %v4612_v52  ;;  %v4615_v51 = vpop.permute.xlu0 %743 }
  0xe4   : > { %6368 = vst [vmem:[#allocation66_spill] sm:$0xff] %v4615_v51  ;;  %1630 = vrot.lane.b32.xlu1 %v1364_v8, %s3937_s11 }
  0xe5   : > { %1628 = vrot.lane.b32.xlu0 %v1362_v38, %s3937_s11 }
  0xe6   : > { %v4619_v39 = vpop.permute.xlu1 %749 }
  0xe7   : > { %6369 = vst [vmem:[#allocation67_spill] sm:$0xff] %v4619_v39  ;;  %v4621_v40 = vpop.permute.xlu0 %747 }
  0xe8   : > { %6370 = vst [vmem:[#allocation68_spill] sm:$0xff] %v4621_v40  ;;  %835 = vrot.lane.b32.xlu1 %v4156_v60, %s3937_s11  ;;  %v1365_v40 = vrot.slane %v4122_v48, 2 }
  0xe9   : > { %1440 = vrot.lane.b32.xlu0 %v1362_v38, %s3935_s26  ;;  %v1369_v38 = vsel %vm1334_vm1, %v1366_v20, %v1368_v26 }
  0xea   : > { %v4626_v29 = vpop.permute.xlu1 %753  ;;  %v1367_v46 = vsel %vm1334_vm1, %v1365_v40, %v1366_v20  ;;  %v1371_v40 = vrot.slane %v4138_v54, 2  ;;  %v1373_v20 = vrot.slane %v4141_v55, 2 }
  0xeb   : > { %6371 = vst [vmem:[#allocation69_spill] sm:$0xff] %v4626_v29  ;;  %v4628_v52 = vpop.permute.xlu0 %751 }
  0xec   : > { %1536 = vrot.lane.b32.xlu1 %v4156_v60, %s3936_s27 }
  0xed   : > { %1442 = vrot.lane.b32.xlu0 %v1364_v8, %s3935_s26 }
  0xee   : > { %v4635_v39 = vpop.permute.xlu1 %757 }
  0xef   : > { %v4638_v51 = vpop.permute.xlu0 %755 }
  0xf0   : > { %1538 = vrot.lane.b32.xlu1 %v4151_v57, %s3936_s27 }
  0xf1   : > { %837 = vrot.lane.b32.xlu0 %v4151_v57, %s3937_s11 }
  0xf2   : > { %v4645_v29 = vpop.permute.xlu1 %761 }
  0xf3   : > { %6372 = vst [vmem:[#allocation70_spill] sm:$0xff] %v4645_v29  ;;  %v4648_v8 = vpop.permute.xlu0 %759 }
  0xf4   : > { %6373 = vst [vmem:[#allocation71_spill] sm:$0xff] %v4648_v8  ;;  %1634 = vrot.lane.b32.xlu1 %v1369_v38, %s3937_s11 }
  0xf5   : > { %1632 = vrot.lane.b32.xlu0 %v1367_v46, %s3937_s11 }
  0xf6   : > { %v4652_v47 = vpop.permute.xlu1 %765 }
  0xf7   : > { %6374 = vst [vmem:[#allocation72_spill] sm:$0xff] %v4652_v47  ;;  %v4654_v48 = vpop.permute.xlu0 %763 }
  0xf8   : > { %6375 = vst [vmem:[#allocation73_spill] sm:$0xff] %v4654_v48  ;;  %839 = vrot.lane.b32.xlu1 %v4178_v9, %s3937_s11  ;;  %v1370_v48 = vrot.slane %v4144_v56, 2 }
  0xf9   : > { %1444 = vrot.lane.b32.xlu0 %v1367_v46, %s3935_s26  ;;  %v6379_v46 = vld [vmem:[#allocation7_spill] sm:$0xff] }
  0xfa   : > { %v4659_v26 = vpop.permute.xlu1 %769  ;;  %v1372_v54 = vsel %vm1334_vm1, %v1370_v48, %v1371_v40  ;;  %v913_v48 = vsel %vm911_vm2, %v4009_v5, %v4423_v63  ;;  %v6385_v63 = vld [vmem:[#allocation6_spill] sm:$0xff] }
  0xfb   : > { %6376 = vst [vmem:[#allocation74_spill] sm:$0xff] %v4659_v26  ;;  %v4661_v29 = vpop.permute.xlu0 %767  ;;  %v1374_v26 = vsel %vm1334_vm1, %v1371_v40, %v1373_v20  ;;  %v912_v40 = vsel %vm911_vm2, %v4004_v2, %v4409_v13  ;;  %v946_v20 = vsel %vm944_vm3, %v913_v48, %v4560_v7  ;;  %v915_v2 = vsel %vm911_vm2, %v4001_v1, %v4416_v58 }
  0xfc   : > { %6377 = vst [vmem:[#allocation75_spill] sm:$0xff] %v4661_v29  ;;  %1540 = vrot.lane.b32.xlu1 %v4178_v9, %s3936_s27  ;;  %v1376_v13 = vrot.slane %v4160_v62, 2  ;;  %v914_v7 = vsel %vm911_vm2, %v3998_v0, %v4407_v53  ;;  %v1375_v1 = vrot.slane %v4166_v3, 2  ;;  %v6386_v0 = vld [vmem:[#allocation9_spill] sm:$0xff]  ;;  %v917_v53 = vsel %vm911_vm2, %v4021_v11, %v4432_v19 }
  0xfd   : > { %1446 = vrot.lane.b32.xlu0 %v1369_v38, %s3935_s26  ;;  %v947_v58 = vsel %vm944_vm3, %v914_v7, %v4572_v16  ;;  %v916_v3 = vsel %vm911_vm2, %v4031_v15, %v4437_v50  ;;  %v6390_v7 = vld [vmem:[#allocation2_spill] sm:$0xff] }
  0xfe   : > { %v4668_v47 = vpop.permute.xlu1 %773  ;;  %v1377_v11 = vsel %vm1334_vm1, %v1375_v1, %v1376_v13  ;;  %v949_v19 = vsel %vm944_vm3, %v916_v3, %v4582_v10  ;;  %v6387_v10 = vld [vmem:[#allocation13_spill] sm:$0xff] }
  0xff   : > { %6378 = vst [vmem:[#allocation76_spill] sm:$0xff] %v4668_v47  ;;  %v4671_v8 = vpop.permute.xlu0 %771  ;;  %v6384_v47 = vld [vmem:[#allocation10_spill] sm:$0xff] }
 0x100   : > { %1542 = vrot.lane.b32.xlu1 %v6379_v46, %s3936_s27 }
 0x101   : > { %841 = vrot.lane.b32.xlu0 %v6379_v46, %s3937_s11 }
 0x102   : > { %v4678_v29 = vpop.permute.xlu1 %777 }
 0x103   : > { %6380 = vst [vmem:[#allocation7_spill] sm:$0xff] %v4678_v29  ;;  %v4681_v38 = vpop.permute.xlu0 %775 }
 0x104   : > { %6381 = vst [vmem:[#allocation77_spill] sm:$0xff] %v4681_v38  ;;  %1638 = vrot.lane.b32.xlu1 %v1374_v26, %s3937_s11 }
 0x105   : > { %1636 = vrot.lane.b32.xlu0 %v1372_v54, %s3937_s11 }
 0x106   : > { %v4685_v55 = vpop.permute.xlu1 %781 }
 0x107   : > { %6382 = vst [vmem:[#allocation78_spill] sm:$0xff] %v4685_v55  ;;  %v4687_v56 = vpop.permute.xlu0 %779 }
 0x108   : > { %6383 = vst [vmem:[#allocation79_spill] sm:$0xff] %v4687_v56  ;;  %843 = vrot.lane.b32.xlu1 %v6384_v47, %s3937_s11  ;;  %v945_v56 = vsel %vm944_vm3, %v912_v40, %v4562_v14  ;;  %v1378_v14 = vrot.slane %v6385_v63, 2  ;;  %v6389_v63 = vld [vmem:[#allocation8_spill] sm:$0xff] }
 0x109   : > { %1448 = vrot.lane.b32.xlu0 %v1372_v54, %s3935_s26  ;;  %v948_v54 = vsel %vm944_vm3, %v915_v2, %v4569_v23  ;;  %v950_v23 = vsel %vm944_vm3, %v917_v53, %v4579_v42 }
 0x10a   : > { %v818_v55 = vpop.permute.xlu1 %817  ;;  %v1379_v16 = vsel %vm1334_vm1, %v1376_v13, %v1378_v14  ;;  %v1381_v13 = vrot.slane %v4182_v18, 2  ;;  %v1383_v14 = vrot.slane %v6389_v63, 2 }
 0x10b   : > { %v979_v29 = vsel %vm977_vm4, %v946_v20, %v818_v55  ;;  %v816_v38 = vpop.permute.xlu0 %815 }
 0x10c   : > { %1544 = vrot.lane.b32.xlu1 %v6384_v47, %s3936_s27  ;;  %v978_v5 = vsel %vm977_vm4, %v945_v56, %v816_v38 }
 0x10d   : > { %1450 = vrot.lane.b32.xlu0 %v1374_v26, %s3935_s26  ;;  %3637 = vmatprep.mubr.msk.f32.mxu0 %vm1012_vm5, %v978_v5  ;;  %v6388_v5 = vld [vmem:[#allocation3_spill] sm:$0xff] }
 0x10e   : > { %3638 = vmatmul.mubr.msk.f32.vlgmr.msra.gmra.mrb[0].mxu0 %vm1012_vm5, %v979_v29  ;;  %v822_v38 = vpop.permute.xlu1 %821 }
 0x10f   : > { %v4723_v26 = vsel %vm977_vm4, %v948_v54, %v822_v38  ;;  %v820_v62 = vpop.permute.xlu0 %819 }
 0x110   : > { %v4726_v55 = vsel %vm977_vm4, %v947_v58, %v820_v62  ;;  %1546 = vrot.lane.b32.xlu1 %v6386_v0, %s3936_s27  ;;  %v1380_v58 = vrot.slane %v4188_v21, 2 }
 0x111   : > { %845 = vrot.lane.b32.xlu0 %v6386_v0, %s3937_s11  ;;  %3640 = vmatprep.mubr.msk.f32.mxu0 %vm1012_vm5, %v4726_v55 }
 0x112   : > { %3641 = vmatmul.mubr.msk.f32.gmra.mrb[2].mxu0 %vm1012_vm5, %v4723_v26  ;;  %v826_v29 = vpop.permute.xlu1 %825 }
 0x113   : > { %v4749_v56 = vsel %vm977_vm4, %v950_v23, %v826_v29  ;;  %v824_v48 = vpop.permute.xlu0 %823  ;;  %v6391_v23 = vld [vmem:[#allocation12_spill] sm:$0xff]  ;;  %v1382_v29 = vsel %vm1334_vm1, %v1380_v58, %v1381_v13  ;;  %v6394_v58 = vld [vmem:[#allocation15_spill] sm:$0xff] }
 0x114   : > { %v4752_v40 = vsel %vm977_vm4, %v949_v19, %v824_v48  ;;  %1642 = vrot.lane.b32.xlu1 %v1379_v16, %s3937_s11 }
 0x115   : > { %1640 = vrot.lane.b32.xlu0 %v1377_v11, %s3937_s11  ;;  %3643 = vmatprep.mubr.msk.f32.mxu0 %vm1012_vm5, %v4752_v40 }
 0x116   : > { %3644 = vmatmul.mubr.msk.f32.gmra.mrb[4].mxu0 %vm1012_vm5, %v4749_v56  ;;  %v1423_v15 = vpop.permute.xlu1 %1422 }
 0x117   : > { %v1421_v50 = vpop.permute.xlu0 %1420  ;;  %v1709_v2 = vsel %vm911_vm2, %v6388_v5, %v1423_v15  ;;  %v6392_v15 = vld [vmem:[#allocation16_spill] sm:$0xff] }
 0x118   : > { %847 = vrot.lane.b32.xlu1 %v6387_v10, %s3937_s11  ;;  %v1708_v54 = vsel %vm911_vm2, %v6390_v7, %v1421_v50 }
 0x119   : > { %1452 = vrot.lane.b32.xlu0 %v1377_v11, %s3935_s26 }
 0x11a   : > { %v1519_v42 = vpop.permute.xlu1 %1518 }
 0x11b   : > { %v1517_v20 = vpop.permute.xlu0 %1516  ;;  %v1741_v38 = vsel %vm944_vm3, %v1709_v2, %v1519_v42 }
 0x11c   : > { %1548 = vrot.lane.b32.xlu1 %v6387_v10, %s3936_s27  ;;  %v1740_v62 = vsel %vm944_vm3, %v1708_v54, %v1517_v20 }
 0x11d   : > { %1454 = vrot.lane.b32.xlu0 %v1379_v16, %s3935_s26  ;;  %v1384_v16 = vsel %vm1334_vm1, %v1381_v13, %v1383_v14 }
 0x11e   : > { %v1615_v1 = vpop.permute.xlu1 %1614 }
 0x11f   : > { %v1773_v53 = vsel %vm977_vm4, %v1741_v38, %v1615_v1  ;;  %v1613_v3 = vpop.permute.xlu0 %1612  ;;  %v1385_v38 = vrot.slane %v4210_v43, 2 }
 0x120   : > { %1550 = vrot.lane.b32.xlu1 %v6391_v23, %s3936_s27  ;;  %v1772_v18 = vsel %vm977_vm4, %v1740_v62, %v1613_v3 }
 0x121   : > { %849 = vrot.lane.b32.xlu0 %v6391_v23, %s3937_s11  ;;  %3689 = vmatprep.mubr.msk.f32.mxu1 %vm1012_vm5, %v1772_v18 }
 0x122   : > { %3690 = vmatmul.mubr.msk.f32.vlgmr.msra.gmra.mrb[0].mxu1 %vm1012_vm5, %v1773_v53  ;;  %v1427_v21 = vpop.permute.xlu1 %1426 }
 0x123   : > { %v1425_v11 = vpop.permute.xlu0 %1424  ;;  %v1711_v50 = vsel %vm911_vm2, %v4041_v17, %v1427_v21  ;;  %v6393_v17 = vld [vmem:[#allocation11_spill] sm:$0xff] }
 0x124   : > { %1646 = vrot.lane.b32.xlu1 %v1384_v16, %s3937_s11  ;;  %v1710_v42 = vsel %vm911_vm2, %v4024_v12, %v1425_v11  ;;  %v1386_v12 = vrot.slane %v4204_v37, 2  ;;  %v1388_v7 = vrot.slane %v6393_v17, 2  ;;  %v6397_v17 = vld [vmem:[#allocation20_spill] sm:$0xff] }
 0x125   : > { %1644 = vrot.lane.b32.xlu0 %v1382_v29, %s3937_s11 }
 0x126   : > { %v1523_v19 = vpop.permute.xlu1 %1522  ;;  %v1389_v62 = vsel %vm1334_vm1, %v1386_v12, %v1388_v7  ;;  %v1387_v37 = vsel %vm1334_vm1, %v1385_v38, %v1386_v12 }
 0x127   : > { %v1521_v48 = vpop.permute.xlu0 %1520  ;;  %v1743_v20 = vsel %vm944_vm3, %v1711_v50, %v1523_v19  ;;  %v6395_v50 = vld [vmem:[#allocation21_spill] sm:$0xff] }
 0x128   : > { %851 = vrot.lane.b32.xlu1 %v6392_v15, %s3937_s11  ;;  %v1742_v2 = vsel %vm944_vm3, %v1710_v42, %v1521_v48 }
 0x129   : > { %1456 = vrot.lane.b32.xlu0 %v1382_v29, %s3935_s26 }
 0x12a   : > { %v1619_v5 = vpop.permute.xlu1 %1618 }
 0x12b   : > { %v4797_v13 = vsel %vm977_vm4, %v1743_v20, %v1619_v5  ;;  %v1617_v63 = vpop.permute.xlu0 %1616 }
 0x12c   : > { %v4800_v14 = vsel %vm977_vm4, %v1742_v2, %v1617_v63  ;;  %1552 = vrot.lane.b32.xlu1 %v6392_v15, %s3936_s27  ;;  %v1390_v63 = vrot.slane %v4232_v6, 2 }
 0x12d   : > { %1458 = vrot.lane.b32.xlu0 %v1384_v16, %s3935_s26  ;;  %3692 = vmatprep.mubr.msk.f32.mxu1 %vm1012_vm5, %v4800_v14 }
 0x12e   : > { %3693 = vmatmul.mubr.msk.f32.gmra.mrb[2].mxu1 %vm1012_vm5, %v4797_v13  ;;  %v1431_v54 = vpop.permute.xlu1 %1430 }
 0x12f   : > { %v1429_v1 = vpop.permute.xlu0 %1428  ;;  %v1713_v18 = vsel %vm911_vm2, %v4063_v25, %v1431_v54  ;;  %v918_v25 = vsel %vm911_vm2, %v4056_v24, %v4445_v34  ;;  %v1391_v24 = vrot.slane %v4226_v59, 2  ;;  %v6396_v34 = vld [vmem:[#allocation14_spill] sm:$0xff]  ;;  %v919_v54 = vsel %vm911_vm2, %v4050_v22, %v4443_v35 }
 0x130   : > { %1554 = vrot.lane.b32.xlu1 %v6394_v58, %s3936_s27  ;;  %v1712_v43 = vsel %vm911_vm2, %v4068_v28, %v1429_v1  ;;  %v951_v28 = vsel %vm944_vm3, %v918_v25, %v4588_v4  ;;  %v1393_v4 = vrot.slane %v6396_v34, 2  ;;  %v952_v1 = vsel %vm944_vm3, %v919_v54, %v4586_v31  ;;  %v6403_v54 = vld [vmem:[#allocation25_spill] sm:$0xff] }
 0x131   : > { %853 = vrot.lane.b32.xlu0 %v6394_v58, %s3937_s11  ;;  %v1392_v59 = vsel %vm1334_vm1, %v1390_v63, %v1391_v24 }
 0x132   : > { %v1527_v53 = vpop.permute.xlu1 %1526  ;;  %v1394_v7 = vsel %vm1334_vm1, %v1391_v24, %v1393_v4 }
 0x133   : > { %v1525_v3 = vpop.permute.xlu0 %1524  ;;  %v1745_v16 = vsel %vm944_vm3, %v1713_v18, %v1527_v53 }
 0x134   : > { %1650 = vrot.lane.b32.xlu1 %v1389_v62, %s3937_s11  ;;  %v1744_v29 = vsel %vm944_vm3, %v1712_v43, %v1525_v3 }
 0x135   : > { %1648 = vrot.lane.b32.xlu0 %v1387_v37, %s3937_s11 }
 0x136   : > { %v1623_v21 = vpop.permute.xlu1 %1622 }
 0x137   : > { %v4827_v11 = vsel %vm977_vm4, %v1745_v16, %v1623_v21  ;;  %v1621_v19 = vpop.permute.xlu0 %1620  ;;  %v6399_v16 = vld [vmem:[#allocation42_spill] sm:$0xff] }
 0x138   : > { %v4830_v48 = vsel %vm977_vm4, %v1744_v29, %v1621_v19  ;;  %855 = vrot.lane.b32.xlu1 %v6395_v50, %s3937_s11  ;;  %v920_v21 = vsel %vm911_vm2, %v4078_v32, %v6399_v16  ;;  %v3421_v32 = vld [vmem:[%s6232_s3 + $0x20] sm:$0xff] }
 0x139   : > { %1460 = vrot.lane.b32.xlu0 %v1387_v37, %s3935_s26  ;;  %3695 = vmatprep.mubr.msk.f32.mxu1 %vm1012_vm5, %v4830_v48 }
 0x13a   : > { %3696 = vmatmul.mubr.msk.f32.gmra.mrb[4].mxu1 %vm1012_vm5, %v4827_v11  ;;  %v828_v42 = vpop.permute.xlu1 %827 }
 0x13b   : > { %v4845_v20 = vsel %vm977_vm4, %v951_v28, %v828_v42  ;;  %v1433_v5 = vpop.permute.xlu0 %1432  ;;  %v6400_v28 = vld [vmem:[#allocation17_spill] sm:$0xff] }
 0x13c   : > { %1556 = vrot.lane.b32.xlu1 %v6395_v50, %s3936_s27  ;;  %3646 = vmatprep.mubr.msk.f32.mxu0 %vm1012_vm5, %v4845_v20  ;;  %v1714_v22 = vsel %vm911_vm2, %v4090_v36, %v1433_v5  ;;  %v953_v36 = vsel %vm944_vm3, %v920_v21, %v4595_v61  ;;  %v3422_v61 = vld [vmem:[%s6232_s3 + $0x28] sm:$0xff]  ;;  %v1396_v42 = vrot.slane %v6400_v28, 2  ;;  %v6401_v5 = vld [vmem:[#allocation18_spill] sm:$0xff] }
 0x13d   : > { %1462 = vrot.lane.b32.xlu0 %v1389_v62, %s3935_s26  ;;  %v1398_v24 = vrot.slane %v6401_v5, 2  ;;  %v3849_v34 = vpack.c.bf16 %v3422_v61, %v3421_v32  ;;  %v3887_v32 = vld [vmem:[%s3995_s25 + $0x78] sm:$0xff]  ;;  %v6407_v61 = vld [vmem:[#allocation44_spill] sm:$0xff] }
 0x13e   : > { %v1529_v2 = vpop.permute.xlu1 %1528  ;;  %v922_v28 = vsel %vm911_vm2, %v3887_v32, %v6407_v61 }
 0x13f   : > { %v1435_v12 = vpop.permute.xlu0 %1434  ;;  %v1746_v37 = vsel %vm944_vm3, %v1714_v22, %v1529_v2  ;;  %v6402_v2 = vld [vmem:[#allocation19_spill] sm:$0xff]  ;;  %3850 = vmatprep.subr.bf16.mxu0 %v3849_v34 }
 0x140   : > { %1558 = vrot.lane.b32.xlu1 %v6397_v17, %s3936_s27  ;;  %v1715_v53 = vsel %vm911_vm2, %v4085_v33, %v1435_v12  ;;  %v6398_v33 = vld [vmem:[#allocation26_spill] sm:$0xff]  ;;  %v1395_v63 = vrot.slane %v6402_v2, 2  ;;  %3852 = vmatpush3.bf16.msra.mxu0 %v3849_v34 }
 0x141   : > { %857 = vrot.lane.b32.xlu0 %v6397_v17, %s3937_s11  ;;  %v6408_v34 = vld [vmem:[#allocation22_spill] sm:$0xff] }
 0x142   : > { %v1531_v38 = vpop.permute.xlu1 %1530 }
 0x143   : > { %v830_v6 = vpop.permute.xlu0 %829  ;;  %v1747_v35 = vsel %vm944_vm3, %v1715_v53, %v1531_v38  ;;  %v1399_v38 = vsel %vm1334_vm1, %v1396_v42, %v1398_v24 }
 0x144   : > { %v4867_v62 = vsel %vm977_vm4, %v952_v1, %v830_v6  ;;  %1654 = vrot.lane.b32.xlu1 %v1394_v7, %s3937_s11  ;;  %v1397_v6 = vsel %vm1334_vm1, %v1395_v63, %v1396_v42 }
 0x145   : > { %1652 = vrot.lane.b32.xlu0 %v1392_v59, %s3937_s11  ;;  %3647 = vmatmul.mubr.msk.f32.gmra.mrb[6].mxu0 %vm1012_vm5, %v4867_v62 }
 0x146   : > { %v1627_v31 = vpop.permute.xlu1 %1626 }
 0x147   : > { %v4880_v3 = vsel %vm977_vm4, %v1747_v35, %v1627_v31  ;;  %v1625_v18 = vpop.permute.xlu0 %1624 }
 0x148   : > { %v4883_v43 = vsel %vm977_vm4, %v1746_v37, %v1625_v18  ;;  %859 = vrot.lane.b32.xlu1 %v6398_v33, %s3937_s11 }
 0x149   : > { %1464 = vrot.lane.b32.xlu0 %v1392_v59, %s3935_s26  ;;  %3698 = vmatprep.mubr.msk.f32.mxu1 %vm1012_vm5, %v4883_v43 }
 0x14a   : > { %3699 = vmatmul.mubr.msk.f32.gmra.mrb[6].mxu1 %vm1012_vm5, %v4880_v3  ;;  %v832_v29 = vpop.permute.xlu1 %831 }
 0x14b   : > { %v4898_v19 = vsel %vm977_vm4, %v953_v36, %v832_v29  ;;  %v1437_v25 = vpop.permute.xlu0 %1436 }
 0x14c   : > { %1560 = vrot.lane.b32.xlu1 %v6398_v33, %s3936_s27  ;;  %3649 = vmatprep.mubr.msk.f32.mxu0 %vm1012_vm5, %v4898_v19 }
 0x14d   : > { %1466 = vrot.lane.b32.xlu0 %v1394_v7, %s3935_s26  ;;  %v6404_v7 = vld [vmem:[#allocation41_spill] sm:$0xff] }
 0x14e   : > { %v1533_v4 = vpop.permute.xlu1 %1532  ;;  %v921_v59 = vsel %vm911_vm2, %v4072_v30, %v6404_v7  ;;  %v6405_v30 = vld [vmem:[#allocation4_spill] sm:$0xff] }
 0x14f   : > { %v1439_v12 = vpop.permute.xlu0 %1438  ;;  %v954_v53 = vsel %vm944_vm3, %v921_v59, %v4593_v27  ;;  %v1716_v37 = vsel %vm911_vm2, %v6405_v30, %v1437_v25  ;;  %v955_v25 = vsel %vm944_vm3, %v922_v28, %v4605_v44  ;;  %v6409_v44 = vld [vmem:[#allocation23_spill] sm:$0xff] }
 0x150   : > { %1562 = vrot.lane.b32.xlu1 %v6403_v54, %s3936_s27  ;;  %v1717_v31 = vsel %vm911_vm2, %v4107_v41, %v1439_v12  ;;  %v1748_v16 = vsel %vm944_vm3, %v1716_v37, %v1533_v4  ;;  %v6406_v41 = vld [vmem:[#allocation31_spill] sm:$0xff]  ;;  %v1401_v4 = vrot.slane %v6408_v34, 2  ;;  %v1403_v2 = vrot.slane %v6409_v44, 2  ;;  %v6410_v12 = vld [vmem:[#allocation24_spill] sm:$0xff]  ;;  %v6416_v44 = vld [vmem:[#allocation46_spill] sm:$0xff] }
 0x151   : > { %861 = vrot.lane.b32.xlu0 %v6403_v54, %s3937_s11  ;;  %v1400_v7 = vrot.slane %v6410_v12, 2 }
 0x152   : > { %v1535_v1 = vpop.permute.xlu1 %1534 }
 0x153   : > { %v834_v22 = vpop.permute.xlu0 %833  ;;  %v1749_v18 = vsel %vm944_vm3, %v1717_v31, %v1535_v1  ;;  %v6411_v1 = vld [vmem:[#allocation30_spill] sm:$0xff]  ;;  %v1402_v30 = vsel %vm1334_vm1, %v1400_v7, %v1401_v4 }
 0x154   : > { %v4926_v35 = vsel %vm977_vm4, %v954_v53, %v834_v22  ;;  %1658 = vrot.lane.b32.xlu1 %v1399_v38, %s3937_s11  ;;  %v3888_v53 = vld [vmem:[%s3995_s25 + $0x80] sm:$0xff]  ;;  %v6412_v22 = vld [vmem:[#allocation43_spill] sm:$0xff] }
 0x155   : > { %1656 = vrot.lane.b32.xlu0 %v1397_v6, %s3937_s11  ;;  %3650 = vmatmul.mubr.msk.f32.gmra.mrb[8].mxu0 %vm1012_vm5, %v4926_v35 }
 0x156   : > { %v1631_v27 = vpop.permute.xlu1 %1630 }
 0x157   : > { %v4939_v21 = vsel %vm977_vm4, %v1749_v18, %v1631_v27  ;;  %v1629_v36 = vpop.permute.xlu0 %1628 }
 0x158   : > { %v4942_v29 = vsel %vm977_vm4, %v1748_v16, %v1629_v36  ;;  %863 = vrot.lane.b32.xlu1 %v6406_v41, %s3937_s11  ;;  %v6413_v36 = vld [vmem:[#allocation5_spill] sm:$0xff] }
 0x159   : > { %1468 = vrot.lane.b32.xlu0 %v1397_v6, %s3935_s26  ;;  %3701 = vmatprep.mubr.msk.f32.mxu1 %vm1012_vm5, %v4942_v29  ;;  %v1404_v6 = vsel %vm1334_vm1, %v1401_v4, %v1403_v2  ;;  %v3889_v4 = vld [vmem:[%s3995_s25 + $0x90] sm:$0xff] }
 0x15a   : > { %3702 = vmatmul.mubr.msk.f32.gmra.mrb[8].mxu1 %vm1012_vm5, %v4939_v21  ;;  %v836_v42 = vpop.permute.xlu1 %835  ;;  %v924_v2 = vsel %vm911_vm2, %v3889_v4, %v6416_v44  ;;  %v6423_v4 = vld [vmem:[#allocation65_spill] sm:$0xff] }
 0x15b   : > { %v4957_v5 = vsel %vm977_vm4, %v955_v25, %v836_v42  ;;  %v1441_v24 = vpop.permute.xlu0 %1440 }
 0x15c   : > { %1564 = vrot.lane.b32.xlu1 %v6406_v41, %s3936_s27  ;;  %3652 = vmatprep.mubr.msk.f32.mxu0 %vm1012_vm5, %v4957_v5  ;;  %v1718_v32 = vsel %vm911_vm2, %v6413_v36, %v1441_v24  ;;  %v6417_v24 = vld [vmem:[#allocation66_spill] sm:$0xff]  ;;  %v6421_v36 = vld [vmem:[#allocation35_spill] sm:$0xff] }
 0x15d   : > { %1470 = vrot.lane.b32.xlu0 %v1399_v38, %s3935_s26  ;;  %v923_v38 = vsel %vm911_vm2, %v3888_v53, %v6412_v22  ;;  %v6418_v53 = vld [vmem:[#allocation27_spill] sm:$0xff] }
 0x15e   : > { %v1537_v63 = vpop.permute.xlu1 %1536  ;;  %v956_v37 = vsel %vm944_vm3, %v923_v38, %v4602_v45  ;;  %v1406_v22 = vrot.slane %v6418_v53, 2  ;;  %v6419_v38 = vld [vmem:[#allocation28_spill] sm:$0xff] }
 0x15f   : > { %v1443_v59 = vpop.permute.xlu0 %1442  ;;  %v1750_v28 = vsel %vm944_vm3, %v1718_v32, %v1537_v63  ;;  %v957_v63 = vsel %vm944_vm3, %v924_v2, %v6417_v24 }
 0x160   : > { %1566 = vrot.lane.b32.xlu1 %v6411_v1, %s3936_s27  ;;  %v1719_v16 = vsel %vm911_vm2, %v4129_v49, %v1443_v59  ;;  %v6415_v49 = vld [vmem:[#allocation36_spill] sm:$0xff] }
 0x161   : > { %865 = vrot.lane.b32.xlu0 %v6411_v1, %s3937_s11 }
 0x162   : > { %v1539_v31 = vpop.permute.xlu1 %1538 }
 0x163   : > { %v838_v18 = vpop.permute.xlu0 %837  ;;  %v1751_v61 = vsel %vm944_vm3, %v1719_v16, %v1539_v31  ;;  %v1408_v31 = vrot.slane %v6419_v38, 2 }
 0x164   : > { %v4979_v27 = vsel %vm977_vm4, %v956_v37, %v838_v18  ;;  %1662 = vrot.lane.b32.xlu1 %v1404_v6, %s3937_s11  ;;  %v6420_v37 = vld [vmem:[#allocation29_spill] sm:$0xff] }
 0x165   : > { %1660 = vrot.lane.b32.xlu0 %v1402_v30, %s3937_s11  ;;  %3653 = vmatmul.mubr.msk.f32.gmra.mrb[10].mxu0 %vm1012_vm5, %v4979_v27  ;;  %v1405_v18 = vrot.slane %v6420_v37, 2  ;;  %v1409_v32 = vsel %vm1334_vm1, %v1406_v22, %v1408_v31 }
 0x166   : > { %v1635_v45 = vpop.permute.xlu1 %1634 }
 0x167   : > { %v4992_v25 = vsel %vm977_vm4, %v1751_v61, %v1635_v45  ;;  %v1633_v42 = vpop.permute.xlu0 %1632  ;;  %v3890_v61 = vld [vmem:[%s3995_s25 + $0x98] sm:$0xff] }
 0x168   : > { %6414 = vst [vmem:[#allocation10_spill] sm:$0xff] %v4992_v25  ;;  %v4995_v34 = vsel %vm977_vm4, %v1750_v28, %v1633_v42  ;;  %867 = vrot.lane.b32.xlu1 %v6415_v49, %s3937_s11  ;;  %v6422_v45 = vld [vmem:[#allocation45_spill] sm:$0xff]  ;;  %v1407_v42 = vsel %vm1334_vm1, %v1405_v18, %v1406_v22 }
 0x169   : > { %1472 = vrot.lane.b32.xlu0 %v1402_v30, %s3935_s26  ;;  %3704 = vmatprep.mubr.msk.f32.mxu1 %vm1012_vm5, %v4995_v34 }
 0x16a   : > { %3705 = vmatmul.mubr.msk.f32.gmra.mrb[10].mxu1 %vm1012_vm5, %v4992_v25  ;;  %v840_v12 = vpop.permute.xlu1 %839 }
 0x16b   : > { %v5010_v7 = vsel %vm977_vm4, %v957_v63, %v840_v12  ;;  %v1445_v59 = vpop.permute.xlu0 %1444 }
 0x16c   : > { %1568 = vrot.lane.b32.xlu1 %v6415_v49, %s3936_s27  ;;  %3655 = vmatprep.mubr.msk.f32.mxu0 %vm1012_vm5, %v5010_v7  ;;  %v1720_v12 = vsel %vm911_vm2, %v4156_v60, %v1445_v59  ;;  %v6428_v60 = vld [vmem:[#allocation68_spill] sm:$0xff] }
 0x16d   : > { %1474 = vrot.lane.b32.xlu0 %v1404_v6, %s3935_s26  ;;  %v925_v6 = vsel %vm911_vm2, %v3890_v61, %v6422_v45  ;;  %v6427_v61 = vld [vmem:[#allocation48_spill] sm:$0xff] }
 0x16e   : > { %v1541_v30 = vpop.permute.xlu1 %1540  ;;  %v958_v44 = vsel %vm944_vm3, %v925_v6, %v6423_v4 }
 0x16f   : > { %v1447_v16 = vpop.permute.xlu0 %1446  ;;  %v1752_v38 = vsel %vm944_vm3, %v1720_v12, %v1541_v30  ;;  %v6432_v12 = vld [vmem:[#allocation34_spill] sm:$0xff] }
 0x170   : > { %1570 = vrot.lane.b32.xlu1 %v6421_v36, %s3936_s27  ;;  %v1721_v63 = vsel %vm911_vm2, %v4151_v57, %v1447_v16  ;;  %v6426_v57 = vld [vmem:[#allocation38_spill] sm:$0xff]  ;;  %v3891_v16 = vld [vmem:[%s3995_s25 + $0xa8] sm:$0xff] }
 0x171   : > { %869 = vrot.lane.b32.xlu0 %v6421_v36, %s3937_s11  ;;  %v926_v45 = vsel %vm911_vm2, %v3891_v16, %v6427_v61  ;;  %v6435_v61 = vld [vmem:[#allocation40_spill] sm:$0xff] }
 0x172   : > { %v1543_v28 = vpop.permute.xlu1 %1542  ;;  %v959_v59 = vsel %vm944_vm3, %v926_v45, %v6428_v60  ;;  %v616_v45 = vrot.slane %v6435_v61, 1  ;;  %v3892_v60 = vld [vmem:[%s3995_s25 + $0xb0] sm:$0xff] }
 0x173   : > { %v842_v2 = vpop.permute.xlu0 %841  ;;  %v1753_v53 = vsel %vm944_vm3, %v1721_v63, %v1543_v28 }
 0x174   : > { %v5032_v24 = vsel %vm977_vm4, %v958_v44, %v842_v2  ;;  %1666 = vrot.lane.b32.xlu1 %v1409_v32, %s3937_s11  ;;  %v6431_v44 = vld [vmem:[#allocation33_spill] sm:$0xff] }
 0x175   : > { %1664 = vrot.lane.b32.xlu0 %v1407_v42, %s3937_s11  ;;  %3656 = vmatmul.mubr.msk.f32.gmra.mrb[12].mxu0 %vm1012_vm5, %v5032_v24  ;;  %v1413_v2 = vrot.slane %v6431_v44, 2 }
 0x176   : > { %v1639_v22 = vpop.permute.xlu1 %1638 }
 0x177   : > { %v5045_v31 = vsel %vm977_vm4, %v1753_v53, %v1639_v22  ;;  %v1637_v37 = vpop.permute.xlu0 %1636  ;;  %v1410_v53 = vrot.slane %v6432_v12, 2  ;;  %v6437_v12 = vld [vmem:[#allocation67_spill] sm:$0xff] }
 0x178   : > { %6424 = vst [vmem:[#allocation6_spill] sm:$0xff] %v5045_v31  ;;  %v5048_v18 = vsel %vm977_vm4, %v1752_v38, %v1637_v37  ;;  %871 = vrot.lane.b32.xlu1 %v6426_v57, %s3937_s11  ;;  %v6433_v38 = vld [vmem:[#allocation37_spill] sm:$0xff]  ;;  %v6434_v37 = vld [vmem:[#allocation39_spill] sm:$0xff] }
 0x179   : > { %6425 = vst [vmem:[#allocation9_spill] sm:$0xff] %v5048_v18  ;;  %1476 = vrot.lane.b32.xlu0 %v1407_v42, %s3935_s26  ;;  %3707 = vmatprep.mubr.msk.f32.mxu1 %vm1012_vm5, %v5048_v18  ;;  %v6430_v42 = vld [vmem:[#allocation32_spill] sm:$0xff]  ;;  %v617_v16 = vrot.slane %v6434_v37, 1 }
 0x17a   : > { %3708 = vmatmul.mubr.msk.f32.gmra.mrb[12].mxu1 %vm1012_vm5, %v5045_v31  ;;  %v844_v30 = vpop.permute.xlu1 %843  ;;  %v1411_v4 = vrot.slane %v6430_v42, 2 }
 0x17b   : > { %v5063_v6 = vsel %vm977_vm4, %v959_v59, %v844_v30  ;;  %v1449_v28 = vpop.permute.xlu0 %1448  ;;  %v6436_v59 = vld [vmem:[#allocation47_spill] sm:$0xff] }
 0x17c   : > { %6429 = vst [vmem:[#allocation13_spill] sm:$0xff] %v5063_v6  ;;  %1572 = vrot.lane.b32.xlu1 %v6426_v57, %s3936_s27  ;;  %3658 = vmatprep.mubr.msk.f32.mxu0 %vm1012_vm5, %v5063_v6  ;;  %v927_v30 = vsel %vm911_vm2, %v3892_v60, %v6436_v59  ;;  %v1412_v44 = vsel %vm1334_vm1, %v1410_v53, %v1411_v4  ;;  %v3455_v59 = vld [vmem:[%s6232_s3 + $0x30] sm:$0xff] }
 0x17d   : > { %1478 = vrot.lane.b32.xlu0 %v1409_v32, %s3935_s26  ;;  %v1414_v32 = vsel %vm1334_vm1, %v1411_v4, %v1413_v2  ;;  %v960_v31 = vsel %vm944_vm3, %v927_v30, %v6437_v12  ;;  %v5096_v4 = vsel %vm500_vm0, %v616_v45, %v617_v16  ;;  %v447_v2 = vld [vmem:[%s4421_s10 + $0x10] sm:$0x3]  ;;  %v1722_v53 = vsel %vm911_vm2, %v4178_v9, %v1449_v28  ;;  %v3456_v45 = vld [vmem:[%s6232_s3 + $0x38] sm:$0xff]  ;;  %v6439_v28 = vld [vmem:[#allocation50_spill] sm:$0xff] }
 0x17e   : > { %v1545_v63 = vpop.permute.xlu1 %1544  ;;  %6438 = vst [vmem:[#allocation3_spill] sm:$0xff] %v5096_v4  ;;  %v3853_v9 = vpack.c.bf16 %v3456_v45, %v3455_v59 }
 0x17f   : > { %v1451_v22 = vpop.permute.xlu0 %1450  ;;  %v1754_v60 = vsel %vm944_vm3, %v1722_v53, %v1545_v63 }
 0x180   : > { %1574 = vrot.lane.b32.xlu1 %v6433_v38, %s3936_s27  ;;  %v1723_v6 = vsel %vm911_vm2, %v6379_v46, %v1451_v22  ;;  %3854 = vmatprep.subr.bf16.mxu1 %v3853_v9 }
 0x181   : > { %873 = vrot.lane.b32.xlu0 %v6433_v38, %s3937_s11  ;;  %3856 = vmatpush3.bf16.msra.mxu1 %v3853_v9 }
 0x182   : > { %v1547_v42 = vpop.permute.xlu1 %1546 }
 0x183   : > { %v846_v18 = vpop.permute.xlu0 %845 }
 0x184   : > { %v5087_v25 = vsel %vm977_vm4, %v960_v31, %v846_v18  ;;  %1670 = vrot.lane.b32.xlu1 %v1414_v32, %s3937_s11  ;;  %v1755_v31 = vsel %vm944_vm3, %v1723_v6, %v1547_v42  ;;  %v3893_v6 = vld [vmem:[%s3995_s25 + $0xc0] sm:$0xff]  ;;  %v619_v42 = vrot.slane %v447_v2, 1 }
 0x185   : > { %1668 = vrot.lane.b32.xlu0 %v1412_v44, %s3937_s11  ;;  %3659 = vmatmul.mubr.msk.f32.gmra.mrb[14].mxu0 %vm1012_vm5, %v5087_v25  ;;  %v928_v63 = vsel %vm911_vm2, %v3893_v6, %v6439_v28  ;;  %v3894_v6 = vld [vmem:[%s3995_s25 + $0xc8] sm:$0xff] }
 0x186   : > { %v1643_v18 = vpop.permute.xlu1 %1642  ;;  %v961_v12 = vsel %vm944_vm3, %v928_v63, %v4628_v52  ;;  %v1416_v52 = vrot.slane %v6434_v37, 2  ;;  %v6441_v37 = vld [vmem:[#allocation49_spill] sm:$0xff] }
 0x187   : > { %v5104_v46 = vsel %vm977_vm4, %v1755_v31, %v1643_v18  ;;  %v1641_v22 = vpop.permute.xlu0 %1640 }
 0x188   : > { %v5113_v30 = vsel %vm977_vm4, %v1754_v60, %v1641_v22  ;;  %875 = vrot.lane.b32.xlu1 %v5096_v4, %s3937_s11  ;;  %v1418_v60 = vrot.slane %v447_v2, 2  ;;  %v1415_v22 = vrot.slane %v6435_v61, 2  ;;  %v6442_v2 = vld [vmem:[#allocation69_spill] sm:$0xff] }
 0x189   : > { %1480 = vrot.lane.b32.xlu0 %v1412_v44, %s3935_s26  ;;  %3710 = vmatprep.mubr.msk.f32.mxu1 %vm1012_vm5, %v5113_v30  ;;  %v5137_v44 = vsel %vm500_vm0, %v617_v16, %v619_v42 }
 0x18a   : > { %3711 = vmatmul.mubr.msk.f32.gmra.mrb[14].mxu1 %vm1012_vm5, %v5104_v46  ;;  %v848_v53 = vpop.permute.xlu1 %847  ;;  %6440 = vst [vmem:[#allocation8_spill] sm:$0xff] %v5137_v44  ;;  %v1419_v9 = vsel %vm1334_vm1, %v1416_v52, %v1418_v60  ;;  %v1417_v16 = vsel %vm1334_vm1, %v1415_v22, %v1416_v52  ;;  %v449_v22 = vld [vmem:[%s382_s9 + $0x8] sm:$0xff] }
 0x18b   : > { %v5128_v31 = vsel %vm977_vm4, %v961_v12, %v848_v53  ;;  %v1453_v18 = vpop.permute.xlu0 %1452 }
 0x18c   : > { %1576 = vrot.lane.b32.xlu1 %v5096_v4, %s3936_s27  ;;  %3661 = vmatprep.mubr.msk.f32.mxu0 %vm1012_vm5, %v5128_v31  ;;  %v1724_v53 = vsel %vm911_vm2, %v6384_v47, %v1453_v18 }
 0x18d   : > { %1482 = vrot.lane.b32.xlu0 %v1414_v32, %s3935_s26  ;;  %v929_v32 = vsel %vm911_vm2, %v3894_v6, %v6441_v37 }
 0x18e   : > { %v1549_v59 = vpop.permute.xlu1 %1548  ;;  %v962_v61 = vsel %vm944_vm3, %v929_v32, %v6442_v2  ;;  %v448_v32 = vld [vmem:[%s382_s9] sm:$0xff]  ;;  %v3895_v2 = vld [vmem:[%s3995_s25 + $0xd8] sm:$0xff] }
 0x18f   : > { %v1455_v45 = vpop.permute.xlu0 %1454  ;;  %v1756_v6 = vsel %vm944_vm3, %v1724_v53, %v1549_v59  ;;  %v2131_v18 = vrot.slane %v448_v32, 1  ;;  %v2132_v59 = vrot.slane %v449_v22, 1 }
 0x190   : > { %1578 = vrot.lane.b32.xlu1 %v5137_v44, %s3936_s27  ;;  %v1725_v12 = vsel %vm911_vm2, %v6386_v0, %v1455_v45 }
 0x191   : > { %877 = vrot.lane.b32.xlu0 %v5137_v44, %s3937_s11 }
 0x192   : > { %v1551_v28 = vpop.permute.xlu1 %1550 }
 0x193   : > { %v850_v63 = vpop.permute.xlu0 %849  ;;  %v1757_v52 = vsel %vm944_vm3, %v1725_v12, %v1551_v28 }
 0x194   : > { %v5153_v42 = vsel %vm977_vm4, %v962_v61, %v850_v63  ;;  %1674 = vrot.lane.b32.xlu1 %v1419_v9, %s3937_s11  ;;  %v6443_v61 = vld [vmem:[#allocation52_spill] sm:$0xff] }
 0x195   : > { %1672 = vrot.lane.b32.xlu0 %v1417_v16, %s3937_s11  ;;  %3662 = vmatmul.mubr.msk.f32.gmra.mrb[16].mxu0 %vm1012_vm5, %v5153_v42  ;;  %v930_v47 = vsel %vm911_vm2, %v3895_v2, %v6443_v61  ;;  %v3896_v2 = vld [vmem:[%s3995_s25 + $0xe0] sm:$0xff]  ;;  %v6444_v61 = vld [vmem:[#allocation51_spill] sm:$0xff] }
 0x196   : > { %v1647_v60 = vpop.permute.xlu1 %1646  ;;  %v963_v28 = vsel %vm944_vm3, %v930_v47, %v4638_v51  ;;  %v931_v47 = vsel %vm911_vm2, %v3896_v2, %v6444_v61 }
 0x197   : > { %v5169_v0 = vsel %vm977_vm4, %v1757_v52, %v1647_v60  ;;  %v1645_v45 = vpop.permute.xlu0 %1644  ;;  %v2133_v52 = vsel %vm500_vm0, %v2131_v18, %v2132_v59 }
 0x198   : > { %v5172_v37 = vsel %vm977_vm4, %v1756_v6, %v1645_v45  ;;  %2138 = vrot.lane.b32.xlu1 %v5137_v44, %s3935_s26  ;;  %v450_v6 = vld [vmem:[%s382_s9 + $0x10] sm:$0x3] }
 0x199   : > { %3713 = vmatprep.mubr.msk.f32.mxu1 %vm1012_vm5, %v5172_v37  ;;  %2136 = vrot.lane.b32.xlu0 %v5096_v4, %s3935_s26  ;;  %v2134_v45 = vrot.slane %v450_v6, 1  ;;  %v2395_v4 = vrot.slane %v449_v22, 2  ;;  %v2397_v61 = vrot.slane %v450_v6, 2 }
 0x19a   : > { %3714 = vmatmul.mubr.msk.f32.gmra.mrb[16].mxu1 %vm1012_vm5, %v5169_v0  ;;  %v852_v63 = vpop.permute.xlu1 %851 }
 0x19b   : > { %v5188_v12 = vsel %vm977_vm4, %v963_v28, %v852_v63  ;;  %v1457_v53 = vpop.permute.xlu0 %1456  ;;  %v2135_v2 = vsel %vm500_vm0, %v2132_v59, %v2134_v45  ;;  %v6445_v59 = vld [vmem:[#allocation54_spill] sm:$0xff] }
 0x19c   : > { %3664 = vmatprep.mubr.msk.f32.mxu0 %vm1012_vm5, %v5188_v12  ;;  %2399 = vrot.lane.b32.xlu1 %v1417_v16, %s3935_s26  ;;  %v964_v16 = vsel %vm944_vm3, %v931_v47, %v4635_v39  ;;  %v1726_v39 = vsel %vm911_vm2, %v6387_v10, %v1457_v53  ;;  %v6446_v53 = vld [vmem:[#allocation71_spill] sm:$0xff] }
 0x19d   : > { %2142 = vrot.lane.b32.xlu0 %v448_v32, %s3936_s27 }
 0x19e   : > { %v1553_v60 = vpop.permute.xlu1 %1552 }
 0x19f   : > { %v1459_v51 = vpop.permute.xlu0 %1458 }
 0x1a0   : > { %2148 = vrot.lane.b32.xlu1 %v2133_v52, %s3937_s11  ;;  %v1727_v18 = vsel %vm911_vm2, %v6391_v23, %v1459_v51 }
 0x1a1   : > { %2144 = vrot.lane.b32.xlu0 %v449_v22, %s3936_s27 }
 0x1a2   : > { %v1555_v28 = vpop.permute.xlu1 %1554 }
 0x1a3   : > { %v854_v63 = vpop.permute.xlu0 %853  ;;  %v1759_v47 = vsel %vm944_vm3, %v1727_v18, %v1555_v28 }
 0x1a4   : > { %v5203_v44 = vsel %vm977_vm4, %v964_v16, %v854_v63  ;;  %2405 = vrot.lane.b32.xlu1 %v2133_v52, %s3936_s27  ;;  %v2394_v52 = vrot.slane %v448_v32, 2  ;;  %v1758_v63 = vsel %vm944_vm3, %v1726_v39, %v1553_v60  ;;  %v2398_v32 = vsel %vm1334_vm1, %v2395_v4, %v2397_v61  ;;  %v3898_v39 = vld [vmem:[%s3995_s25 + $0xf8] sm:$0xff] }
 0x1a5   : > { %3665 = vmatmul.mubr.msk.f32.gmra.mrb[18].mxu0 %vm1012_vm5, %v5203_v44  ;;  %2401 = vrot.lane.b32.xlu0 %v1419_v9, %s3935_s26  ;;  %v3897_v9 = vld [vmem:[%s3995_s25 + $0xf0] sm:$0xff] }
 0x1a6   : > { %v1651_v16 = vpop.permute.xlu1 %1650  ;;  %v932_v10 = vsel %vm911_vm2, %v3897_v9, %v6445_v59  ;;  %v2396_v45 = vsel %vm1334_vm1, %v2394_v52, %v2395_v4  ;;  %v6448_v4 = vld [vmem:[#allocation70_spill] sm:$0xff] }
 0x1a7   : > { %v5217_v23 = vsel %vm977_vm4, %v1759_v47, %v1651_v16  ;;  %v1649_v51 = vpop.permute.xlu0 %1648  ;;  %v965_v60 = vsel %vm944_vm3, %v932_v10, %v6446_v53  ;;  %v6447_v47 = vld [vmem:[#allocation53_spill] sm:$0xff] }
 0x1a8   : > { %v5220_v22 = vsel %vm977_vm4, %v1758_v63, %v1649_v51  ;;  %2407 = vrot.lane.b32.xlu1 %v2135_v2, %s3936_s27  ;;  %v933_v16 = vsel %vm911_vm2, %v3898_v39, %v6447_v47 }
 0x1a9   : > { %3716 = vmatprep.mubr.msk.f32.mxu1 %vm1012_vm5, %v5220_v22  ;;  %2150 = vrot.lane.b32.xlu0 %v2135_v2, %s3937_s11  ;;  %v966_v52 = vsel %vm944_vm3, %v933_v16, %v6448_v4 }
 0x1aa   : > { %3717 = vmatmul.mubr.msk.f32.gmra.mrb[18].mxu1 %vm1012_vm5, %v5217_v23  ;;  %v856_v6 = vpop.permute.xlu1 %855 }
 0x1ab   : > { %v5236_v28 = vsel %vm977_vm4, %v965_v60, %v856_v6  ;;  %v1461_v18 = vpop.permute.xlu0 %1460 }
 0x1ac   : > { %3667 = vmatprep.mubr.msk.f32.mxu0 %vm1012_vm5, %v5236_v28  ;;  %2413 = vrot.lane.b32.xlu1 %v2398_v32, %s3937_s11  ;;  %v1728_v10 = vsel %vm911_vm2, %v6392_v15, %v1461_v18  ;;  %v6450_v15 = vld [vmem:[#allocation73_spill] sm:$0xff] }
 0x1ad   : > { %2411 = vrot.lane.b32.xlu0 %v2396_v45, %s3937_s11 }
 0x1ae   : > { %v1557_v2 = vpop.permute.xlu1 %1556 }
 0x1af   : > { %v1463_v61 = vpop.permute.xlu0 %1462  ;;  %v1760_v60 = vsel %vm944_vm3, %v1728_v10, %v1557_v2 }
 0x1b0   : > { %v1729_v59 = vsel %vm911_vm2, %v6394_v58, %v1463_v61  ;;  %v3899_v58 = vld [vmem:[%s3995_s25 + $0x108] sm:$0xff]  ;;  %v6449_v61 = vld [vmem:[#allocation56_spill] sm:$0xff] }
 0x1b1   : > { %v934_v47 = vsel %vm911_vm2, %v3899_v58, %v6449_v61 }
 0x1b2   : > { %v1559_v63 = vpop.permute.xlu1 %1558  ;;  %v967_v18 = vsel %vm944_vm3, %v934_v47, %v6450_v15 }
 0x1b3   : > { %v858_v51 = vpop.permute.xlu0 %857  ;;  %v1761_v32 = vsel %vm944_vm3, %v1729_v59, %v1559_v63  ;;  %v6451_v59 = vld [vmem:[#allocation55_spill] sm:$0xff] }
 0x1b4   : > { %v5248_v9 = vsel %vm977_vm4, %v966_v52, %v858_v51  ;;  %v3900_v51 = vld [vmem:[%s3995_s25 + $0x110] sm:$0xff] }
 0x1b5   : > { %3668 = vmatmul.mubr.msk.f32.gmra.mrb[20].mxu0 %vm1012_vm5, %v5248_v9  ;;  %v935_v10 = vsel %vm911_vm2, %v3900_v51, %v6451_v59 }
 0x1b6   : > { %v1655_v53 = vpop.permute.xlu1 %1654 }
 0x1b7   : > { %v5259_v6 = vsel %vm977_vm4, %v1761_v32, %v1655_v53  ;;  %v1653_v45 = vpop.permute.xlu0 %1652  ;;  %v6452_v53 = vld [vmem:[#allocation72_spill] sm:$0xff] }
 0x1b8   : > { %v5262_v39 = vsel %vm977_vm4, %v1760_v60, %v1653_v45  ;;  %v968_v60 = vsel %vm944_vm3, %v935_v10, %v6452_v53 }
 0x1b9   : > { %3719 = vmatprep.mubr.msk.f32.mxu1 %vm1012_vm5, %v5262_v39 }
 0x1ba   : > { %3720 = vmatmul.mubr.msk.f32.gmra.mrb[20].mxu1 %vm1012_vm5, %v5259_v6  ;;  %v860_v2 = vpop.permute.xlu1 %859 }
 0x1bb   : > { %v5274_v16 = vsel %vm977_vm4, %v967_v18, %v860_v2  ;;  %v1465_v63 = vpop.permute.xlu0 %1464 }
 0x1bc   : > { %3670 = vmatprep.mubr.msk.f32.mxu0 %vm1012_vm5, %v5274_v16  ;;  %v1730_v47 = vsel %vm911_vm2, %v6395_v50, %v1465_v63  ;;  %v6454_v50 = vld [vmem:[#allocation75_spill] sm:$0xff] }
 0x1be   : > { %v1561_v4 = vpop.permute.xlu1 %1560 }
 0x1bf   : > { %v1467_v52 = vpop.permute.xlu0 %1466  ;;  %v1762_v2 = vsel %vm944_vm3, %v1730_v47, %v1561_v4  ;;  %v3902_v47 = vld [vmem:[%s3995_s25 + $0x128] sm:$0xff] }
 0x1c0   : > { %v1731_v61 = vsel %vm911_vm2, %v6397_v17, %v1467_v52  ;;  %v3901_v17 = vld [vmem:[%s3995_s25 + $0x120] sm:$0xff] }
 0x1c1   : > { %v6453_v52 = vld [vmem:[#allocation58_spill] sm:$0xff] }
 0x1c2   : > { %v1563_v32 = vpop.permute.xlu1 %1562  ;;  %v936_v53 = vsel %vm911_vm2, %v3901_v17, %v6453_v52 }
 0x1c3   : > { %v862_v45 = vpop.permute.xlu0 %861  ;;  %v1763_v15 = vsel %vm944_vm3, %v1731_v61, %v1563_v32  ;;  %v969_v63 = vsel %vm944_vm3, %v936_v53, %v6454_v50 }
 0x1c4   : > { %v5284_v58 = vsel %vm977_vm4, %v968_v60, %v862_v45 }
 0x1c5   : > { %3671 = vmatmul.mubr.msk.f32.gmra.mrb[22].mxu0 %vm1012_vm5, %v5284_v58 }
 0x1c6   : > { %v1659_v18 = vpop.permute.xlu1 %1658 }
 0x1c7   : > { %v5295_v51 = vsel %vm977_vm4, %v1763_v15, %v1659_v18  ;;  %v1657_v59 = vpop.permute.xlu0 %1656  ;;  %v6455_v15 = vld [vmem:[#allocation57_spill] sm:$0xff] }
 0x1c8   : > { %v5298_v10 = vsel %vm977_vm4, %v1762_v2, %v1657_v59  ;;  %v937_v18 = vsel %vm911_vm2, %v3902_v47, %v6455_v15  ;;  %v6456_v59 = vld [vmem:[#allocation74_spill] sm:$0xff] }
 0x1c9   : > { %3722 = vmatprep.mubr.msk.f32.mxu1 %vm1012_vm5, %v5298_v10  ;;  %v970_v17 = vsel %vm944_vm3, %v937_v18, %v6456_v59 }
 0x1ca   : > { %3723 = vmatmul.mubr.msk.f32.gmra.mrb[22].mxu1 %vm1012_vm5, %v5295_v51  ;;  %v864_v4 = vpop.permute.xlu1 %863 }
 0x1cb   : > { %v5310_v32 = vsel %vm977_vm4, %v969_v63, %v864_v4  ;;  %v1469_v60 = vpop.permute.xlu0 %1468 }
 0x1cc   : > { %3673 = vmatprep.mubr.msk.f32.mxu0 %vm1012_vm5, %v5310_v32  ;;  %v1732_v63 = vsel %vm911_vm2, %v6398_v33, %v1469_v60 }
 0x1ce   : > { %v1565_v45 = vpop.permute.xlu1 %1564 }
 0x1cf   : > { %v1471_v61 = vpop.permute.xlu0 %1470  ;;  %v1764_v15 = vsel %vm944_vm3, %v1732_v63, %v1565_v45 }
 0x1d0   : > { %v1733_v50 = vsel %vm911_vm2, %v6403_v54, %v1471_v61  ;;  %v3903_v54 = vld [vmem:[%s3995_s25 + $0x138] sm:$0xff]  ;;  %v6459_v61 = vld [vmem:[#allocation60_spill] sm:$0xff] }
 0x1d2   : > { %v1567_v2 = vpop.permute.xlu1 %1566 }
 0x1d3   : > { %v866_v52 = vpop.permute.xlu0 %865  ;;  %v1765_v4 = vsel %vm944_vm3, %v1733_v50, %v1567_v2 }
 0x1d4   : > { %v5320_v53 = vsel %vm977_vm4, %v970_v17, %v866_v52  ;;  %v938_v52 = vsel %vm911_vm2, %v3903_v54, %v6459_v61  ;;  %v6463_v61 = vld [vmem:[#allocation76_spill] sm:$0xff] }
 0x1d5   : > { %3674 = vmatmul.mubr.msk.f32.gmra.mrb[24].mxu0 %vm1012_vm5, %v5320_v53  ;;  %v971_v33 = vsel %vm944_vm3, %v938_v52, %v4671_v8 }
 0x1d6   : > { %v1663_v47 = vpop.permute.xlu1 %1662 }
 0x1d7   : > { %v5331_v18 = vsel %vm977_vm4, %v1765_v4, %v1663_v47  ;;  %v1661_v59 = vpop.permute.xlu0 %1660  ;;  %v3904_v47 = vld [vmem:[%s3995_s25 + $0x140] sm:$0xff] }
 0x1d8   : > { %6457 = vst [vmem:[#allocation2_spill] sm:$0xff] %v5331_v18  ;;  %v5334_v17 = vsel %vm977_vm4, %v1764_v15, %v1661_v59  ;;  %v6461_v15 = vld [vmem:[#allocation59_spill] sm:$0xff] }
 0x1d9   : > { %6458 = vst [vmem:[#allocation12_spill] sm:$0xff] %v5334_v17  ;;  %3725 = vmatprep.mubr.msk.f32.mxu1 %vm1012_vm5, %v5334_v17  ;;  %v939_v59 = vsel %vm911_vm2, %v3904_v47, %v6461_v15 }
 0x1da   : > { %3726 = vmatmul.mubr.msk.f32.gmra.mrb[24].mxu1 %vm1012_vm5, %v5331_v18  ;;  %v868_v60 = vpop.permute.xlu1 %867  ;;  %v972_v52 = vsel %vm944_vm3, %v939_v59, %v6463_v61 }
 0x1db   : > { %v5346_v45 = vsel %vm977_vm4, %v971_v33, %v868_v60  ;;  %v1473_v2 = vpop.permute.xlu0 %1472 }
 0x1dc   : > { %3676 = vmatprep.mubr.msk.f32.mxu0 %vm1012_vm5, %v5346_v45  ;;  %v1734_v47 = vsel %vm911_vm2, %v6406_v41, %v1473_v2 }
 0x1de   : > { %v1569_v50 = vpop.permute.xlu1 %1568 }
 0x1df   : > { %v1475_v63 = vpop.permute.xlu0 %1474  ;;  %v1766_v61 = vsel %vm944_vm3, %v1734_v47, %v1569_v50 }
 0x1e0   : > { %v1735_v18 = vsel %vm911_vm2, %v6411_v1, %v1475_v63 }
 0x1e1   : > { %v5350_v4 = vpop.f32.mrb[0].mxu0 }
 0x1e2   : > { %6460 = vst [vmem:[#allocation16_spill] sm:$0xff] %v5350_v4  ;;  %v5355_v8 = vpop.f32.mrb[1].mxu0  ;;  %v1571_v54 = vpop.permute.xlu1 %1570 }
 0x1e3   : > { %6462 = vst [vmem:[#allocation11_spill] sm:$0xff] %v5355_v8  ;;  %v870_v33 = vpop.permute.xlu0 %869  ;;  %v1767_v15 = vsel %vm944_vm3, %v1735_v18, %v1571_v54  ;;  %v6469_v18 = vld [vmem:[#allocation77_spill] sm:$0xff] }
 0x1e4   : > { %v5360_v60 = vsel %vm977_vm4, %v972_v52, %v870_v33  ;;  %v3905_v33 = vld [vmem:[%s3995_s25 + $0x150] sm:$0xff] }
 0x1e5   : > { %v5364_v17 = vpop.f32.mrb[2].mxu0  ;;  %3677 = vmatmul.mubr.msk.f32.gmra.mrb[26].mxu0 %vm1012_vm5, %v5360_v60 }
 0x1e6   : > { %6464 = vst [vmem:[#allocation15_spill] sm:$0xff] %v5364_v17  ;;  %v5371_v8 = vpop.f32.mrb[3].mxu0  ;;  %v1667_v59 = vpop.permute.xlu1 %1666  ;;  %v6467_v17 = vld [vmem:[#allocation62_spill] sm:$0xff] }
 0x1e7   : > { %6465 = vst [vmem:[#allocation21_spill] sm:$0xff] %v5371_v8  ;;  %v5375_v52 = vsel %vm977_vm4, %v1767_v15, %v1667_v59  ;;  %v1665_v1 = vpop.permute.xlu0 %1664  ;;  %v940_v4 = vsel %vm911_vm2, %v3905_v33, %v6467_v17 }
 0x1e8   : > { %6466 = vst [vmem:[#allocation14_spill] sm:$0xff] %v5375_v52  ;;  %v5378_v63 = vsel %vm977_vm4, %v1766_v61, %v1665_v1  ;;  %v973_v2 = vsel %vm944_vm3, %v940_v4, %v6469_v18  ;;  %v3906_v61 = vld [vmem:[%s3995_s25 + $0x158] sm:$0xff]  ;;  %v6472_v18 = vld [vmem:[#allocation7_spill] sm:$0xff] }
 0x1e9   : > { %v5383_v41 = vpop.f32.mrb[4].mxu0  ;;  %3728 = vmatprep.mubr.msk.f32.mxu1 %vm1012_vm5, %v5378_v63  ;;  %v6471_v1 = vld [vmem:[#allocation61_spill] sm:$0xff] }
 0x1ea   : > { %6468 = vst [vmem:[#allocation20_spill] sm:$0xff] %v5383_v41  ;;  %v5389_v50 = vpop.f32.mrb[5].mxu0  ;;  %3729 = vmatmul.mubr.msk.f32.gmra.mrb[26].mxu1 %vm1012_vm5, %v5375_v52  ;;  %v872_v54 = vpop.permute.xlu1 %871  ;;  %v941_v33 = vsel %vm911_vm2, %v3906_v61, %v6471_v1 }
 0x1eb   : > { %6470 = vst [vmem:[#allocation26_spill] sm:$0xff] %v5389_v50  ;;  %v5394_v47 = vsel %vm977_vm4, %v973_v2, %v872_v54  ;;  %v1477_v15 = vpop.permute.xlu0 %1476  ;;  %v974_v50 = vsel %vm944_vm3, %v941_v33, %v6472_v18 }
 0x1ec   : > { %3679 = vmatprep.mubr.msk.f32.mxu0 %vm1012_vm5, %v5394_v47  ;;  %v1736_v52 = vsel %vm911_vm2, %v6415_v49, %v1477_v15  ;;  %v6475_v49 = vld [vmem:[#allocation64_spill] sm:$0xff] }
 0x1ee   : > { %v1573_v17 = vpop.permute.xlu1 %1572 }
 0x1ef   : > { %v1479_v59 = vpop.permute.xlu0 %1478  ;;  %v1768_v18 = vsel %vm944_vm3, %v1736_v52, %v1573_v17 }
 0x1f0   : > { %v1737_v2 = vsel %vm911_vm2, %v6421_v36, %v1479_v59  ;;  %v3907_v59 = vld [vmem:[%s3995_s25 + $0x168] sm:$0xff] }
 0x1f1   : > { %v942_v15 = vsel %vm911_vm2, %v3907_v59, %v6475_v49 }
 0x1f2   : > { %v1575_v4 = vpop.permute.xlu1 %1574 }
 0x1f3   : > { %v874_v41 = vpop.permute.xlu0 %873  ;;  %v1769_v61 = vsel %vm944_vm3, %v1737_v2, %v1575_v4  ;;  %v6476_v4 = vld [vmem:[#allocation79_spill] sm:$0xff] }
 0x1f4   : > { %v5404_v8 = vsel %vm977_vm4, %v974_v50, %v874_v41  ;;  %v975_v52 = vsel %vm944_vm3, %v942_v15, %v6476_v4  ;;  %v6478_v4 = vld [vmem:[#allocation78_spill] sm:$0xff] }
 0x1f5   : > { %3680 = vmatmul.mubr.msk.f32.gmra.mrb[28].mxu0 %vm1012_vm5, %v5404_v8  ;;  %v3691_v54 = vpop.f32.mrb[0].mxu1 }
 0x1f6   : > { %2691 = vrot.lane.b32.xlu1 %v3691_v54, %s3935_s26  ;;  %v1969_v1 = vpop.f32.mrb[1].mxu1  ;;  %v1671_v33 = vpop.permute.xlu1 %1670 }
 0x1f7   : > { %v5416_v41 = vsel %vm977_vm4, %v1769_v61, %v1671_v33  ;;  %2689 = vrot.lane.b32.xlu0 %v1969_v1, %s3935_s26  ;;  %v1669_v36 = vpop.permute.xlu0 %1668 }
 0x1f8   : > { %6473 = vst [vmem:[#allocation42_spill] sm:$0xff] %v5416_v41  ;;  %v5420_v50 = vsel %vm977_vm4, %v1768_v18, %v1669_v36  ;;  %v3908_v18 = vld [vmem:[%s3995_s25 + $0x170] sm:$0xff]  ;;  %v6477_v36 = vld [vmem:[#allocation63_spill] sm:$0xff]  ;;  %s3496_s25 = sshll.u32 %s6517_s18, 8 }
 0x1f9   : > { %6474 = vst [vmem:[#allocation17_spill] sm:$0xff] %v5420_v50  ;;  %3731 = vmatprep.mubr.msk.f32.mxu1 %vm1012_vm5, %v5420_v50  ;;  %v943_v59 = vsel %vm911_vm2, %v3908_v18, %v6477_v36  ;;  %s6006_s12 = scalar_lea.vmem %s6234_s5, %s3496_s25 }
 0x1fa   : > { %3732 = vmatmul.mubr.msk.f32.gmra.mrb[28].mxu1 %vm1012_vm5, %v5416_v41  ;;  %v876_v17 = vpop.permute.xlu1 %875  ;;  %v976_v41 = vsel %vm944_vm3, %v943_v59, %v6478_v4 }
 0x1fb   : > { %v5432_v2 = vsel %vm977_vm4, %v975_v52, %v876_v17  ;;  %v1481_v54 = vpop.permute.xlu0 %1480 }
 0x1fc   : > { %3682 = vmatprep.mubr.msk.f32.mxu0 %vm1012_vm5, %v5432_v2 }
 0x1fe   : > { %v1577_v61 = vpop.permute.xlu1 %1576 }
 0x1ff   : > { %v1483_v1 = vpop.permute.xlu0 %1482 }
 0x200   : > { %v1739_v50 = vsel %vm911_vm2, %v6433_v38, %v1483_v1 }
 0x201   : > { %v3694_v33 = vpop.f32.mrb[2].mxu1 }
 0x202   : > { %2695 = vrot.lane.b32.xlu1 %v3694_v33, %s3935_s26  ;;  %v1979_v49 = vpop.f32.mrb[3].mxu1  ;;  %v1579_v15 = vpop.permute.xlu1 %1578  ;;  %v1738_v33 = vsel %vm911_vm2, %v6426_v57, %v1481_v54 }
 0x203   : > { %2693 = vrot.lane.b32.xlu0 %v1979_v49, %s3935_s26  ;;  %v878_v52 = vpop.permute.xlu0 %877  ;;  %v1771_v18 = vsel %vm944_vm3, %v1739_v50, %v1579_v15  ;;  %v1770_v59 = vsel %vm944_vm3, %v1738_v33, %v1577_v61 }
 0x204   : > { %v5444_v17 = vsel %vm977_vm4, %v976_v41, %v878_v52 }
 0x205   : > { %3683 = vmatmul.mubr.msk.f32.gmra.mrb[30].mxu0 %vm1012_vm5, %v5444_v17 }
 0x206   : > { %3741 = vmatprep.mubr.msk.f32.mxu0 %vm1012_vm5, %v4726_v55  ;;  %v1675_v36 = vpop.permute.xlu1 %1674 }
 0x207   : > { %v5457_v41 = vsel %vm977_vm4, %v1771_v18, %v1675_v36  ;;  %v1673_v49 = vpop.permute.xlu0 %1672 }
 0x208   : > { %v5460_v38 = vsel %vm977_vm4, %v1770_v59, %v1673_v49 }
 0x209   : > { %3734 = vmatprep.mubr.msk.f32.mxu1 %vm1012_vm5, %v5460_v38  ;;  %3742 = vmatmul.mubr.msk.f32.vlgmr.msra.gmra.mrb[32].mxu0 %vm1012_vm5, %v4723_v26 }
 0x20a   : > { %3735 = vmatmul.mubr.msk.f32.gmra.mrb[30].mxu1 %vm1012_vm5, %v5457_v41  ;;  %3744 = vmatprep.mubr.msk.f32.mxu0 %vm1012_vm5, %v4752_v40 }
 0x20b   : > { %3793 = vmatprep.mubr.msk.f32.mxu1 %vm1012_vm5, %v4800_v14  ;;  %v6479_v14 = vld [vmem:[#allocation13_spill] sm:$0xff] }
 0x20d   : > { %v3697_v55 = vpop.f32.mrb[4].mxu1  ;;  %3745 = vmatmul.mubr.msk.f32.gmra.mrb[34].mxu0 %vm1012_vm5, %v4749_v56 }
 0x20e   : > { %2699 = vrot.lane.b32.xlu1 %v3697_v55, %s3935_s26  ;;  %v1989_v57 = vpop.f32.mrb[5].mxu1  ;;  %3747 = vmatprep.mubr.msk.f32.mxu0 %vm1012_vm5, %v4845_v20  ;;  %v6482_v20 = vld [vmem:[#allocation6_spill] sm:$0xff] }
 0x20f   : > { %3794 = vmatmul.mubr.msk.f32.vlgmr.msra.gmra.mrb[32].mxu1 %vm1012_vm5, %v4797_v13  ;;  %2697 = vrot.lane.b32.xlu0 %v1989_v57, %s3935_s26  ;;  %v6491_v57 = vld [vmem:[#allocation11_spill] sm:$0xff] }
 0x210   : > { %3796 = vmatprep.mubr.msk.f32.mxu1 %vm1012_vm5, %v4830_v48  ;;  %v6481_v48 = vld [vmem:[#allocation9_spill] sm:$0xff] }
 0x211   : > { %3748 = vmatmul.mubr.msk.f32.gmra.mrb[36].mxu0 %vm1012_vm5, %v4867_v62  ;;  %v2137_v62 = vpop.permute.xlu0 %2136 }
 0x212   : > { %3750 = vmatprep.mubr.msk.f32.mxu0 %vm1012_vm5, %v4898_v19  ;;  %v2139_v19 = vpop.permute.xlu1 %2138 }
 0x213   : > { %3797 = vmatmul.mubr.msk.f32.gmra.mrb[34].mxu1 %vm1012_vm5, %v4827_v11  ;;  %v6480_v11 = vld [vmem:[#allocation10_spill] sm:$0xff] }
 0x214   : > { %3799 = vmatprep.mubr.msk.f32.mxu1 %vm1012_vm5, %v4883_v43 }
 0x215   : > { %3751 = vmatmul.mubr.msk.f32.gmra.mrb[38].mxu0 %vm1012_vm5, %v4926_v35  ;;  %v2143_v35 = vpop.permute.xlu0 %2142 }
 0x216   : > { %3753 = vmatprep.mubr.msk.f32.mxu0 %vm1012_vm5, %v4957_v5  ;;  %v2400_v5 = vpop.permute.xlu1 %2399 }
 0x217   : > { %3800 = vmatmul.mubr.msk.f32.gmra.mrb[36].mxu1 %vm1012_vm5, %v4880_v3 }
 0x218   : > { %3802 = vmatprep.mubr.msk.f32.mxu1 %vm1012_vm5, %v4942_v29  ;;  %v5498_v26 = vpop.f32.mrb[6].mxu0 }
 0x219   : > { %v5500_v56 = vpop.f32.mrb[7].mxu0  ;;  %3754 = vmatmul.mubr.msk.f32.gmra.mrb[40].mxu0 %vm1012_vm5, %v4979_v27  ;;  %v2145_v27 = vpop.permute.xlu0 %2144 }
 0x21a   : > { %3756 = vmatprep.mubr.msk.f32.mxu0 %vm1012_vm5, %v5010_v7  ;;  %v6483_v7 = vld [vmem:[#allocation12_spill] sm:$0xff] }
 0x21b   : > { %3803 = vmatmul.mubr.msk.f32.gmra.mrb[38].mxu1 %vm1012_vm5, %v4939_v21 }
 0x21c   : > { %3805 = vmatprep.mubr.msk.f32.mxu1 %vm1012_vm5, %v4995_v34 }
 0x21d   : > { %v3700_v40 = vpop.f32.mrb[6].mxu1  ;;  %3757 = vmatmul.mubr.msk.f32.gmra.mrb[42].mxu0 %vm1012_vm5, %v5032_v24  ;;  %v2402_v34 = vpop.permute.xlu0 %2401 }
 0x21e   : > { %2703 = vrot.lane.b32.xlu1 %v3700_v40, %s3935_s26  ;;  %v1999_v13 = vpop.f32.mrb[7].mxu1  ;;  %3759 = vmatprep.mubr.msk.f32.mxu0 %vm1012_vm5, %v6479_v14 }
 0x21f   : > { %3806 = vmatmul.mubr.msk.f32.gmra.mrb[40].mxu1 %vm1012_vm5, %v6480_v11  ;;  %2701 = vrot.lane.b32.xlu0 %v1999_v13, %s3935_s26 }
 0x220   : > { %3808 = vmatprep.mubr.msk.f32.mxu1 %vm1012_vm5, %v6481_v48  ;;  %v6492_v48 = vld [vmem:[#allocation15_spill] sm:$0xff] }
 0x221   : > { %3760 = vmatmul.mubr.msk.f32.gmra.mrb[44].mxu0 %vm1012_vm5, %v5087_v25  ;;  %v2149_v25 = vpop.permute.xlu1 %2148 }
 0x222   : > { %3762 = vmatprep.mubr.msk.f32.mxu0 %vm1012_vm5, %v5128_v31 }
 0x223   : > { %3809 = vmatmul.mubr.msk.f32.gmra.mrb[42].mxu1 %vm1012_vm5, %v6482_v20 }
 0x224   : > { %3811 = vmatprep.mubr.msk.f32.mxu1 %vm1012_vm5, %v5113_v30  ;;  %v3909_v30 = vld [vmem:[%s4421_s10] sm:$0xff] }
 0x225   : > { %3763 = vmatmul.mubr.msk.f32.gmra.mrb[46].mxu0 %vm1012_vm5, %v5153_v42  ;;  %v2154_v31 = vsel %vm911_vm2, %v3909_v30, %v2137_v62  ;;  %v2406_v42 = vpop.permute.xlu1 %2405 }
 0x226   : > { %3765 = vmatprep.mubr.msk.f32.mxu0 %vm1012_vm5, %v5188_v12  ;;  %v3910_v12 = vld [vmem:[%s4421_s10 + $0x8] sm:$0xff] }
 0x227   : > { %3812 = vmatmul.mubr.msk.f32.gmra.mrb[44].mxu1 %vm1012_vm5, %v5104_v46 }
 0x228   : > { %3814 = vmatprep.mubr.msk.f32.mxu1 %vm1012_vm5, %v5172_v37  ;;  %v5536_v3 = vpop.f32.mrb[8].mxu0 }
 0x229   : > { %v5538_v43 = vpop.f32.mrb[9].mxu0  ;;  %3766 = vmatmul.mubr.msk.f32.gmra.mrb[48].mxu0 %vm1012_vm5, %v5203_v44  ;;  %v6484_v44 = vld [vmem:[#allocation2_spill] sm:$0xff] }
 0x22a   : > { %3768 = vmatprep.mubr.msk.f32.mxu0 %vm1012_vm5, %v5236_v28 }
 0x22b   : > { %3815 = vmatmul.mubr.msk.f32.gmra.mrb[46].mxu1 %vm1012_vm5, %v5169_v0  ;;  %v2151_v0 = vpop.permute.xlu0 %2150 }
 0x22c   : > { %3817 = vmatprep.mubr.msk.f32.mxu1 %vm1012_vm5, %v5220_v22  ;;  %v2156_v22 = vsel %vm944_vm3, %v2154_v31, %v2143_v35  ;;  %v6495_v31 = vld [vmem:[#allocation26_spill] sm:$0xff] }
 0x22d   : > { %v3703_v21 = vpop.f32.mrb[8].mxu1  ;;  %3769 = vmatmul.mubr.msk.f32.gmra.mrb[50].mxu0 %vm1012_vm5, %v5248_v9  ;;  %v6485_v9 = vld [vmem:[#allocation3_spill] sm:$0xff] }
 0x22e   : > { %2707 = vrot.lane.b32.xlu1 %v3703_v21, %s3935_s26  ;;  %v2009_v29 = vpop.f32.mrb[9].mxu1  ;;  %3771 = vmatprep.mubr.msk.f32.mxu0 %vm1012_vm5, %v5274_v16  ;;  %v6487_v16 = vld [vmem:[#allocation17_spill] sm:$0xff] }
 0x22f   : > { %3818 = vmatmul.mubr.msk.f32.gmra.mrb[48].mxu1 %vm1012_vm5, %v5217_v23  ;;  %2705 = vrot.lane.b32.xlu0 %v2009_v29, %s3935_s26  ;;  %v2155_v23 = vsel %vm911_vm2, %v3910_v12, %v2139_v19  ;;  %v6493_v19 = vld [vmem:[#allocation21_spill] sm:$0xff] }
 0x230   : > { %3820 = vmatprep.mubr.msk.f32.mxu1 %vm1012_vm5, %v5262_v39  ;;  %v6486_v39 = vld [vmem:[#allocation14_spill] sm:$0xff] }
 0x231   : > { %3772 = vmatmul.mubr.msk.f32.gmra.mrb[52].mxu0 %vm1012_vm5, %v5284_v58  ;;  %v2157_v58 = vsel %vm944_vm3, %v2155_v23, %v2145_v27 }
 0x232   : > { %3774 = vmatprep.mubr.msk.f32.mxu0 %vm1012_vm5, %v5310_v32 }
 0x233   : > { %3821 = vmatmul.mubr.msk.f32.gmra.mrb[50].mxu1 %vm1012_vm5, %v5259_v6  ;;  %v2417_v6 = vsel %vm911_vm2, %v6485_v9, %v2400_v5 }
 0x234   : > { %3823 = vmatprep.mubr.msk.f32.mxu1 %vm1012_vm5, %v5298_v10  ;;  %v2408_v10 = vpop.permute.xlu1 %2407  ;;  %v2419_v32 = vsel %vm944_vm3, %v2417_v6, %v2406_v42 }
 0x235   : > { %3775 = vmatmul.mubr.msk.f32.gmra.mrb[54].mxu0 %vm1012_vm5, %v5320_v53  ;;  %v2412_v53 = vpop.permute.xlu0 %2411 }
 0x236   : > { %3777 = vmatprep.mubr.msk.f32.mxu0 %vm1012_vm5, %v5346_v45  ;;  %v6488_v45 = vld [vmem:[#allocation42_spill] sm:$0xff] }
 0x237   : > { %3824 = vmatmul.mubr.msk.f32.gmra.mrb[52].mxu1 %vm1012_vm5, %v5295_v51  ;;  %v2158_v51 = vsel %vm977_vm4, %v2156_v22, %v2149_v25 }
 0x238   : > { %3826 = vmatprep.mubr.msk.f32.mxu1 %vm1012_vm5, %v6483_v7  ;;  %v5574_v24 = vpop.f32.mrb[10].mxu0 }
 0x239   : > { %v5576_v46 = vpop.f32.mrb[11].mxu0  ;;  %3778 = vmatmul.mubr.msk.f32.gmra.mrb[56].mxu0 %vm1012_vm5, %v5360_v60 }
 0x23a   : > { %3780 = vmatprep.mubr.msk.f32.mxu0 %vm1012_vm5, %v5394_v47  ;;  %v2421_v47 = vsel %vm977_vm4, %v2419_v32, %v2412_v53 }
 0x23b   : > { %3827 = vmatmul.mubr.msk.f32.gmra.mrb[54].mxu1 %vm1012_vm5, %v6484_v44 }
 0x23c   : > { %3829 = vmatprep.mubr.msk.f32.mxu1 %vm1012_vm5, %v5378_v63  ;;  %v2159_v63 = vsel %vm977_vm4, %v2157_v58, %v2151_v0 }
 0x23d   : > { %v3706_v37 = vpop.f32.mrb[10].mxu1  ;;  %3781 = vmatmul.mubr.msk.f32.gmra.mrb[58].mxu0 %vm1012_vm5, %v5404_v8  ;;  %v6489_v8 = vld [vmem:[#allocation8_spill] sm:$0xff] }
 0x23e   : > { %2711 = vrot.lane.b32.xlu1 %v3706_v37, %s3935_s26  ;;  %v2019_v28 = vpop.f32.mrb[11].mxu1  ;;  %3783 = vmatprep.mubr.msk.f32.mxu0 %vm1012_vm5, %v5432_v2  ;;  %v2418_v60 = vsel %vm911_vm2, %v6489_v8, %v2402_v34  ;;  %v2414_v2 = vpop.permute.xlu1 %2413  ;;  %v6494_v34 = vld [vmem:[#allocation20_spill] sm:$0xff] }
 0x23f   : > { %3830 = vmatmul.mubr.msk.f32.gmra.mrb[56].mxu1 %vm1012_vm5, %v6486_v39  ;;  %2709 = vrot.lane.b32.xlu0 %v2019_v28, %s3935_s26  ;;  %v2420_v50 = vsel %vm944_vm3, %v2418_v60, %v2408_v10 }
 0x240   : > { %3832 = vmatprep.mubr.msk.f32.mxu1 %vm1012_vm5, %v6487_v16  ;;  %v2422_v1 = vsel %vm977_vm4, %v2420_v50, %v2414_v2 }
 0x241   : > { %3784 = vmatmul.mubr.msk.f32.gmra.mrb[60].mxu0 %vm1012_vm5, %v5444_v17 }
 0x242   : > { %3786 = vmatprep.mubr.msk.f32.mxu0 %vm1012_vm5, %v2158_v51 }
 0x243   : > { %3833 = vmatmul.mubr.msk.f32.gmra.mrb[58].mxu1 %vm1012_vm5, %v6488_v45 }
 0x244   : > { %3835 = vmatprep.mubr.msk.f32.mxu1 %vm1012_vm5, %v5460_v38 }
 0x245   : > { %3787 = vmatmul.mubr.msk.f32.gmra.mrb[62].mxu0 %vm1012_vm5, %v2159_v63 }
 0x247   : > { %3836 = vmatmul.mubr.msk.f32.gmra.mrb[60].mxu1 %vm1012_vm5, %v5457_v41  ;;  %v6490_v41 = vld [vmem:[#allocation16_spill] sm:$0xff] }
 0x248   : > { %3838 = vmatprep.mubr.msk.f32.mxu1 %vm1012_vm5, %v2421_v47  ;;  %v5622_v54 = vpop.f32.mrb[12].mxu0 }
 0x249   : > { %v5624_v61 = vpop.f32.mrb[13].mxu0 }
 0x24b   : > { %3839 = vmatmul.mubr.msk.f32.gmra.mrb[62].mxu1 %vm1012_vm5, %v2422_v1 }
 0x24d   : > { %v3709_v15 = vpop.f32.mrb[12].mxu1 }
 0x24e   : > { %2715 = vrot.lane.b32.xlu1 %v3709_v15, %s3935_s26  ;;  %v2029_v4 = vpop.f32.mrb[13].mxu1 }
 0x24f   : > { %2713 = vrot.lane.b32.xlu0 %v2029_v4, %s3935_s26 }
 0x258   : > { %v5630_v52 = vpop.f32.mrb[14].mxu0 }
 0x259   : > { %v5632_v17 = vpop.f32.mrb[15].mxu0 }
 0x25d   : > { %v3712_v33 = vpop.f32.mrb[14].mxu1 }
 0x25e   : > { %2719 = vrot.lane.b32.xlu1 %v3712_v33, %s3935_s26  ;;  %v2039_v18 = vpop.f32.mrb[15].mxu1 }
 0x25f   : > { %2717 = vrot.lane.b32.xlu0 %v2039_v18, %s3935_s26 }
 0x268   : > { %v2692_v36 = vpop.permute.xlu1 %2691  ;;  %v5636_v59 = vpop.f32.mrb[16].mxu0 }
 0x269   : > { %v5640_v49 = vsel %vm911_vm2, %v6490_v41, %v2692_v36  ;;  %v5642_v38 = vpop.f32.mrb[17].mxu0  ;;  %v2690_v55 = vpop.permute.xlu0 %2689 }
 0x26a   : > { %v5646_v40 = vsel %vm911_vm2, %v6491_v57, %v2690_v55 }
 0x26d   : > { %v3715_v13 = vpop.f32.mrb[16].mxu1 }
 0x26e   : > { %2723 = vrot.lane.b32.xlu1 %v3715_v13, %s3935_s26  ;;  %v2049_v14 = vpop.f32.mrb[17].mxu1 }
 0x26f   : > { %2721 = vrot.lane.b32.xlu0 %v2049_v14, %s3935_s26 }
 0x274   : > { %v2696_v11 = vpop.permute.xlu1 %2695 }
 0x275   : > { %v5652_v20 = vsel %vm911_vm2, %v6492_v48, %v2696_v11  ;;  %v2694_v62 = vpop.permute.xlu0 %2693 }
 0x276   : > { %v5656_v35 = vsel %vm911_vm2, %v6493_v19, %v2694_v62 }
 0x278   : > { %v5658_v21 = vpop.f32.mrb[18].mxu0 }
 0x279   : > { %v5660_v29 = vpop.f32.mrb[19].mxu0 }
 0x27d   : > { %v3718_v5 = vpop.f32.mrb[18].mxu1 }
 0x27e   : > { %2727 = vrot.lane.b32.xlu1 %v3718_v5, %s3935_s26  ;;  %v2059_v27 = vpop.f32.mrb[19].mxu1 }
 0x27f   : > { %2725 = vrot.lane.b32.xlu0 %v2059_v27, %s3935_s26 }
 0x280   : > { %v2700_v25 = vpop.permute.xlu1 %2699 }
 0x281   : > { %v5666_v7 = vsel %vm911_vm2, %v6494_v34, %v2700_v25  ;;  %v2698_v30 = vpop.permute.xlu0 %2697 }
 0x282   : > { %v5670_v44 = vsel %vm911_vm2, %v6495_v31, %v2698_v30 }
 0x288   : > { %v5672_v42 = vpop.f32.mrb[20].mxu0 }
 0x289   : > { %v5674_v0 = vpop.f32.mrb[21].mxu0 }
 0x28d   : > { %v3721_v37 = vpop.f32.mrb[20].mxu1 }
 0x28e   : > { %2731 = vrot.lane.b32.xlu1 %v3721_v37, %s3935_s26  ;;  %v2069_v12 = vpop.f32.mrb[21].mxu1 }
 0x28f   : > { %2729 = vrot.lane.b32.xlu0 %v2069_v12, %s3935_s26 }
 0x290   : > { %v2704_v23 = vpop.permute.xlu1 %2703 }
 0x291   : > { %v5680_v22 = vsel %vm911_vm2, %v5498_v26, %v2704_v23  ;;  %v2702_v28 = vpop.permute.xlu0 %2701 }
 0x292   : > { %v5684_v9 = vsel %vm911_vm2, %v5500_v56, %v2702_v28 }
 0x298   : > { %v5686_v6 = vpop.f32.mrb[22].mxu0 }
 0x299   : > { %v5688_v39 = vpop.f32.mrb[23].mxu0 }
 0x29d   : > { %v3724_v16 = vpop.f32.mrb[22].mxu1 }
 0x29e   : > { %2735 = vrot.lane.b32.xlu1 %v3724_v16, %s3935_s26  ;;  %v2079_v58 = vpop.f32.mrb[23].mxu1 }
 0x29f   : > { %2733 = vrot.lane.b32.xlu0 %v2079_v58, %s3935_s26 }
 0x2a0   : > { %v2708_v51 = vpop.permute.xlu1 %2707 }
 0x2a1   : > { %v5694_v26 = vsel %vm911_vm2, %v5536_v3, %v2708_v51  ;;  %v2706_v10 = vpop.permute.xlu0 %2705 }
 0x2a2   : > { %v5698_v56 = vsel %vm911_vm2, %v5538_v43, %v2706_v10 }
 0x2a8   : > { %v5700_v32 = vpop.f32.mrb[24].mxu0 }
 0x2a9   : > { %v5702_v53 = vpop.f32.mrb[25].mxu0 }
 0x2ad   : > { %v3727_v45 = vpop.f32.mrb[24].mxu1 }
 0x2ae   : > { %2739 = vrot.lane.b32.xlu1 %v3727_v45, %s3935_s26  ;;  %v2089_v8 = vpop.f32.mrb[25].mxu1 }
 0x2af   : > { %2737 = vrot.lane.b32.xlu0 %v2089_v8, %s3935_s26 }
 0x2b0   : > { %v2712_v60 = vpop.permute.xlu1 %2711 }
 0x2b1   : > { %v5708_v3 = vsel %vm911_vm2, %v5574_v24, %v2712_v60  ;;  %v2710_v63 = vpop.permute.xlu0 %2709 }
 0x2b2   : > { %v5712_v43 = vsel %vm911_vm2, %v5576_v46, %v2710_v63 }
 0x2b8   : > { %v5714_v47 = vpop.f32.mrb[26].mxu0 }
 0x2b9   : > { %v5716_v50 = vpop.f32.mrb[27].mxu0 }
 0x2bd   : > { %v3730_v2 = vpop.f32.mrb[26].mxu1 }
 0x2be   : > { %2743 = vrot.lane.b32.xlu1 %v3730_v2, %s3935_s26  ;;  %v2099_v1 = vpop.f32.mrb[27].mxu1 }
 0x2bf   : > { %2741 = vrot.lane.b32.xlu0 %v2099_v1, %s3935_s26 }
 0x2c0   : > { %v2716_v15 = vpop.permute.xlu1 %2715 }
 0x2c1   : > { %v5722_v24 = vsel %vm911_vm2, %v5622_v54, %v2716_v15  ;;  %v2714_v4 = vpop.permute.xlu0 %2713 }
 0x2c2   : > { %v5726_v46 = vsel %vm911_vm2, %v5624_v61, %v2714_v4 }
 0x2c8   : > { %v5728_v33 = vpop.f32.mrb[28].mxu0 }
 0x2c9   : > { %v5730_v18 = vpop.f32.mrb[29].mxu0 }
 0x2cd   : > { %v3733_v36 = vpop.f32.mrb[28].mxu1 }
 0x2ce   : > { %2747 = vrot.lane.b32.xlu1 %v3733_v36, %s3935_s26  ;;  %v2109_v41 = vpop.f32.mrb[29].mxu1 }
 0x2cf   : > { %2745 = vrot.lane.b32.xlu0 %v2109_v41, %s3935_s26 }
 0x2d0   : > { %v2720_v55 = vpop.permute.xlu1 %2719 }
 0x2d1   : > { %v5736_v54 = vsel %vm911_vm2, %v5630_v52, %v2720_v55  ;;  %v2718_v57 = vpop.permute.xlu0 %2717 }
 0x2d2   : > { %v5740_v61 = vsel %vm911_vm2, %v5632_v17, %v2718_v57 }
 0x2d8   : > { %v5742_v13 = vpop.f32.mrb[30].mxu0 }
 0x2d9   : > { %v5744_v14 = vpop.f32.mrb[31].mxu0 }
 0x2dc   : > { %v3743_v11 = vpop.f32.mrb[32].mxu0 }
 0x2dd   : > { %v3736_v48 = vpop.f32.mrb[30].mxu1  ;;  %v2235_v62 = vpop.f32.mrb[33].mxu0 }
 0x2de   : > { %2751 = vrot.lane.b32.xlu1 %v3736_v48, %s3935_s26  ;;  %v2119_v19 = vpop.f32.mrb[31].mxu1 }
 0x2df   : > { %2749 = vrot.lane.b32.xlu0 %v2119_v19, %s3935_s26 }
 0x2e0   : > { %v2724_v5 = vpop.permute.xlu1 %2723  ;;  %v3746_v52 = vpop.f32.mrb[34].mxu0 }
 0x2e1   : > { %v5750_v27 = vsel %vm911_vm2, %v5636_v59, %v2724_v5  ;;  %v2245_v17 = vpop.f32.mrb[35].mxu0  ;;  %v2722_v25 = vpop.permute.xlu0 %2721 }
 0x2e2   : > { %6496 = vst [vmem:[#allocation18_spill] sm:$0xff] %v5750_v27  ;;  %v5752_v34 = vpop.f32.mrb[32].mxu1  ;;  %v5756_v30 = vsel %vm911_vm2, %v5642_v38, %v2722_v25  ;;  %2819 = vrot.lane.b32.xlu1 %v3743_v11, %s3936_s27 }
 0x2e3   : > { %6497 = vst [vmem:[#allocation19_spill] sm:$0xff] %v5756_v30  ;;  %v5759_v31 = vpop.f32.mrb[33].mxu1  ;;  %2817 = vrot.lane.b32.xlu0 %v2235_v62, %s3936_s27 }
 0x2e4   : > { %v3749_v37 = vpop.f32.mrb[36].mxu0 }
 0x2e5   : > { %v2255_v12 = vpop.f32.mrb[37].mxu0 }
 0x2e6   : > { %v5762_v23 = vpop.f32.mrb[34].mxu1  ;;  %2823 = vrot.lane.b32.xlu1 %v3746_v52, %s3936_s27 }
 0x2e7   : > { %v5765_v59 = vpop.f32.mrb[35].mxu1  ;;  %2821 = vrot.lane.b32.xlu0 %v2245_v17, %s3936_s27 }
 0x2e8   : > { %v3752_v28 = vpop.f32.mrb[38].mxu0 }
 0x2e9   : > { %v2265_v16 = vpop.f32.mrb[39].mxu0 }
 0x2ea   : > { %v5768_v38 = vpop.f32.mrb[36].mxu1  ;;  %2827 = vrot.lane.b32.xlu1 %v3749_v37, %s3936_s27 }
 0x2eb   : > { %v5771_v58 = vpop.f32.mrb[37].mxu1  ;;  %2825 = vrot.lane.b32.xlu0 %v2255_v12, %s3936_s27 }
 0x2ec   : > { %v3755_v51 = vpop.f32.mrb[40].mxu0 }
 0x2ed   : > { %v2275_v10 = vpop.f32.mrb[41].mxu0 }
 0x2ee   : > { %v5774_v45 = vpop.f32.mrb[38].mxu1  ;;  %2831 = vrot.lane.b32.xlu1 %v3752_v28, %s3936_s27 }
 0x2ef   : > { %v5777_v8 = vpop.f32.mrb[39].mxu1  ;;  %2829 = vrot.lane.b32.xlu0 %v2265_v16, %s3936_s27 }
 0x2f0   : > { %v2728_v60 = vpop.permute.xlu1 %2727  ;;  %v3758_v63 = vpop.f32.mrb[42].mxu0 }
 0x2f1   : > { %v5782_v2 = vsel %vm911_vm2, %v5658_v21, %v2728_v60  ;;  %v2285_v1 = vpop.f32.mrb[43].mxu0  ;;  %v2726_v15 = vpop.permute.xlu0 %2725 }
 0x2f2   : > { %6498 = vst [vmem:[#allocation25_spill] sm:$0xff] %v5782_v2  ;;  %v5784_v4 = vpop.f32.mrb[40].mxu1  ;;  %v5788_v36 = vsel %vm911_vm2, %v5660_v29, %v2726_v15  ;;  %2835 = vrot.lane.b32.xlu1 %v3755_v51, %s3936_s27 }
 0x2f3   : > { %6499 = vst [vmem:[#allocation41_spill] sm:$0xff] %v5788_v36  ;;  %v5791_v41 = vpop.f32.mrb[41].mxu1  ;;  %2833 = vrot.lane.b32.xlu0 %v2275_v10, %s3936_s27 }
 0x2f4   : > { %v3761_v55 = vpop.f32.mrb[44].mxu0 }
 0x2f5   : > { %v2295_v57 = vpop.f32.mrb[45].mxu0 }
 0x2f6   : > { %v5794_v11 = vpop.f32.mrb[42].mxu1  ;;  %2839 = vrot.lane.b32.xlu1 %v3758_v63, %s3936_s27 }
 0x2f7   : > { %v5797_v21 = vpop.f32.mrb[43].mxu1  ;;  %2837 = vrot.lane.b32.xlu0 %v2285_v1, %s3936_s27 }
 0x2f8   : > { %v3764_v48 = vpop.f32.mrb[46].mxu0 }
 0x2f9   : > { %v2305_v62 = vpop.f32.mrb[47].mxu0 }
 0x2fa   : > { %v5800_v29 = vpop.f32.mrb[44].mxu1  ;;  %2843 = vrot.lane.b32.xlu1 %v3761_v55, %s3936_s27 }
 0x2fb   : > { %v5803_v19 = vpop.f32.mrb[45].mxu1  ;;  %2841 = vrot.lane.b32.xlu0 %v2295_v57, %s3936_s27 }
 0x2fc   : > { %v3767_v5 = vpop.f32.mrb[48].mxu0 }
 0x2fd   : > { %v2315_v52 = vpop.f32.mrb[49].mxu0 }
 0x2fe   : > { %v5806_v17 = vpop.f32.mrb[46].mxu1  ;;  %2847 = vrot.lane.b32.xlu1 %v3764_v48, %s3936_s27 }
 0x2ff   : > { %v5809_v25 = vpop.f32.mrb[47].mxu1  ;;  %2845 = vrot.lane.b32.xlu0 %v2305_v62, %s3936_s27 }
 0x300   : > { %v2732_v37 = vpop.permute.xlu1 %2731  ;;  %v3770_v12 = vpop.f32.mrb[50].mxu0 }
 0x301   : > { %v5814_v28 = vsel %vm911_vm2, %v5672_v42, %v2732_v37  ;;  %v2325_v16 = vpop.f32.mrb[51].mxu0  ;;  %v2730_v51 = vpop.permute.xlu0 %2729 }
 0x302   : > { %6500 = vst [vmem:[#allocation4_spill] sm:$0xff] %v5814_v28  ;;  %v5816_v10 = vpop.f32.mrb[48].mxu1  ;;  %v5820_v60 = vsel %vm911_vm2, %v5674_v0, %v2730_v51  ;;  %2851 = vrot.lane.b32.xlu1 %v3767_v5, %s3936_s27 }
 0x303   : > { %6501 = vst [vmem:[#allocation31_spill] sm:$0xff] %v5820_v60  ;;  %v5823_v63 = vpop.f32.mrb[49].mxu1  ;;  %2849 = vrot.lane.b32.xlu0 %v2315_v52, %s3936_s27 }
 0x304   : > { %v3773_v1 = vpop.f32.mrb[52].mxu0 }
 0x305   : > { %v2335_v15 = vpop.f32.mrb[53].mxu0 }
 0x306   : > { %v5826_v55 = vpop.f32.mrb[50].mxu1  ;;  %2855 = vrot.lane.b32.xlu1 %v3770_v12, %s3936_s27 }
 0x307   : > { %v5829_v42 = vpop.f32.mrb[51].mxu1  ;;  %2853 = vrot.lane.b32.xlu0 %v2325_v16, %s3936_s27 }
 0x308   : > { %v3776_v57 = vpop.f32.mrb[54].mxu0 }
 0x309   : > { %v2345_v48 = vpop.f32.mrb[55].mxu0 }
 0x30a   : > { %v5832_v0 = vpop.f32.mrb[52].mxu1  ;;  %2859 = vrot.lane.b32.xlu1 %v3773_v1, %s3936_s27 }
 0x30b   : > { %v5835_v62 = vpop.f32.mrb[53].mxu1  ;;  %2857 = vrot.lane.b32.xlu0 %v2335_v15, %s3936_s27 }
 0x30c   : > { %v3779_v5 = vpop.f32.mrb[56].mxu0 }
 0x30d   : > { %v2355_v52 = vpop.f32.mrb[57].mxu0 }
 0x30e   : > { %v5838_v37 = vpop.f32.mrb[54].mxu1  ;;  %2863 = vrot.lane.b32.xlu1 %v3776_v57, %s3936_s27 }
 0x30f   : > { %v2608_v12 = vpop.f32.mrb[55].mxu1  ;;  %2861 = vrot.lane.b32.xlu0 %v2345_v48, %s3936_s27 }
 0x310   : > { %v2736_v16 = vpop.permute.xlu1 %2735  ;;  %v3782_v51 = vpop.f32.mrb[58].mxu0 }
 0x311   : > { %v5844_v60 = vsel %vm911_vm2, %v5686_v6, %v2736_v16  ;;  %v2365_v1 = vpop.f32.mrb[59].mxu0  ;;  %v2734_v28 = vpop.permute.xlu0 %2733 }
 0x312   : > { %6502 = vst [vmem:[#allocation44_spill] sm:$0xff] %v5844_v60  ;;  %v3831_v36 = vpop.f32.mrb[56].mxu1  ;;  %v5848_v15 = vsel %vm911_vm2, %v5688_v39, %v2734_v28  ;;  %2867 = vrot.lane.b32.xlu1 %v3779_v5, %s3936_s27 }
 0x313   : > { %6503 = vst [vmem:[#allocation22_spill] sm:$0xff] %v5848_v15  ;;  %v2618_v2 = vpop.f32.mrb[57].mxu1  ;;  %2865 = vrot.lane.b32.xlu0 %v2355_v52, %s3936_s27 }
 0x314   : > { %v3785_v57 = vpop.f32.mrb[60].mxu0 }
 0x315   : > { %v2375_v48 = vpop.f32.mrb[61].mxu0 }
 0x316   : > { %v3834_v30 = vpop.f32.mrb[58].mxu1  ;;  %2871 = vrot.lane.b32.xlu1 %v3782_v51, %s3936_s27 }
 0x317   : > { %v2628_v27 = vpop.f32.mrb[59].mxu1  ;;  %2869 = vrot.lane.b32.xlu0 %v2365_v1, %s3936_s27 }
 0x318   : > { %v3788_v6 = vpop.f32.mrb[62].mxu0 }
 0x319   : > { %v2385_v16 = vpop.f32.mrb[63].mxu0 }
 0x31a   : > { %v3837_v60 = vpop.f32.mrb[60].mxu1  ;;  %2875 = vrot.lane.b32.xlu1 %v3785_v57, %s3936_s27 }
 0x31b   : > { %v2638_v39 = vpop.f32.mrb[61].mxu1  ;;  %2873 = vrot.lane.b32.xlu0 %v2375_v48, %s3936_s27 }
 0x31e   : > { %v3840_v28 = vpop.f32.mrb[62].mxu1  ;;  %2879 = vrot.lane.b32.xlu1 %v3788_v6, %s3936_s27 }
 0x31f   : > { %v2648_v5 = vpop.f32.mrb[63].mxu1  ;;  %2877 = vrot.lane.b32.xlu0 %v2385_v16, %s3936_s27 }
 0x320   : > { %v2740_v52 = vpop.permute.xlu1 %2739 }
 0x321   : > { %v5860_v51 = vsel %vm911_vm2, %v5700_v32, %v2740_v52  ;;  %v2738_v1 = vpop.permute.xlu0 %2737  ;;  %v5997_v52 = vld [vmem:[%s6233_s4] ss:$0 sm:$0xff] }
 0x322   : > { %v5864_v15 = vsel %vm911_vm2, %v5702_v53, %v2738_v1  ;;  %2947 = vrot.lane.b32.xlu1 %v5752_v34, %s3937_s11 }
 0x323   : > { %2945 = vrot.lane.b32.xlu0 %v5759_v31, %s3937_s11 }
 0x326   : > { %2951 = vrot.lane.b32.xlu1 %v5762_v23, %s3937_s11 }
 0x327   : > { %2949 = vrot.lane.b32.xlu0 %v5765_v59, %s3937_s11 }
 0x32a   : > { %2955 = vrot.lane.b32.xlu1 %v5768_v38, %s3937_s11 }
 0x32b   : > { %2953 = vrot.lane.b32.xlu0 %v5771_v58, %s3937_s11 }
 0x32e   : > { %2959 = vrot.lane.b32.xlu1 %v5774_v45, %s3937_s11 }
 0x32f   : > { %2957 = vrot.lane.b32.xlu0 %v5777_v8, %s3937_s11 }
 0x330   : > { %v2744_v32 = vpop.permute.xlu1 %2743 }
 0x331   : > { %v5884_v53 = vsel %vm911_vm2, %v5714_v47, %v2744_v32  ;;  %v2742_v34 = vpop.permute.xlu0 %2741 }
 0x332   : > { %v5888_v31 = vsel %vm911_vm2, %v5716_v50, %v2742_v34  ;;  %2963 = vrot.lane.b32.xlu1 %v5784_v4, %s3937_s11 }
 0x333   : > { %2961 = vrot.lane.b32.xlu0 %v5791_v41, %s3937_s11 }
 0x336   : > { %2967 = vrot.lane.b32.xlu1 %v5794_v11, %s3937_s11 }
 0x337   : > { %2965 = vrot.lane.b32.xlu0 %v5797_v21, %s3937_s11 }
 0x33a   : > { %2971 = vrot.lane.b32.xlu1 %v5800_v29, %s3937_s11 }
 0x33b   : > { %2969 = vrot.lane.b32.xlu0 %v5803_v19, %s3937_s11 }
 0x33e   : > { %2975 = vrot.lane.b32.xlu1 %v5806_v17, %s3937_s11 }
 0x33f   : > { %2973 = vrot.lane.b32.xlu0 %v5809_v25, %s3937_s11 }
 0x340   : > { %v2748_v47 = vpop.permute.xlu1 %2747 }
 0x341   : > { %v5908_v50 = vsel %vm911_vm2, %v5728_v33, %v2748_v47  ;;  %v2746_v23 = vpop.permute.xlu0 %2745 }
 0x342   : > { %v5912_v59 = vsel %vm911_vm2, %v5730_v18, %v2746_v23  ;;  %2979 = vrot.lane.b32.xlu1 %v5816_v10, %s3937_s11 }
 0x343   : > { %2977 = vrot.lane.b32.xlu0 %v5823_v63, %s3937_s11 }
 0x346   : > { %2983 = vrot.lane.b32.xlu1 %v5826_v55, %s3937_s11 }
 0x347   : > { %2981 = vrot.lane.b32.xlu0 %v5829_v42, %s3937_s11 }
 0x34a   : > { %2987 = vrot.lane.b32.xlu1 %v5832_v0, %s3937_s11 }
 0x34b   : > { %2985 = vrot.lane.b32.xlu0 %v5835_v62, %s3937_s11 }
 0x34e   : > { %2991 = vrot.lane.b32.xlu1 %v5838_v37, %s3937_s11 }
 0x34f   : > { %2989 = vrot.lane.b32.xlu0 %v2608_v12, %s3937_s11 }
 0x350   : > { %v2752_v33 = vpop.permute.xlu1 %2751 }
 0x351   : > { %v5931_v18 = vsel %vm911_vm2, %v5742_v13, %v2752_v33  ;;  %v2750_v38 = vpop.permute.xlu0 %2749 }
 0x352   : > { %v5935_v58 = vsel %vm911_vm2, %v5744_v14, %v2750_v38  ;;  %2995 = vrot.lane.b32.xlu1 %v3831_v36, %s3937_s11 }
 0x353   : > { %2993 = vrot.lane.b32.xlu0 %v2618_v2, %s3937_s11 }
 0x354   : > { %v2820_v45 = vpop.permute.xlu1 %2819 }
 0x355   : > { %v2818_v8 = vpop.permute.xlu0 %2817  ;;  %v3074_v1 = vsel %vm944_vm3, %v5640_v49, %v2820_v45 }
 0x356   : > { %2999 = vrot.lane.b32.xlu1 %v3834_v30, %s3937_s11  ;;  %v3073_v34 = vsel %vm944_vm3, %v5646_v40, %v2818_v8 }
 0x357   : > { %2997 = vrot.lane.b32.xlu0 %v2628_v27, %s3937_s11 }
 0x358   : > { %v2824_v4 = vpop.permute.xlu1 %2823 }
 0x359   : > { %v2822_v41 = vpop.permute.xlu0 %2821  ;;  %v3076_v40 = vsel %vm944_vm3, %v5652_v20, %v2824_v4 }
 0x35a   : > { %3003 = vrot.lane.b32.xlu1 %v3837_v60, %s3937_s11  ;;  %v3075_v8 = vsel %vm944_vm3, %v5656_v35, %v2822_v41 }
 0x35b   : > { %3001 = vrot.lane.b32.xlu0 %v2638_v39, %s3937_s11 }
 0x35c   : > { %v2828_v13 = vpop.permute.xlu1 %2827 }
 0x35d   : > { %v2826_v11 = vpop.permute.xlu0 %2825  ;;  %v3078_v20 = vsel %vm944_vm3, %v5666_v7, %v2828_v13 }
 0x35e   : > { %3007 = vrot.lane.b32.xlu1 %v3840_v28, %s3937_s11  ;;  %v3077_v35 = vsel %vm944_vm3, %v5670_v44, %v2826_v11 }
 0x35f   : > { %3005 = vrot.lane.b32.xlu0 %v2648_v5, %s3937_s11 }
 0x360   : > { %v2832_v14 = vpop.permute.xlu1 %2831 }
 0x361   : > { %v2830_v2 = vpop.permute.xlu0 %2829  ;;  %v3080_v7 = vsel %vm944_vm3, %v5680_v22, %v2832_v14 }
 0x362   : > { %v3079_v44 = vsel %vm944_vm3, %v5684_v9, %v2830_v2 }
 0x364   : > { %v5945_v36 = vpop.permute.xlu1 %2835 }
 0x365   : > { %v5947_v21 = vpop.permute.xlu0 %2833  ;;  %v3082_v22 = vsel %vm944_vm3, %v5694_v26, %v5945_v36 }
 0x366   : > { %v3081_v14 = vsel %vm944_vm3, %v5698_v56, %v5947_v21 }
 0x368   : > { %v5949_v30 = vpop.permute.xlu1 %2839 }
 0x369   : > { %v5951_v27 = vpop.permute.xlu0 %2837  ;;  %v3084_v36 = vsel %vm944_vm3, %v5708_v3, %v5949_v30 }
 0x36a   : > { %v3083_v21 = vsel %vm944_vm3, %v5712_v43, %v5951_v27 }
 0x36c   : > { %v5953_v29 = vpop.permute.xlu1 %2843 }
 0x36d   : > { %v5955_v19 = vpop.permute.xlu0 %2841  ;;  %v3086_v30 = vsel %vm944_vm3, %v5722_v24, %v5953_v29 }
 0x36e   : > { %v3085_v27 = vsel %vm944_vm3, %v5726_v46, %v5955_v19 }
 0x370   : > { %v5957_v17 = vpop.permute.xlu1 %2847 }
 0x371   : > { %v5959_v25 = vpop.permute.xlu0 %2845  ;;  %v3088_v29 = vsel %vm944_vm3, %v5736_v54, %v5957_v17  ;;  %v6504_v17 = vld [vmem:[#allocation18_spill] sm:$0xff] }
 0x372   : > { %v3087_v19 = vsel %vm944_vm3, %v5740_v61, %v5959_v25  ;;  %v6505_v25 = vld [vmem:[#allocation19_spill] sm:$0xff] }
 0x374   : > { %v5961_v10 = vpop.permute.xlu1 %2851 }
 0x375   : > { %v5963_v60 = vpop.permute.xlu0 %2849 }
 0x378   : > { %v5965_v63 = vpop.permute.xlu1 %2855 }
 0x379   : > { %v5967_v55 = vpop.permute.xlu0 %2853 }
 0x37c   : > { %v5969_v42 = vpop.permute.xlu1 %2859 }
 0x37d   : > { %v5971_v0 = vpop.permute.xlu0 %2857 }
 0x380   : > { %v5973_v62 = vpop.permute.xlu1 %2863 }
 0x381   : > { %v5975_v37 = vpop.permute.xlu0 %2861 }
 0x384   : > { %v5977_v12 = vpop.permute.xlu1 %2867 }
 0x385   : > { %v5979_v57 = vpop.permute.xlu0 %2865 }
 0x388   : > { %v5981_v48 = vpop.permute.xlu1 %2871 }
 0x389   : > { %v5983_v6 = vpop.permute.xlu0 %2869 }
 0x38c   : > { %v5985_v16 = vpop.permute.xlu1 %2875 }
 0x38d   : > { %v5987_v39 = vpop.permute.xlu0 %2873 }
 0x390   : > { %v5989_v28 = vpop.permute.xlu1 %2879 }
 0x391   : > { %v5991_v5 = vpop.permute.xlu0 %2877 }
 0x394   : > { %v2948_v32 = vpop.permute.xlu1 %2947 }
 0x395   : > { %v3106_v47 = vsel %vm977_vm4, %v3074_v1, %v2948_v32  ;;  %v2946_v23 = vpop.permute.xlu0 %2945 }
 0x396   : > { %v3144_v33 = vadd.f32 %v5997_v52, %v3106_v47  ;;  %v3105_v38 = vsel %vm977_vm4, %v3073_v34, %v2946_v23 }
 0x397   : > { %v3143_v49 = vadd.f32 %v5997_v52, %v3105_v38 }
 0x398   : > { %3176 = vst.msk [vmem:[%s6006_s12 + $0x8] sm:$0xff] %vm1012_vm5, %v3144_v33  ;;  %v2952_v45 = vpop.permute.xlu1 %2951 }
 0x399   : > { %3175 = vst.msk [vmem:[%s6006_s12] sm:$0xff] %vm1012_vm5, %v3143_v49  ;;  %v3108_v1 = vsel %vm977_vm4, %v3076_v40, %v2952_v45  ;;  %v2950_v32 = vpop.permute.xlu0 %2949 }
 0x39a   : > { %v3146_v34 = vadd.f32 %v5997_v52, %v3108_v1  ;;  %v3107_v47 = vsel %vm977_vm4, %v3075_v8, %v2950_v32 }
 0x39b   : > { %v3145_v23 = vadd.f32 %v5997_v52, %v3107_v47 }
 0x39c   : > { %3178 = vst.msk [vmem:[%s6006_s12 + $0x18] sm:$0xff] %vm1012_vm5, %v3146_v34  ;;  %v2956_v4 = vpop.permute.xlu1 %2955 }
 0x39d   : > { %3177 = vst.msk [vmem:[%s6006_s12 + $0x10] sm:$0xff] %vm1012_vm5, %v3145_v23  ;;  %v3110_v41 = vsel %vm977_vm4, %v3078_v20, %v2956_v4  ;;  %v2954_v33 = vpop.permute.xlu0 %2953 }
 0x39e   : > { %v3148_v38 = vadd.f32 %v5997_v52, %v3110_v41  ;;  %v3109_v49 = vsel %vm977_vm4, %v3077_v35, %v2954_v33 }
 0x39f   : > { %v3147_v40 = vadd.f32 %v5997_v52, %v3109_v49 }
 0x3a0   : > { %3180 = vst.msk [vmem:[%s6006_s12 + $0x28] sm:$0xff] %vm1012_vm5, %v3148_v38  ;;  %v2960_v13 = vpop.permute.xlu1 %2959 }
 0x3a1   : > { %3179 = vst.msk [vmem:[%s6006_s12 + $0x20] sm:$0xff] %vm1012_vm5, %v3147_v40  ;;  %v3112_v11 = vsel %vm977_vm4, %v3080_v7, %v2960_v13  ;;  %v2958_v45 = vpop.permute.xlu0 %2957 }
 0x3a2   : > { %v3150_v8 = vadd.f32 %v5997_v52, %v3112_v11  ;;  %v3111_v1 = vsel %vm977_vm4, %v3079_v44, %v2958_v45  ;;  %v3090_v45 = vsel %vm944_vm3, %v6504_v17, %v5961_v10 }
 0x3a3   : > { %v3149_v32 = vadd.f32 %v5997_v52, %v3111_v1 }
 0x3a4   : > { %3182 = vst.msk [vmem:[%s6006_s12 + $0x38] sm:$0xff] %vm1012_vm5, %v3150_v8  ;;  %v2964_v9 = vpop.permute.xlu1 %2963  ;;  %v3089_v8 = vsel %vm944_vm3, %v6505_v25, %v5963_v60 }
 0x3a5   : > { %3181 = vst.msk [vmem:[%s6006_s12 + $0x30] sm:$0xff] %vm1012_vm5, %v3149_v32  ;;  %v3114_v2 = vsel %vm977_vm4, %v3082_v22, %v2964_v9  ;;  %v2962_v34 = vpop.permute.xlu0 %2961 }
 0x3a6   : > { %v3152_v47 = vadd.f32 %v5997_v52, %v3114_v2  ;;  %v3113_v23 = vsel %vm977_vm4, %v3081_v14, %v2962_v34  ;;  %v6506_v14 = vld [vmem:[#allocation25_spill] sm:$0xff] }
 0x3a7   : > { %v3151_v26 = vadd.f32 %v5997_v52, %v3113_v23  ;;  %v3092_v2 = vsel %vm944_vm3, %v6506_v14, %v5965_v63  ;;  %v6507_v34 = vld [vmem:[#allocation41_spill] sm:$0xff] }
 0x3a8   : > { %3184 = vst.msk [vmem:[%s6006_s12 + $0x48] sm:$0xff] %vm1012_vm5, %v3152_v47  ;;  %v2968_v56 = vpop.permute.xlu1 %2967  ;;  %v3091_v47 = vsel %vm944_vm3, %v6507_v34, %v5967_v55 }
 0x3a9   : > { %3183 = vst.msk [vmem:[%s6006_s12 + $0x40] sm:$0xff] %vm1012_vm5, %v3151_v26  ;;  %v3116_v20 = vsel %vm977_vm4, %v3084_v36, %v2968_v56  ;;  %v2966_v4 = vpop.permute.xlu0 %2965 }
 0x3aa   : > { %v3154_v35 = vadd.f32 %v5997_v52, %v3116_v20  ;;  %v3115_v41 = vsel %vm977_vm4, %v3083_v21, %v2966_v4  ;;  %v6508_v21 = vld [vmem:[#allocation4_spill] sm:$0xff]  ;;  %v6509_v4 = vld [vmem:[#allocation31_spill] sm:$0xff] }
 0x3ab   : > { %v3153_v3 = vadd.f32 %v5997_v52, %v3115_v41  ;;  %v3094_v20 = vsel %vm944_vm3, %v6508_v21, %v5969_v42 }
 0x3ac   : > { %3186 = vst.msk [vmem:[%s6006_s12 + $0x58] sm:$0xff] %vm1012_vm5, %v3154_v35  ;;  %v2972_v43 = vpop.permute.xlu1 %2971  ;;  %v3093_v35 = vsel %vm944_vm3, %v6509_v4, %v5971_v0 }
 0x3ad   : > { %3185 = vst.msk [vmem:[%s6006_s12 + $0x50] sm:$0xff] %vm1012_vm5, %v3153_v3  ;;  %v3118_v33 = vsel %vm977_vm4, %v3086_v30, %v2972_v43  ;;  %v2970_v38 = vpop.permute.xlu0 %2969 }
 0x3ae   : > { %v3156_v49 = vadd.f32 %v5997_v52, %v3118_v33  ;;  %v3117_v40 = vsel %vm977_vm4, %v3085_v27, %v2970_v38  ;;  %v6510_v27 = vld [vmem:[#allocation44_spill] sm:$0xff]  ;;  %v6511_v38 = vld [vmem:[#allocation22_spill] sm:$0xff] }
 0x3af   : > { %v3155_v24 = vadd.f32 %v5997_v52, %v3117_v40  ;;  %v3096_v33 = vsel %vm944_vm3, %v6510_v27, %v5973_v62 }
 0x3b0   : > { %3188 = vst.msk [vmem:[%s6006_s12 + $0x68] sm:$0xff] %vm1012_vm5, %v3156_v49  ;;  %v2976_v46 = vpop.permute.xlu1 %2975  ;;  %v3095_v49 = vsel %vm944_vm3, %v6511_v38, %v5975_v37 }
 0x3b1   : > { %3187 = vst.msk [vmem:[%s6006_s12 + $0x60] sm:$0xff] %vm1012_vm5, %v3155_v24  ;;  %v3120_v7 = vsel %vm977_vm4, %v3088_v29, %v2976_v46  ;;  %v2974_v13 = vpop.permute.xlu0 %2973 }
 0x3b2   : > { %v3158_v44 = vadd.f32 %v5997_v52, %v3120_v7  ;;  %v3119_v11 = vsel %vm977_vm4, %v3087_v19, %v2974_v13  ;;  %v3098_v19 = vsel %vm944_vm3, %v5860_v51, %v5977_v12  ;;  %v3097_v7 = vsel %vm944_vm3, %v5864_v15, %v5979_v57 }
 0x3b3   : > { %v3157_v54 = vadd.f32 %v5997_v52, %v3119_v11  ;;  %v3100_v12 = vsel %vm944_vm3, %v5884_v53, %v5981_v48  ;;  %v3099_v57 = vsel %vm944_vm3, %v5888_v31, %v5983_v6  ;;  %v3102_v48 = vsel %vm944_vm3, %v5908_v50, %v5985_v16 }
 0x3b4   : > { %3190 = vst.msk [vmem:[%s6006_s12 + $0x78] sm:$0xff] %vm1012_vm5, %v3158_v44  ;;  %v2980_v61 = vpop.permute.xlu1 %2979  ;;  %v3101_v6 = vsel %vm944_vm3, %v5912_v59, %v5987_v39  ;;  %v3104_v16 = vsel %vm944_vm3, %v5931_v18, %v5989_v28  ;;  %v3103_v39 = vsel %vm944_vm3, %v5935_v58, %v5991_v5 }
 0x3b5   : > { %3189 = vst.msk [vmem:[%s6006_s12 + $0x70] sm:$0xff] %vm1012_vm5, %v3157_v54  ;;  %v3122_v1 = vsel %vm977_vm4, %v3090_v45, %v2980_v61  ;;  %v2978_v32 = vpop.permute.xlu0 %2977 }
 0x3b6   : > { %v3160_v22 = vadd.f32 %v5997_v52, %v3122_v1  ;;  %v3121_v9 = vsel %vm977_vm4, %v3089_v8, %v2978_v32 }
 0x3b7   : > { %v3159_v10 = vadd.f32 %v5997_v52, %v3121_v9 }
 0x3b8   : > { %3192 = vst.msk [vmem:[%s6006_s12 + $0x88] sm:$0xff] %vm1012_vm5, %v3160_v22  ;;  %v2984_v60 = vpop.permute.xlu1 %2983 }
 0x3b9   : > { %3191 = vst.msk [vmem:[%s6006_s12 + $0x80] sm:$0xff] %vm1012_vm5, %v3159_v10  ;;  %v3124_v23 = vsel %vm977_vm4, %v3092_v2, %v2984_v60  ;;  %v2982_v26 = vpop.permute.xlu0 %2981 }
 0x3ba   : > { %v3162_v36 = vadd.f32 %v5997_v52, %v3124_v23  ;;  %v3123_v56 = vsel %vm977_vm4, %v3091_v47, %v2982_v26 }
 0x3bb   : > { %v3161_v63 = vadd.f32 %v5997_v52, %v3123_v56 }
 0x3bc   : > { %3194 = vst.msk [vmem:[%s6006_s12 + $0x98] sm:$0xff] %vm1012_vm5, %v3162_v36  ;;  %v2988_v55 = vpop.permute.xlu1 %2987 }
 0x3bd   : > { %3193 = vst.msk [vmem:[%s6006_s12 + $0x90] sm:$0xff] %vm1012_vm5, %v3161_v63  ;;  %v3126_v41 = vsel %vm977_vm4, %v3094_v20, %v2988_v55  ;;  %v2986_v3 = vpop.permute.xlu0 %2985 }
 0x3be   : > { %v3164_v30 = vadd.f32 %v5997_v52, %v3126_v41  ;;  %v3125_v43 = vsel %vm977_vm4, %v3093_v35, %v2986_v3 }
 0x3bf   : > { %v3163_v42 = vadd.f32 %v5997_v52, %v3125_v43 }
 0x3c0   : > { %3196 = vst.msk [vmem:[%s6006_s12 + $0xa8] sm:$0xff] %vm1012_vm5, %v3164_v30  ;;  %v2992_v0 = vpop.permute.xlu1 %2991 }
 0x3c1   : > { %3195 = vst.msk [vmem:[%s6006_s12 + $0xa0] sm:$0xff] %vm1012_vm5, %v3163_v42  ;;  %v3128_v40 = vsel %vm977_vm4, %v3096_v33, %v2992_v0  ;;  %v2990_v24 = vpop.permute.xlu0 %2989 }
 0x3c2   : > { %v3166_v29 = vadd.f32 %v5997_v52, %v3128_v40  ;;  %v3127_v46 = vsel %vm977_vm4, %v3095_v49, %v2990_v24 }
 0x3c3   : > { %v3165_v62 = vadd.f32 %v5997_v52, %v3127_v46 }
 0x3c4   : > { %3198 = vst.msk [vmem:[%s6006_s12 + $0xb8] sm:$0xff] %vm1012_vm5, %v3166_v29  ;;  %v2996_v37 = vpop.permute.xlu1 %2995 }
 0x3c5   : > { %3197 = vst.msk [vmem:[%s6006_s12 + $0xb0] sm:$0xff] %vm1012_vm5, %v3165_v62  ;;  %v3130_v13 = vsel %vm977_vm4, %v3098_v19, %v2996_v37  ;;  %v2994_v44 = vpop.permute.xlu0 %2993 }
 0x3c6   : > { %v3168_v11 = vadd.f32 %v5997_v52, %v3130_v13  ;;  %v3129_v54 = vsel %vm977_vm4, %v3097_v7, %v2994_v44 }
 0x3c7   : > { %v3167_v51 = vadd.f32 %v5997_v52, %v3129_v54 }
 0x3c8   : > { %3200 = vst.msk [vmem:[%s6006_s12 + $0xc8] sm:$0xff] %vm1012_vm5, %v3168_v11  ;;  %v3000_v15 = vpop.permute.xlu1 %2999 }
 0x3c9   : > { %3199 = vst.msk [vmem:[%s6006_s12 + $0xc0] sm:$0xff] %vm1012_vm5, %v3167_v51  ;;  %v3132_v17 = vsel %vm977_vm4, %v3100_v12, %v3000_v15  ;;  %v2998_v45 = vpop.permute.xlu0 %2997 }
 0x3ca   : > { %v3170_v61 = vadd.f32 %v5997_v52, %v3132_v17  ;;  %v3131_v25 = vsel %vm977_vm4, %v3099_v57, %v2998_v45 }
 0x3cb   : > { %v3169_v53 = vadd.f32 %v5997_v52, %v3131_v25 }
 0x3cc   : > { %3202 = vst.msk [vmem:[%s6006_s12 + $0xd8] sm:$0xff] %vm1012_vm5, %v3170_v61  ;;  %v3004_v31 = vpop.permute.xlu1 %3003 }
 0x3cd   : > { %3201 = vst.msk [vmem:[%s6006_s12 + $0xd0] sm:$0xff] %vm1012_vm5, %v3169_v53  ;;  %v3134_v8 = vsel %vm977_vm4, %v3102_v48, %v3004_v31  ;;  %v3002_v1 = vpop.permute.xlu0 %3001 }
 0x3ce   : > { %v3172_v32 = vadd.f32 %v5997_v52, %v3134_v8  ;;  %v3133_v22 = vsel %vm977_vm4, %v3101_v6, %v3002_v1 }
 0x3cf   : > { %v3171_v50 = vadd.f32 %v5997_v52, %v3133_v22 }
 0x3d0   : > { %3204 = vst.msk [vmem:[%s6006_s12 + $0xe8] sm:$0xff] %vm1012_vm5, %v3172_v32  ;;  %v3008_v59 = vpop.permute.xlu1 %3007 }
 0x3d1   : > { %3203 = vst.msk [vmem:[%s6006_s12 + $0xe0] sm:$0xff] %vm1012_vm5, %v3171_v50  ;;  %v3136_v9 = vsel %vm977_vm4, %v3104_v16, %v3008_v59  ;;  %v3006_v10 = vpop.permute.xlu0 %3005 }
 0x3d2   : > { %v3174_v14 = vadd.f32 %v5997_v52, %v3136_v9  ;;  %v3135_v2 = vsel %vm977_vm4, %v3103_v39, %v3006_v10 }
 0x3d3   : > { %v3173_v60 = vadd.f32 %v5997_v52, %v3135_v2 }
 0x3d4   : > { %3206 = vst.msk [vmem:[%s6006_s12 + $0xf8] sm:$0xff] %vm1012_vm5, %v3174_v14 }
 0x3d5   : > { %3205 = vst.msk [vmem:[%s6006_s12 + $0xf0] sm:$0xff] %vm1012_vm5, %v3173_v60 }
 0x3d6 PF: > { %s15_s20 = sadd.s32 1, %s3933_s20   ;;  %s6512_s18 = smov %s3929_s19 }
 0x3d7   : > { %p12_p5 = scmp.ge.s32.totalorder %s15_s20, 4   ;;  %s6513_s19 = smov %s6515_s21 }
 0x3d9   :  { %14 = sbr.rel (!%p12_p5) target bundleno = 2 (0x2), region = 79 }

</bundles_post_ra>
